<compile_context>
chip_gen: v6e
topology: v6e:2x2x1
jax: 0.10.0
libtpu: 0.0.40
codegen_flags: <defaults>
</compile_context>

<pallas_src>
import functools

import jax
import jax.numpy as jnp
from jax import lax
from jax.experimental import pallas as pl
from jax.experimental.pallas import tpu as pltpu

_EPS = 1e-5
_LANE = 128


def _round_up(v, m):
    return -(-v // m) * m


# ---------------------------------------------------------------------------
# Fused kernel: conv1 -> conv2 -> conv3 + shortcut + relu, one image per step
# ---------------------------------------------------------------------------
def _bottleneck_kernel(*refs, stride, H, W, Ho, Wo, cin_p, c_p, e_p, has_sc):
    s = stride
    nph = s * s
    M2 = Ho * Wo
    if has_sc:
        (x_ref, w1_ref, b1_ref, w2_ref, b2_ref, w3_ref, b3_ref,
         ws_ref, bs_ref, out_ref, ph_ref, acc_ref) = refs
    else:
        (x_ref, w1_ref, b1_ref, w2_ref, b2_ref, w3_ref, b3_ref,
         out_ref, ph_ref, acc_ref) = refs

    # ---- conv1: 1x1 + BN + relu over all spatial phases with one big matmul
    x_all = x_ref[...].reshape(nph * M2, cin_p)                       # f32
    y1 = jnp.dot(x_all.astype(jnp.bfloat16), w1_ref[...],
                 preferred_element_type=jnp.float32) + b1_ref[...]
    y1 = jnp.maximum(y1, 0.0).astype(jnp.bfloat16)
    y1 = y1.reshape(nph * Ho, Wo, c_p)

    # ---- scatter valid phase regions into the zero-padded y1 buffer.
    # The zero border of ph_ref implements conv2's spatial zero padding
    # (padding must be applied AFTER conv1, since relu(b1) != 0).
    ph_ref[...] = jnp.zeros_like(ph_ref)
    for a in range(s):
        r0 = (a - 1) % s               # source row parity class of this phase
        i0 = (r0 + 1) // s             # row offset inside the padded buffer
        nr = -(-(H - r0) // s)         # number of valid rows
        for b in range(s):
            c0 = (b - 1) % s
            j0 = (c0 + 1) // s
            nc = -(-(W - c0) // s)
            p = a * s + b
            ph_ref[p, i0:i0 + nr, j0:j0 + nc, :] = y1[p * Ho:p * Ho + nr, :nc, :]

    # ---- conv2: 3x3 stride s = 9 accumulating dots on contiguous windows
    acc_ref[...] = jnp.zeros_like(acc_ref)
    for dh in range(3):
        for dw in range(3):
            p = (dh % s) * s + (dw % s)
            oh, ow = dh // s, dw // s
            patch = ph_ref[p, oh:oh + Ho, ow:ow + Wo, :].reshape(M2, c_p)
            acc_ref[...] += jnp.dot(patch, w2_ref[dh * 3 + dw],
                                    preferred_element_type=jnp.float32)
    y2 = jnp.maximum(acc_ref[...] + b2_ref[...], 0.0).astype(jnp.bfloat16)

    # ---- conv3 (1x1 + BN) + shortcut + final relu (all fused, f32 epilogue)
    y3 = jnp.dot(y2, w3_ref[...], preferred_element_type=jnp.float32) + b3_ref[...]

    psc = (1 % s) * s + (1 % s)            # phase that holds x[::s, ::s]
    x_sc = x_ref[0, psc * Ho:(psc + 1) * Ho, :, :].reshape(M2, cin_p)
    if has_sc:
        sc = jnp.dot(x_sc.astype(jnp.bfloat16), ws_ref[...],
                     preferred_element_type=jnp.float32) + bs_ref[...]
    else:
        sc = x_sc                          # identity shortcut (cin_p == e_p), f32

    out_ref[0] = jnp.maximum(y3 + sc, 0.0).astype(out_ref.dtype)


# ---------------------------------------------------------------------------
# Parameter setup, BN folding, channel padding (plain JAX)
# ---------------------------------------------------------------------------
def _fold_bn(w_oihw, gamma, beta, mean, var):
    s = gamma / jnp.sqrt(var + _EPS)
    return w_oihw * s[:, None, None, None], beta - mean * s


def make_params(key, in_channels, out_channels, stride):
    C = out_channels
    E = 4 * C  # BottleneckBlock.expansion
    keys = jax.random.split(key, 8)

    def bn_init(k, n):
        k1, k2, k3, k4 = jax.random.split(k, 4)
        gamma = 1.0 + 0.1 * jax.random.normal(k1, (n,), jnp.float32)
        beta = 0.1 * jax.random.normal(k2, (n,), jnp.float32)
        mean = 0.1 * jax.random.normal(k3, (n,), jnp.float32)
        var = 1.0 + 0.1 * jax.random.uniform(k4, (n,), jnp.float32)
        return gamma, beta, mean, var

    p = {
        'w1': 0.2 * jax.random.normal(keys[0], (C, in_channels, 1, 1), jnp.float32),
        'bn1': bn_init(keys[1], C),
        'w2': 0.2 * jax.random.normal(keys[2], (C, C, 3, 3), jnp.float32),
        'bn2': bn_init(keys[3], C),
        'w3': 0.2 * jax.random.normal(keys[4], (E, C, 1, 1), jnp.float32),
        'bn3': bn_init(keys[5], E),
        'stride': stride,
        'has_shortcut_conv': (stride != 1) or (in_channels != E),
    }
    if p['has_shortcut_conv']:
        p['ws'] = 0.2 * jax.random.normal(keys[6], (E, in_channels, 1, 1), jnp.float32)
        p['bns'] = bn_init(keys[7], E)
    return p


def _prep_kernel_params(p, cin):
    """Fold BN into conv weights, reshape to matmul form, pad channels, bf16."""
    C = p['w1'].shape[0]
    E = p['w3'].shape[0]
    cin_p = _round_up(cin, _LANE)
    c_p = _round_up(C, _LANE)
    e_p = _round_up(E, _LANE)

    def pad2(m, rows, cols):
        return jnp.pad(m, ((0, rows - m.shape[0]), (0, cols - m.shape[1])))

    out = {}
    w1, b1 = _fold_bn(p['w1'], *p['bn1'])
    out['w1'] = pad2(jnp.transpose(w1[:, :, 0, 0]), cin_p, c_p).astype(jnp.bfloat16)
    out['b1'] = pad2(b1[None, :], 1, c_p).astype(jnp.float32)

    w2, b2 = _fold_bn(p['w2'], *p['bn2'])
    w2 = jnp.transpose(w2, (2, 3, 1, 0)).reshape(9, C, C)          # (kh*3+kw, I, O)
    out['w2'] = jnp.pad(w2, ((0, 0), (0, c_p - C), (0, c_p - C))).astype(jnp.bfloat16)
    out['b2'] = pad2(b2[None, :], 1, c_p).astype(jnp.float32)

    w3, b3 = _fold_bn(p['w3'], *p['bn3'])
    out['w3'] = pad2(jnp.transpose(w3[:, :, 0, 0]), c_p, e_p).astype(jnp.bfloat16)
    out['b3'] = pad2(b3[None, :], 1, e_p).astype(jnp.float32)

    if p['has_shortcut_conv']:
        ws, bs = _fold_bn(p['ws'], *p['bns'])
        out['ws'] = pad2(jnp.transpose(ws[:, :, 0, 0]), cin_p, e_p).astype(jnp.bfloat16)
        out['bs'] = pad2(bs[None, :], 1, e_p).astype(jnp.float32)
    out['dims'] = (cin_p, c_p, e_p)
    return out


# ---------------------------------------------------------------------------
# Forward wrapper
# ---------------------------------------------------------------------------
def bottleneck_forward(x_nchw, params):
    """Pallas implementation of BottleneckBlock.forward (inference BN)."""
    s = int(params['stride'])
    assert s in (1, 2), "TODO(synk): strides other than 1/2 are not implemented"
    N, Cin, H, W = x_nchw.shape
    kp = _prep_kernel_params(params, Cin)
    cin_p, c_p, e_p = kp['dims']
    E = params['w3'].shape[0]
    has_sc = bool(params['has_shortcut_conv'])

    Ho = (H - 1) // s + 1
    Wo = (W - 1) // s + 1
    M2 = Ho * Wo
    nph = s * s

    # NHWC (channels last = lane dim), channel-pad to a multiple of 128.
    x = jnp.transpose(x_nchw, (0, 2, 3, 1)).astype(jnp.float32)
    x = jnp.pad(x, ((0, 0), (0, 0), (0, 0), (0, cin_p - Cin)))

    # Spatial phase split of x (space-to-depth).  conv1 is 1x1 so it commutes
    # with this rearrangement; it makes the strided 3x3 conv contiguous and
    # the shortcut subsample free.
    phases = []
    for a in range(s):
        r0 = (a - 1) % s
        for b in range(s):
            c0 = (b - 1) % s
            ph = x[:, r0::s, c0::s, :]
            ph = jnp.pad(ph, ((0, 0), (0, Ho - ph.shape[1]),
                              (0, Wo - ph.shape[2]), (0, 0)))
            phases.append(ph)
    xph = jnp.stack(phases, axis=1).reshape(N, nph * Ho, Wo, cin_p)

    weight_args = [kp['w1'], kp['b1'], kp['w2'], kp['b2'], kp['w3'], kp['b3']]
    weight_specs = [
        pl.BlockSpec((cin_p, c_p), lambda n: (0, 0)),
        pl.BlockSpec((1, c_p), lambda n: (0, 0)),
        pl.BlockSpec((9, c_p, c_p), lambda n: (0, 0, 0)),
        pl.BlockSpec((1, c_p), lambda n: (0, 0)),
        pl.BlockSpec((c_p, e_p), lambda n: (0, 0)),
        pl.BlockSpec((1, e_p), lambda n: (0, 0)),
    ]
    if has_sc:
        weight_args += [kp['ws'], kp['bs']]
        weight_specs += [pl.BlockSpec((cin_p, e_p), lambda n: (0, 0)),
                         pl.BlockSpec((1, e_p), lambda n: (0, 0))]

    kernel = functools.partial(
        _bottleneck_kernel, stride=s, H=H, W=W, Ho=Ho, Wo=Wo,
        cin_p=cin_p, c_p=c_p, e_p=e_p, has_sc=has_sc)

    # Advisory cost estimate + explicit VMEM budget (sized for v7x's 64 MiB).
    flops = 2 * N * M2 * (nph * cin_p * c_p + 9 * c_p * c_p + c_p * e_p
                          + (cin_p * e_p if has_sc else 0))
    wt_bytes = sum(int(w.size) * w.dtype.itemsize for w in weight_args)
    bytes_accessed = int(xph.size) * 4 + wt_bytes + N * M2 * e_p * 4
    blk_bytes = (nph * M2 * cin_p + M2 * e_p) * 4
    scratch_bytes = nph * (Ho + 2 // s) * (Wo + 2 // s) * c_p * 2 + M2 * c_p * 4
    vmem_need = 2 * blk_bytes + 2 * wt_bytes + scratch_bytes + (4 << 20)
    vmem_limit = int(min(48 << 20, max(32 << 20, vmem_need)))

    out = pl.pallas_call(
        kernel,
        out_shape=jax.ShapeDtypeStruct((N, M2, e_p), jnp.float32),
        grid=(N,),
        in_specs=[pl.BlockSpec((1, nph * Ho, Wo, cin_p),
                               lambda n: (n, 0, 0, 0))] + weight_specs,
        out_specs=pl.BlockSpec((1, M2, e_p), lambda n: (n, 0, 0)),
        scratch_shapes=[
            pltpu.VMEM((nph, Ho + 2 // s, Wo + 2 // s, c_p), jnp.bfloat16),  # y1 (padded)
            pltpu.VMEM((M2, c_p), jnp.float32),                             # conv2 acc
        ],
        compiler_params=pltpu.CompilerParams(
            dimension_semantics=("parallel",),
            vmem_limit_bytes=vmem_limit),
        cost_estimate=pl.CostEstimate(flops=int(flops), transcendentals=0,
                                      bytes_accessed=int(bytes_accessed)),
    )(xph, *weight_args)

    out = out.reshape(N, Ho, Wo, e_p)[:, :, :, :E]
    return jnp.transpose(out, (0, 3, 1, 2))        # back to NCHW


# ---------------------------------------------------------------------------
# Pure-JAX reference (lax.conv) for correctness check
# ---------------------------------------------------------------------------
def bottleneck_reference(x_nchw, params):
    stride = params['stride']

    def conv_bn(x, w, bn, s, pad, relu):
        gamma, beta, mean, var = bn
        y = lax.conv_general_dilated(
            x, w, (s, s), [(pad, pad), (pad, pad)],
            dimension_numbers=('NCHW', 'OIHW', 'NCHW'))
        scale = gamma / jnp.sqrt(var + _EPS)
        y = y * scale[None, :, None, None] + (beta - mean * scale)[None, :, None, None]
        if relu:
            y = jnp.maximum(y, 0.0)
        return y

    x = x_nchw.astype(jnp.float32)
    y = conv_bn(x, params['w1'], params['bn1'], 1, 0, True)
    y = conv_bn(y, params['w2'], params['bn2'], stride, 1, True)
    y = conv_bn(y, params['w3'], params['bn3'], 1, 0, False)
    if params['has_shortcut_conv']:
        sc = conv_bn(x, params['ws'], params['bns'], stride, 0, False)
    else:
        sc = x
    return jnp.maximum(y + sc, 0.0)


# ---------------------------------------------------------------------------
if __name__ == "__main__":
    key = jax.random.PRNGKey(0)
    kx, kp = jax.random.split(key)

    in_channels, out_channels, stride = 8, 4, 2
    x = jax.random.normal(kx, (2, in_channels, 16, 16), jnp.float32)  # NCHW

    params = make_params(kp, in_channels, out_channels, stride)

    out = jax.block_until_ready(bottleneck_forward(x, params))
    ref = jax.block_until_ready(bottleneck_reference(x, params))

    assert out.shape == ref.shape == (2, out_channels * 4, 8, 8), out.shape
    # bf16 MXU inputs with f32 accumulation -> loosen tolerance vs f32 reference
    assert jnp.allclose(out, ref, atol=5e-2, rtol=5e-2), \
        float(jnp.max(jnp.abs(out - ref)))

    print("KERNEL_OK")
</pallas_src>

<mosaic_0001>
module attributes {stable_mosaic.version = 11 : i64} {
  func.func @_bottleneck_kernel(%arg0: i32, %arg1: memref<1x32x8x128xf32, #tpu.memory_space<vmem>>, %arg2: memref<128x128xbf16, #tpu.memory_space<vmem>>, %arg3: memref<1x128xf32, #tpu.memory_space<vmem>>, %arg4: memref<9x128x128xbf16, #tpu.memory_space<vmem>>, %arg5: memref<1x128xf32, #tpu.memory_space<vmem>>, %arg6: memref<128x128xbf16, #tpu.memory_space<vmem>>, %arg7: memref<1x128xf32, #tpu.memory_space<vmem>>, %arg8: memref<128x128xbf16, #tpu.memory_space<vmem>>, %arg9: memref<1x128xf32, #tpu.memory_space<vmem>>, %arg10: memref<1x64x128xf32, #tpu.memory_space<vmem>>, %arg11: memref<4x9x9x128xbf16, #tpu.memory_space<vmem>>, %arg12: memref<64x128xf32, #tpu.memory_space<vmem>>) attributes {dimension_semantics = [#tpu.dimension_semantics<parallel>], iteration_bounds = array<i64: 2>, scalar_prefetch = 0 : i64, scratch_operands = 2 : i64, tpu.core_type = #tpu.core_type<tc>, window_params = [{transform_indices = @transform_0, window_bounds = array<i64: 1, 32, 8, 128>}, {pipeline_mode = #tpu.pipeline_mode<synchronous>, transform_indices = @transform_1, window_bounds = array<i64: 128, 128>}, {pipeline_mode = #tpu.pipeline_mode<synchronous>, transform_indices = @transform_2, window_bounds = array<i64: 1, 128>}, {pipeline_mode = #tpu.pipeline_mode<synchronous>, transform_indices = @transform_3, window_bounds = array<i64: 9, 128, 128>}, {pipeline_mode = #tpu.pipeline_mode<synchronous>, transform_indices = @transform_4, window_bounds = array<i64: 1, 128>}, {pipeline_mode = #tpu.pipeline_mode<synchronous>, transform_indices = @transform_5, window_bounds = array<i64: 128, 128>}, {pipeline_mode = #tpu.pipeline_mode<synchronous>, transform_indices = @transform_6, window_bounds = array<i64: 1, 128>}, {pipeline_mode = #tpu.pipeline_mode<synchronous>, transform_indices = @transform_7, window_bounds = array<i64: 128, 128>}, {pipeline_mode = #tpu.pipeline_mode<synchronous>, transform_indices = @transform_8, window_bounds = array<i64: 1, 128>}, {transform_indices = @transform_9, window_bounds = array<i64: 1, 64, 128>}]} {
    %c0 = arith.constant 0 : index
    %c0_0 = arith.constant 0 : index
    %c0_1 = arith.constant 0 : index
    %c0_2 = arith.constant 0 : index
    %0 = vector.load %arg1[%c0, %c0_0, %c0_1, %c0_2] : memref<1x32x8x128xf32, #tpu.memory_space<vmem>>, vector<1x32x8x128xf32>
    %1 = vector.shape_cast %0 : vector<1x32x8x128xf32> to vector<256x128xf32>
    %2 = arith.truncf %1 : vector<256x128xf32> to vector<256x128xbf16>
    %c0_3 = arith.constant 0 : index
    %c0_4 = arith.constant 0 : index
    %3 = vector.load %arg2[%c0_3, %c0_4] : memref<128x128xbf16, #tpu.memory_space<vmem>>, vector<128x128xbf16>
    %cst = arith.constant dense<0.000000e+00> : vector<256x128xf32>
    %4 = tpu.matmul %2, %3, %cst {dimension_numbers = #tpu.dot_dimension_numbers<[1], [0], [0], [1], [0, 0, 1, 1], [], []>} : vector<256x128xbf16>, vector<128x128xbf16>, vector<256x128xf32> -> vector<256x128xf32>
    %c0_5 = arith.constant 0 : index
    %c0_6 = arith.constant 0 : index
    %5 = vector.load %arg3[%c0_5, %c0_6] : memref<1x128xf32, #tpu.memory_space<vmem>>, vector<1x128xf32>
    %6 = vector.broadcast %5 : vector<1x128xf32> to vector<256x128xf32>
    %7 = arith.addf %4, %6 : vector<256x128xf32>
    %cst_7 = arith.constant 0.000000e+00 : f32
    %8 = vector.broadcast %cst_7 : f32 to vector<256x128xf32>
    %9 = arith.maximumf %7, %8 : vector<256x128xf32>
    %10 = arith.truncf %9 : vector<256x128xf32> to vector<256x128xbf16>
    %11 = vector.shape_cast %10 : vector<256x128xbf16> to vector<32x8x128xbf16>
    %cst_8 = arith.constant 0.000000e+00 : bf16
    %12 = vector.broadcast %cst_8 : bf16 to vector<4x9x9x128xbf16>
    %c0_9 = arith.constant 0 : index
    %c0_10 = arith.constant 0 : index
    %c0_11 = arith.constant 0 : index
    %c0_12 = arith.constant 0 : index
    %13 = vector.load %arg11[%c0_9, %c0_10, %c0_11, %c0_12] : memref<4x9x9x128xbf16, #tpu.memory_space<vmem>>, vector<4x9x9x128xbf16>
    tpu.vector_store %arg11[%c0_9, %c0_10, %c0_11, %c0_12], %12 {strides = array<i32>} : memref<4x9x9x128xbf16, #tpu.memory_space<vmem>>, vector<4x9x9x128xbf16>,
    %14 = vector.extract_strided_slice %11 {offsets = [0, 0, 0], sizes = [8, 8, 128], strides = [1, 1, 1]} : vector<32x8x128xbf16> to vector<8x8x128xbf16>
    %c0_13 = arith.constant 0 : index
    %c1 = arith.constant 1 : index
    %c1_14 = arith.constant 1 : index
    %c0_15 = arith.constant 0 : index
    %15 = vector.load %arg11[%c0_13, %c1, %c1_14, %c0_15] : memref<4x9x9x128xbf16, #tpu.memory_space<vmem>>, vector<1x8x8x128xbf16>
    %16 = vector.shape_cast %15 : vector<1x8x8x128xbf16> to vector<8x8x128xbf16>
    %17 = vector.shape_cast %14 : vector<8x8x128xbf16> to vector<1x8x8x128xbf16>
    tpu.vector_store %arg11[%c0_13, %c1, %c1_14, %c0_15], %17 {strides = array<i32>} : memref<4x9x9x128xbf16, #tpu.memory_space<vmem>>, vector<1x8x8x128xbf16>,
    %18 = vector.extract_strided_slice %11 {offsets = [8, 0, 0], sizes = [8, 8, 128], strides = [1, 1, 1]} : vector<32x8x128xbf16> to vector<8x8x128xbf16>
    %c1_16 = arith.constant 1 : index
    %c1_17 = arith.constant 1 : index
    %c0_18 = arith.constant 0 : index
    %c0_19 = arith.constant 0 : index
    %19 = vector.load %arg11[%c1_16, %c1_17, %c0_18, %c0_19] : memref<4x9x9x128xbf16, #tpu.memory_space<vmem>>, vector<1x8x8x128xbf16>
    %20 = vector.shape_cast %19 : vector<1x8x8x128xbf16> to vector<8x8x128xbf16>
    %21 = vector.shape_cast %18 : vector<8x8x128xbf16> to vector<1x8x8x128xbf16>
    tpu.vector_store %arg11[%c1_16, %c1_17, %c0_18, %c0_19], %21 {strides = array<i32>} : memref<4x9x9x128xbf16, #tpu.memory_space<vmem>>, vector<1x8x8x128xbf16>,
    %22 = vector.extract_strided_slice %11 {offsets = [16, 0, 0], sizes = [8, 8, 128], strides = [1, 1, 1]} : vector<32x8x128xbf16> to vector<8x8x128xbf16>
    %c2 = arith.constant 2 : index
    %c0_20 = arith.constant 0 : index
    %c1_21 = arith.constant 1 : index
    %c0_22 = arith.constant 0 : index
    %23 = vector.load %arg11[%c2, %c0_20, %c1_21, %c0_22] : memref<4x9x9x128xbf16, #tpu.memory_space<vmem>>, vector<1x8x8x128xbf16>
    %24 = vector.shape_cast %23 : vector<1x8x8x128xbf16> to vector<8x8x128xbf16>
    %25 = vector.shape_cast %22 : vector<8x8x128xbf16> to vector<1x8x8x128xbf16>
    tpu.vector_store %arg11[%c2, %c0_20, %c1_21, %c0_22], %25 {strides = array<i32>} : memref<4x9x9x128xbf16, #tpu.memory_space<vmem>>, vector<1x8x8x128xbf16>,
    %26 = vector.extract_strided_slice %11 {offsets = [24, 0, 0], sizes = [8, 8, 128], strides = [1, 1, 1]} : vector<32x8x128xbf16> to vector<8x8x128xbf16>
    %c3 = arith.constant 3 : index
    %c0_23 = arith.constant 0 : index
    %c0_24 = arith.constant 0 : index
    %c0_25 = arith.constant 0 : index
    %27 = vector.load %arg11[%c3, %c0_23, %c0_24, %c0_25] : memref<4x9x9x128xbf16, #tpu.memory_space<vmem>>, vector<1x8x8x128xbf16>
    %28 = vector.shape_cast %27 : vector<1x8x8x128xbf16> to vector<8x8x128xbf16>
    %29 = vector.shape_cast %26 : vector<8x8x128xbf16> to vector<1x8x8x128xbf16>
    tpu.vector_store %arg11[%c3, %c0_23, %c0_24, %c0_25], %29 {strides = array<i32>} : memref<4x9x9x128xbf16, #tpu.memory_space<vmem>>, vector<1x8x8x128xbf16>,
    %cst_26 = arith.constant 0.000000e+00 : f32
    %30 = vector.broadcast %cst_26 : f32 to vector<64x128xf32>
    %c0_27 = arith.constant 0 : index
    %c0_28 = arith.constant 0 : index
    %31 = vector.load %arg12[%c0_27, %c0_28] : memref<64x128xf32, #tpu.memory_space<vmem>>, vector<64x128xf32>
    tpu.vector_store %arg12[%c0_27, %c0_28], %30 {strides = array<i32>} : memref<64x128xf32, #tpu.memory_space<vmem>>, vector<64x128xf32>,
    %c0_29 = arith.constant 0 : index
    %c0_30 = arith.constant 0 : index
    %c0_31 = arith.constant 0 : index
    %c0_32 = arith.constant 0 : index
    %32 = vector.load %arg11[%c0_29, %c0_30, %c0_31, %c0_32] : memref<4x9x9x128xbf16, #tpu.memory_space<vmem>>, vector<1x8x8x128xbf16>
    %33 = vector.shape_cast %32 : vector<1x8x8x128xbf16> to vector<8x8x128xbf16>
    %34 = vector.shape_cast %33 : vector<8x8x128xbf16> to vector<64x128xbf16>
    %c0_33 = arith.constant 0 : index
    %c0_34 = arith.constant 0 : index
    %35 = vector.load %arg12[%c0_33, %c0_34] : memref<64x128xf32, #tpu.memory_space<vmem>>, vector<64x128xf32>
    %c0_35 = arith.constant 0 : index
    %c0_36 = arith.constant 0 : index
    %c0_37 = arith.constant 0 : index
    %36 = vector.load %arg4[%c0_35, %c0_36, %c0_37] : memref<9x128x128xbf16, #tpu.memory_space<vmem>>, vector<1x128x128xbf16>
    %37 = vector.shape_cast %36 : vector<1x128x128xbf16> to vector<128x128xbf16>
    %cst_38 = arith.constant dense<0.000000e+00> : vector<64x128xf32>
    %38 = tpu.matmul %34, %37, %cst_38 {dimension_numbers = #tpu.dot_dimension_numbers<[1], [0], [0], [1], [0, 0, 1, 1], [], []>} : vector<64x128xbf16>, vector<128x128xbf16>, vector<64x128xf32> -> vector<64x128xf32>
    %39 = arith.addf %35, %38 : vector<64x128xf32>
    %c0_39 = arith.constant 0 : index
    %c0_40 = arith.constant 0 : index
    %40 = vector.load %arg12[%c0_39, %c0_40] : memref<64x128xf32, #tpu.memory_space<vmem>>, vector<64x128xf32>
    tpu.vector_store %arg12[%c0_39, %c0_40], %39 {strides = array<i32>} : memref<64x128xf32, #tpu.memory_space<vmem>>, vector<64x128xf32>,
    %c1_41 = arith.constant 1 : index
    %c0_42 = arith.constant 0 : index
    %c0_43 = arith.constant 0 : index
    %c0_44 = arith.constant 0 : index
    %41 = vector.load %arg11[%c1_41, %c0_42, %c0_43, %c0_44] : memref<4x9x9x128xbf16, #tpu.memory_space<vmem>>, vector<1x8x8x128xbf16>
    %42 = vector.shape_cast %41 : vector<1x8x8x128xbf16> to vector<8x8x128xbf16>
    %43 = vector.shape_cast %42 : vector<8x8x128xbf16> to vector<64x128xbf16>
    %c0_45 = arith.constant 0 : index
    %c0_46 = arith.constant 0 : index
    %44 = vector.load %arg12[%c0_45, %c0_46] : memref<64x128xf32, #tpu.memory_space<vmem>>, vector<64x128xf32>
    %c1_47 = arith.constant 1 : index
    %c0_48 = arith.constant 0 : index
    %c0_49 = arith.constant 0 : index
    %45 = vector.load %arg4[%c1_47, %c0_48, %c0_49] : memref<9x128x128xbf16, #tpu.memory_space<vmem>>, vector<1x128x128xbf16>
    %46 = vector.shape_cast %45 : vector<1x128x128xbf16> to vector<128x128xbf16>
    %cst_50 = arith.constant dense<0.000000e+00> : vector<64x128xf32>
    %47 = tpu.matmul %43, %46, %cst_50 {dimension_numbers = #tpu.dot_dimension_numbers<[1], [0], [0], [1], [0, 0, 1, 1], [], []>} : vector<64x128xbf16>, vector<128x128xbf16>, vector<64x128xf32> -> vector<64x128xf32>
    %48 = arith.addf %44, %47 : vector<64x128xf32>
    %c0_51 = arith.constant 0 : index
    %c0_52 = arith.constant 0 : index
    %49 = vector.load %arg12[%c0_51, %c0_52] : memref<64x128xf32, #tpu.memory_space<vmem>>, vector<64x128xf32>
    tpu.vector_store %arg12[%c0_51, %c0_52], %48 {strides = array<i32>} : memref<64x128xf32, #tpu.memory_space<vmem>>, vector<64x128xf32>,
    %c0_53 = arith.constant 0 : index
    %c0_54 = arith.constant 0 : index
    %c1_55 = arith.constant 1 : index
    %c0_56 = arith.constant 0 : index
    %50 = vector.load %arg11[%c0_53, %c0_54, %c1_55, %c0_56] : memref<4x9x9x128xbf16, #tpu.memory_space<vmem>>, vector<1x8x8x128xbf16>
    %51 = vector.shape_cast %50 : vector<1x8x8x128xbf16> to vector<8x8x128xbf16>
    %52 = vector.shape_cast %51 : vector<8x8x128xbf16> to vector<64x128xbf16>
    %c0_57 = arith.constant 0 : index
    %c0_58 = arith.constant 0 : index
    %53 = vector.load %arg12[%c0_57, %c0_58] : memref<64x128xf32, #tpu.memory_space<vmem>>, vector<64x128xf32>
    %c2_59 = arith.constant 2 : index
    %c0_60 = arith.constant 0 : index
    %c0_61 = arith.constant 0 : index
    %54 = vector.load %arg4[%c2_59, %c0_60, %c0_61] : memref<9x128x128xbf16, #tpu.memory_space<vmem>>, vector<1x128x128xbf16>
    %55 = vector.shape_cast %54 : vector<1x128x128xbf16> to vector<128x128xbf16>
    %cst_62 = arith.constant dense<0.000000e+00> : vector<64x128xf32>
    %56 = tpu.matmul %52, %55, %cst_62 {dimension_numbers = #tpu.dot_dimension_numbers<[1], [0], [0], [1], [0, 0, 1, 1], [], []>} : vector<64x128xbf16>, vector<128x128xbf16>, vector<64x128xf32> -> vector<64x128xf32>
    %57 = arith.addf %53, %56 : vector<64x128xf32>
    %c0_63 = arith.constant 0 : index
    %c0_64 = arith.constant 0 : index
    %58 = vector.load %arg12[%c0_63, %c0_64] : memref<64x128xf32, #tpu.memory_space<vmem>>, vector<64x128xf32>
    tpu.vector_store %arg12[%c0_63, %c0_64], %57 {strides = array<i32>} : memref<64x128xf32, #tpu.memory_space<vmem>>, vector<64x128xf32>,
    %c2_65 = arith.constant 2 : index
    %c0_66 = arith.constant 0 : index
    %c0_67 = arith.constant 0 : index
    %c0_68 = arith.constant 0 : index
    %59 = vector.load %arg11[%c2_65, %c0_66, %c0_67, %c0_68] : memref<4x9x9x128xbf16, #tpu.memory_space<vmem>>, vector<1x8x8x128xbf16>
    %60 = vector.shape_cast %59 : vector<1x8x8x128xbf16> to vector<8x8x128xbf16>
    %61 = vector.shape_cast %60 : vector<8x8x128xbf16> to vector<64x128xbf16>
    %c0_69 = arith.constant 0 : index
    %c0_70 = arith.constant 0 : index
    %62 = vector.load %arg12[%c0_69, %c0_70] : memref<64x128xf32, #tpu.memory_space<vmem>>, vector<64x128xf32>
    %c3_71 = arith.constant 3 : index
    %c0_72 = arith.constant 0 : index
    %c0_73 = arith.constant 0 : index
    %63 = vector.load %arg4[%c3_71, %c0_72, %c0_73] : memref<9x128x128xbf16, #tpu.memory_space<vmem>>, vector<1x128x128xbf16>
    %64 = vector.shape_cast %63 : vector<1x128x128xbf16> to vector<128x128xbf16>
    %cst_74 = arith.constant dense<0.000000e+00> : vector<64x128xf32>
    %65 = tpu.matmul %61, %64, %cst_74 {dimension_numbers = #tpu.dot_dimension_numbers<[1], [0], [0], [1], [0, 0, 1, 1], [], []>} : vector<64x128xbf16>, vector<128x128xbf16>, vector<64x128xf32> -> vector<64x128xf32>
    %66 = arith.addf %62, %65 : vector<64x128xf32>
    %c0_75 = arith.constant 0 : index
    %c0_76 = arith.constant 0 : index
    %67 = vector.load %arg12[%c0_75, %c0_76] : memref<64x128xf32, #tpu.memory_space<vmem>>, vector<64x128xf32>
    tpu.vector_store %arg12[%c0_75, %c0_76], %66 {strides = array<i32>} : memref<64x128xf32, #tpu.memory_space<vmem>>, vector<64x128xf32>,
    %c3_77 = arith.constant 3 : index
    %c0_78 = arith.constant 0 : index
    %c0_79 = arith.constant 0 : index
    %c0_80 = arith.constant 0 : index
    %68 = vector.load %arg11[%c3_77, %c0_78, %c0_79, %c0_80] : memref<4x9x9x128xbf16, #tpu.memory_space<vmem>>, vector<1x8x8x128xbf16>
    %69 = vector.shape_cast %68 : vector<1x8x8x128xbf16> to vector<8x8x128xbf16>
    %70 = vector.shape_cast %69 : vector<8x8x128xbf16> to vector<64x128xbf16>
    %c0_81 = arith.constant 0 : index
    %c0_82 = arith.constant 0 : index
    %71 = vector.load %arg12[%c0_81, %c0_82] : memref<64x128xf32, #tpu.memory_space<vmem>>, vector<64x128xf32>
    %c4 = arith.constant 4 : index
    %c0_83 = arith.constant 0 : index
    %c0_84 = arith.constant 0 : index
    %72 = vector.load %arg4[%c4, %c0_83, %c0_84] : memref<9x128x128xbf16, #tpu.memory_space<vmem>>, vector<1x128x128xbf16>
    %73 = vector.shape_cast %72 : vector<1x128x128xbf16> to vector<128x128xbf16>
    %cst_85 = arith.constant dense<0.000000e+00> : vector<64x128xf32>
    %74 = tpu.matmul %70, %73, %cst_85 {dimension_numbers = #tpu.dot_dimension_numbers<[1], [0], [0], [1], [0, 0, 1, 1], [], []>} : vector<64x128xbf16>, vector<128x128xbf16>, vector<64x128xf32> -> vector<64x128xf32>
    %75 = arith.addf %71, %74 : vector<64x128xf32>
    %c0_86 = arith.constant 0 : index
    %c0_87 = arith.constant 0 : index
    %76 = vector.load %arg12[%c0_86, %c0_87] : memref<64x128xf32, #tpu.memory_space<vmem>>, vector<64x128xf32>
    tpu.vector_store %arg12[%c0_86, %c0_87], %75 {strides = array<i32>} : memref<64x128xf32, #tpu.memory_space<vmem>>, vector<64x128xf32>,
    %c2_88 = arith.constant 2 : index
    %c0_89 = arith.constant 0 : index
    %c1_90 = arith.constant 1 : index
    %c0_91 = arith.constant 0 : index
    %77 = vector.load %arg11[%c2_88, %c0_89, %c1_90, %c0_91] : memref<4x9x9x128xbf16, #tpu.memory_space<vmem>>, vector<1x8x8x128xbf16>
    %78 = vector.shape_cast %77 : vector<1x8x8x128xbf16> to vector<8x8x128xbf16>
    %79 = vector.shape_cast %78 : vector<8x8x128xbf16> to vector<64x128xbf16>
    %c0_92 = arith.constant 0 : index
    %c0_93 = arith.constant 0 : index
    %80 = vector.load %arg12[%c0_92, %c0_93] : memref<64x128xf32, #tpu.memory_space<vmem>>, vector<64x128xf32>
    %c5 = arith.constant 5 : index
    %c0_94 = arith.constant 0 : index
    %c0_95 = arith.constant 0 : index
    %81 = vector.load %arg4[%c5, %c0_94, %c0_95] : memref<9x128x128xbf16, #tpu.memory_space<vmem>>, vector<1x128x128xbf16>
    %82 = vector.shape_cast %81 : vector<1x128x128xbf16> to vector<128x128xbf16>
    %cst_96 = arith.constant dense<0.000000e+00> : vector<64x128xf32>
    %83 = tpu.matmul %79, %82, %cst_96 {dimension_numbers = #tpu.dot_dimension_numbers<[1], [0], [0], [1], [0, 0, 1, 1], [], []>} : vector<64x128xbf16>, vector<128x128xbf16>, vector<64x128xf32> -> vector<64x128xf32>
    %84 = arith.addf %80, %83 : vector<64x128xf32>
    %c0_97 = arith.constant 0 : index
    %c0_98 = arith.constant 0 : index
    %85 = vector.load %arg12[%c0_97, %c0_98] : memref<64x128xf32, #tpu.memory_space<vmem>>, vector<64x128xf32>
    tpu.vector_store %arg12[%c0_97, %c0_98], %84 {strides = array<i32>} : memref<64x128xf32, #tpu.memory_space<vmem>>, vector<64x128xf32>,
    %c0_99 = arith.constant 0 : index
    %c1_100 = arith.constant 1 : index
    %c0_101 = arith.constant 0 : index
    %c0_102 = arith.constant 0 : index
    %86 = vector.load %arg11[%c0_99, %c1_100, %c0_101, %c0_102] : memref<4x9x9x128xbf16, #tpu.memory_space<vmem>>, vector<1x8x8x128xbf16>
    %87 = vector.shape_cast %86 : vector<1x8x8x128xbf16> to vector<8x8x128xbf16>
    %88 = vector.shape_cast %87 : vector<8x8x128xbf16> to vector<64x128xbf16>
    %c0_103 = arith.constant 0 : index
    %c0_104 = arith.constant 0 : index
    %89 = vector.load %arg12[%c0_103, %c0_104] : memref<64x128xf32, #tpu.memory_space<vmem>>, vector<64x128xf32>
    %c6 = arith.constant 6 : index
    %c0_105 = arith.constant 0 : index
    %c0_106 = arith.constant 0 : index
    %90 = vector.load %arg4[%c6, %c0_105, %c0_106] : memref<9x128x128xbf16, #tpu.memory_space<vmem>>, vector<1x128x128xbf16>
    %91 = vector.shape_cast %90 : vector<1x128x128xbf16> to vector<128x128xbf16>
    %cst_107 = arith.constant dense<0.000000e+00> : vector<64x128xf32>
    %92 = tpu.matmul %88, %91, %cst_107 {dimension_numbers = #tpu.dot_dimension_numbers<[1], [0], [0], [1], [0, 0, 1, 1], [], []>} : vector<64x128xbf16>, vector<128x128xbf16>, vector<64x128xf32> -> vector<64x128xf32>
    %93 = arith.addf %89, %92 : vector<64x128xf32>
    %c0_108 = arith.constant 0 : index
    %c0_109 = arith.constant 0 : index
    %94 = vector.load %arg12[%c0_108, %c0_109] : memref<64x128xf32, #tpu.memory_space<vmem>>, vector<64x128xf32>
    tpu.vector_store %arg12[%c0_108, %c0_109], %93 {strides = array<i32>} : memref<64x128xf32, #tpu.memory_space<vmem>>, vector<64x128xf32>,
    %c1_110 = arith.constant 1 : index
    %c1_111 = arith.constant 1 : index
    %c0_112 = arith.constant 0 : index
    %c0_113 = arith.constant 0 : index
    %95 = vector.load %arg11[%c1_110, %c1_111, %c0_112, %c0_113] : memref<4x9x9x128xbf16, #tpu.memory_space<vmem>>, vector<1x8x8x128xbf16>
    %96 = vector.shape_cast %95 : vector<1x8x8x128xbf16> to vector<8x8x128xbf16>
    %97 = vector.shape_cast %96 : vector<8x8x128xbf16> to vector<64x128xbf16>
    %c0_114 = arith.constant 0 : index
    %c0_115 = arith.constant 0 : index
    %98 = vector.load %arg12[%c0_114, %c0_115] : memref<64x128xf32, #tpu.memory_space<vmem>>, vector<64x128xf32>
    %c7 = arith.constant 7 : index
    %c0_116 = arith.constant 0 : index
    %c0_117 = arith.constant 0 : index
    %99 = vector.load %arg4[%c7, %c0_116, %c0_117] : memref<9x128x128xbf16, #tpu.memory_space<vmem>>, vector<1x128x128xbf16>
    %100 = vector.shape_cast %99 : vector<1x128x128xbf16> to vector<128x128xbf16>
    %cst_118 = arith.constant dense<0.000000e+00> : vector<64x128xf32>
    %101 = tpu.matmul %97, %100, %cst_118 {dimension_numbers = #tpu.dot_dimension_numbers<[1], [0], [0], [1], [0, 0, 1, 1], [], []>} : vector<64x128xbf16>, vector<128x128xbf16>, vector<64x128xf32> -> vector<64x128xf32>
    %102 = arith.addf %98, %101 : vector<64x128xf32>
    %c0_119 = arith.constant 0 : index
    %c0_120 = arith.constant 0 : index
    %103 = vector.load %arg12[%c0_119, %c0_120] : memref<64x128xf32, #tpu.memory_space<vmem>>, vector<64x128xf32>
    tpu.vector_store %arg12[%c0_119, %c0_120], %102 {strides = array<i32>} : memref<64x128xf32, #tpu.memory_space<vmem>>, vector<64x128xf32>,
    %c0_121 = arith.constant 0 : index
    %c1_122 = arith.constant 1 : index
    %c1_123 = arith.constant 1 : index
    %c0_124 = arith.constant 0 : index
    %104 = vector.load %arg11[%c0_121, %c1_122, %c1_123, %c0_124] : memref<4x9x9x128xbf16, #tpu.memory_space<vmem>>, vector<1x8x8x128xbf16>
    %105 = vector.shape_cast %104 : vector<1x8x8x128xbf16> to vector<8x8x128xbf16>
    %106 = vector.shape_cast %105 : vector<8x8x128xbf16> to vector<64x128xbf16>
    %c0_125 = arith.constant 0 : index
    %c0_126 = arith.constant 0 : index
    %107 = vector.load %arg12[%c0_125, %c0_126] : memref<64x128xf32, #tpu.memory_space<vmem>>, vector<64x128xf32>
    %c8 = arith.constant 8 : index
    %c0_127 = arith.constant 0 : index
    %c0_128 = arith.constant 0 : index
    %108 = vector.load %arg4[%c8, %c0_127, %c0_128] : memref<9x128x128xbf16, #tpu.memory_space<vmem>>, vector<1x128x128xbf16>
    %109 = vector.shape_cast %108 : vector<1x128x128xbf16> to vector<128x128xbf16>
    %cst_129 = arith.constant dense<0.000000e+00> : vector<64x128xf32>
    %110 = tpu.matmul %106, %109, %cst_129 {dimension_numbers = #tpu.dot_dimension_numbers<[1], [0], [0], [1], [0, 0, 1, 1], [], []>} : vector<64x128xbf16>, vector<128x128xbf16>, vector<64x128xf32> -> vector<64x128xf32>
    %111 = arith.addf %107, %110 : vector<64x128xf32>
    %c0_130 = arith.constant 0 : index
    %c0_131 = arith.constant 0 : index
    %112 = vector.load %arg12[%c0_130, %c0_131] : memref<64x128xf32, #tpu.memory_space<vmem>>, vector<64x128xf32>
    tpu.vector_store %arg12[%c0_130, %c0_131], %111 {strides = array<i32>} : memref<64x128xf32, #tpu.memory_space<vmem>>, vector<64x128xf32>,
    %c0_132 = arith.constant 0 : index
    %c0_133 = arith.constant 0 : index
    %113 = vector.load %arg12[%c0_132, %c0_133] : memref<64x128xf32, #tpu.memory_space<vmem>>, vector<64x128xf32>
    %c0_134 = arith.constant 0 : index
    %c0_135 = arith.constant 0 : index
    %114 = vector.load %arg5[%c0_134, %c0_135] : memref<1x128xf32, #tpu.memory_space<vmem>>, vector<1x128xf32>
    %115 = vector.broadcast %114 : vector<1x128xf32> to vector<64x128xf32>
    %116 = arith.addf %113, %115 : vector<64x128xf32>
    %cst_136 = arith.constant 0.000000e+00 : f32
    %117 = vector.broadcast %cst_136 : f32 to vector<64x128xf32>
    %118 = arith.maximumf %116, %117 : vector<64x128xf32>
    %119 = arith.truncf %118 : vector<64x128xf32> to vector<64x128xbf16>
    %c0_137 = arith.constant 0 : index
    %c0_138 = arith.constant 0 : index
    %120 = vector.load %arg6[%c0_137, %c0_138] : memref<128x128xbf16, #tpu.memory_space<vmem>>, vector<128x128xbf16>
    %cst_139 = arith.constant dense<0.000000e+00> : vector<64x128xf32>
    %121 = tpu.matmul %119, %120, %cst_139 {dimension_numbers = #tpu.dot_dimension_numbers<[1], [0], [0], [1], [0, 0, 1, 1], [], []>} : vector<64x128xbf16>, vector<128x128xbf16>, vector<64x128xf32> -> vector<64x128xf32>
    %c0_140 = arith.constant 0 : index
    %c0_141 = arith.constant 0 : index
    %122 = vector.load %arg7[%c0_140, %c0_141] : memref<1x128xf32, #tpu.memory_space<vmem>>, vector<1x128xf32>
    %123 = vector.broadcast %122 : vector<1x128xf32> to vector<64x128xf32>
    %124 = arith.addf %121, %123 : vector<64x128xf32>
    %c0_142 = arith.constant 0 : index
    %c24 = arith.constant 24 : index
    %c0_143 = arith.constant 0 : index
    %c0_144 = arith.constant 0 : index
    %125 = vector.load %arg1[%c0_142, %c24, %c0_143, %c0_144] : memref<1x32x8x128xf32, #tpu.memory_space<vmem>>, vector<1x8x8x128xf32>
    %126 = vector.shape_cast %125 : vector<1x8x8x128xf32> to vector<8x8x128xf32>
    %127 = vector.shape_cast %126 : vector<8x8x128xf32> to vector<64x128xf32>
    %128 = arith.truncf %127 : vector<64x128xf32> to vector<64x128xbf16>
    %c0_145 = arith.constant 0 : index
    %c0_146 = arith.constant 0 : index
    %129 = vector.load %arg8[%c0_145, %c0_146] : memref<128x128xbf16, #tpu.memory_space<vmem>>, vector<128x128xbf16>
    %cst_147 = arith.constant dense<0.000000e+00> : vector<64x128xf32>
    %130 = tpu.matmul %128, %129, %cst_147 {dimension_numbers = #tpu.dot_dimension_numbers<[1], [0], [0], [1], [0, 0, 1, 1], [], []>} : vector<64x128xbf16>, vector<128x128xbf16>, vector<64x128xf32> -> vector<64x128xf32>
    %c0_148 = arith.constant 0 : index
    %c0_149 = arith.constant 0 : index
    %131 = vector.load %arg9[%c0_148, %c0_149] : memref<1x128xf32, #tpu.memory_space<vmem>>, vector<1x128xf32>
    %132 = vector.broadcast %131 : vector<1x128xf32> to vector<64x128xf32>
    %133 = arith.addf %130, %132 : vector<64x128xf32>
    %134 = arith.addf %124, %133 : vector<64x128xf32>
    %cst_150 = arith.constant 0.000000e+00 : f32
    %135 = vector.broadcast %cst_150 : f32 to vector<64x128xf32>
    %136 = arith.maximumf %134, %135 : vector<64x128xf32>
    %c0_151 = arith.constant 0 : index
    %c0_152 = arith.constant 0 : index
    %c0_153 = arith.constant 0 : index
    %137 = vector.load %arg10[%c0_151, %c0_152, %c0_153] : memref<1x64x128xf32, #tpu.memory_space<vmem>>, vector<1x64x128xf32>
    %138 = vector.shape_cast %137 : vector<1x64x128xf32> to vector<64x128xf32>
    %139 = vector.shape_cast %136 : vector<64x128xf32> to vector<1x64x128xf32>
    tpu.vector_store %arg10[%c0_151, %c0_152, %c0_153], %139 {strides = array<i32>} : memref<1x64x128xf32, #tpu.memory_space<vmem>>, vector<1x64x128xf32>,
    return
  }
  func.func @transform_0(%arg0: i32) -> (i32, i32, i32, i32) {
    %c0_i32 = arith.constant 0 : i32
    %c0_i32_0 = arith.constant 0 : i32
    %c0_i32_1 = arith.constant 0 : i32
    %c0_i32_2 = arith.constant 0 : i32
    return %arg0, %c0_i32, %c0_i32_0, %c0_i32_1 : i32, i32, i32, i32
  }
  func.func @transform_1(%arg0: i32) -> (i32, i32) {
    %c0_i32 = arith.constant 0 : i32
    %c0_i32_0 = arith.constant 0 : i32
    %c0_i32_1 = arith.constant 0 : i32
    return %c0_i32, %c0_i32_0 : i32, i32
  }
  func.func @transform_2(%arg0: i32) -> (i32, i32) {
    %c0_i32 = arith.constant 0 : i32
    %c0_i32_0 = arith.constant 0 : i32
    %c0_i32_1 = arith.constant 0 : i32
    return %c0_i32, %c0_i32_0 : i32, i32
  }
  func.func @transform_3(%arg0: i32) -> (i32, i32, i32) {
    %c0_i32 = arith.constant 0 : i32
    %c0_i32_0 = arith.constant 0 : i32
    %c0_i32_1 = arith.constant 0 : i32
    %c0_i32_2 = arith.constant 0 : i32
    return %c0_i32, %c0_i32_0, %c0_i32_1 : i32, i32, i32
  }
  func.func @transform_4(%arg0: i32) -> (i32, i32) {
    %c0_i32 = arith.constant 0 : i32
    %c0_i32_0 = arith.constant 0 : i32
    %c0_i32_1 = arith.constant 0 : i32
    return %c0_i32, %c0_i32_0 : i32, i32
  }
  func.func @transform_5(%arg0: i32) -> (i32, i32) {
    %c0_i32 = arith.constant 0 : i32
    %c0_i32_0 = arith.constant 0 : i32
    %c0_i32_1 = arith.constant 0 : i32
    return %c0_i32, %c0_i32_0 : i32, i32
  }
  func.func @transform_6(%arg0: i32) -> (i32, i32) {
    %c0_i32 = arith.constant 0 : i32
    %c0_i32_0 = arith.constant 0 : i32
    %c0_i32_1 = arith.constant 0 : i32
    return %c0_i32, %c0_i32_0 : i32, i32
  }
  func.func @transform_7(%arg0: i32) -> (i32, i32) {
    %c0_i32 = arith.constant 0 : i32
    %c0_i32_0 = arith.constant 0 : i32
    %c0_i32_1 = arith.constant 0 : i32
    return %c0_i32, %c0_i32_0 : i32, i32
  }
  func.func @transform_8(%arg0: i32) -> (i32, i32) {
    %c0_i32 = arith.constant 0 : i32
    %c0_i32_0 = arith.constant 0 : i32
    %c0_i32_1 = arith.constant 0 : i32
    return %c0_i32, %c0_i32_0 : i32, i32
  }
  func.func @transform_9(%arg0: i32) -> (i32, i32, i32) {
    %c0_i32 = arith.constant 0 : i32
    %c0_i32_0 = arith.constant 0 : i32
    %c0_i32_1 = arith.constant 0 : i32
    return %arg0, %c0_i32, %c0_i32_0 : i32, i32, i32
  }
}

</mosaic_0001>

<bundles_post_ra>
// kernel: tpu_custom_call.1
= control target key start
LH: loop header
LB: loop body
LE: loop exit
PB: predicated region body
PF: predicated region fallthrough
CT: control target
= control target key end

     0   :  { %s5640_s0 = inlined_call_operand.hbm [shape: f32[2,32,8,128], index: 0, kind: input, shape index: {}]   ;;  %s5641_s1 = inlined_call_operand.hbm [shape: bf16[128,128], index: 1, kind: input, shape index: {}]   ;;  %s5642_s2 = inlined_call_operand.vmem [shape: f32[1,128], index: 2, kind: input, shape index: {}]   ;;  %s5643_s3 = inlined_call_operand.hbm [shape: bf16[9,128,128], index: 3, kind: input, shape index: {}]   ;;  %s5644_s4 = inlined_call_operand.vmem [shape: f32[1,128], index: 4, kind: input, shape index: {}]   ;;  %s5645_s5 = inlined_call_operand.hbm [shape: bf16[128,128], index: 5, kind: input, shape index: {}]   ;;  %s5646_s6 = inlined_call_operand.vmem [shape: f32[1,128], index: 6, kind: input, shape index: {}]   ;;  %s5647_s7 = inlined_call_operand.hbm [shape: bf16[128,128], index: 7, kind: input, shape index: {}]   ;;  %s5648_s8 = inlined_call_operand.vmem [shape: f32[1,128], index: 8, kind: input, shape index: {}]   ;;  %s5649_s9 = inlined_call_operand.hbm [shape: f32[2,64,128], index: 9, kind: output, shape index: {}]  }
   0x1   :  { %5669 = sst [smem:[#allocation28_spill]] %s5641_s1 }
   0x2   :  { %5670 = sst [smem:[#allocation29_spill]] %s5643_s3 }
   0x3   :  { %5671 = sst [smem:[#allocation30_spill]] %s5645_s5 }
   0x4   :  { %14 = vsyncpa [#allocation5], 0 }
   0x5   :  { %16 = vsyncpa [#allocation5 + $0x1], 0 }
   0x6   :  { %17 = vsyncpa [#allocation8], 0 }
   0x7   :  { %18 = vsyncpa [#allocation11], 0 }
   0x8   :  { %19 = vsyncpa [#allocation6], 0 }
   0x9   :  { %21 = vsyncpa [#allocation6 + $0x1], 0  ;;  %s4949_s30 = smov 0   ;;  %s4951_s10 = smov 0  }
   0xa   :  { %s4953_s11 = smov 0   ;;  %s4955_s12 = smov 0  }
   0xb LB: > { %s4970_s13 = sadd.s32 4294967295, %s4884_s12   ;;  %s3750_s14 = sadd.s32 4294967294, %s4884_s12   ;;  %s4884_s12 = sphi %s4955_s12, %s5719_s12   ;;  %s4880_s11 = sphi %s4953_s11, %s5718_s11   ;;  %s4876_s10 = sphi %s4951_s10, %s5717_s10   ;;  %s4872_s30 = sphi %s4949_s30, %s5716_s30  }
   0xc   : > { %p47_p0 = scmp.ne.s32.totalorder %s4876_s10, %s4872_s30  ;;  %p5650_p1 = scmp.eq.s32.totalorder %s4970_s13, 0 }
   0xd   : > { %p239_p2 = scmp.eq.s32.totalorder %s4970_s13, 1  ;;  %p245_p3 = scmp.eq.s32.totalorder %s3750_s14, 1 }
   0xe   : > { %p4979_p4 = por %p5650_p1, %p47_p0  ;;  %p3751_p5 = scmp.ge.s32.totalorder %s4884_s12, 1 }
   0xf   : > { %p4984_p6 = por %p245_p3, %p47_p0  ;;  %p252_p7 = scmp.lt.s32.totalorder %s4884_s12, 3 }
  0x10   : > { %s5672_s15 = scalar_select %p4979_p4, 1, 0 }
  0x11   : > { %s5673_s16 = scalar_select %p4984_p6, 1, 0 }
  0x12   : > { %p4989_p8 = pnand %p3751_p5, %p252_p7  ;;  %s4886_s18 = smov [#allocation7]  }
  0x13   : > { %s264_s19 = sshll.u32 %s4886_s18, 4  ;;  %s4887_s21 = smov [#allocation10]   ;;  %s265_s19 = int_to_ptr.vmem [resolvable:$true] %s264_s19 }
  0x14   : > { %s5674_s17 = scalar_select %p4989_p8, 1, 0 }
  0x15   : > { %p4486_p9 = pneg %p4989_p8  ;;  %s296_s22 = sshll.u32 %s4887_s21, 4  ;;  %s297_s22 = int_to_ptr.vmem [resolvable:$true] %s296_s22 }
  0x16   : > { %s4888_s23 = smov [#allocation9]   ;;  %s4691_s25 = scalar_lea.vmem %s265_s19, 1024 }
  0x17   : > { %p4998_p11 = pnand %p4486_p9, %p5650_p1  ;;  %s280_s24 = sshll.u32 %s4888_s23, 4  ;;  %s281_s24 = int_to_ptr.vmem [resolvable:$true] %s280_s24 }
  0x18   : > { %p4692_p13 = scmp.ne.s32.totalorder %s265_s19, %s4691_s25  ;;  %p4699_p5 = scmp.lt.s32.totalorder %s265_s19, %s265_s19 }
  0x19   : > { %p4682_p12 = pneg %p4998_p11  ;;  %p4700_p7 = scmp.lt.s32.totalorder %s4691_s25, %s4691_s25 }
  0x1b   : > { %p4694_p0 = pnand %p4692_p13, %p4682_p12  ;;  %p4701_p9 = por %p4700_p7, %p4699_p5 }
  0x1d   : > { %p4695_p3 = pneg %p4694_p0 }
  0x1f   : > { %p4702_p10 = pnand %p4701_p9, %p4695_p3 }
  0x21   : > { %4705 = shalt.err (!%p4702_p10)
}
  0x22   : > { %s4889_s26 = smov 64   ;;  %s4890_s27 = smov 4  }
  0x23   : > { %s5676_s1 = sld [smem:[#allocation28_spill]]  ;;  %s4717_s14 = scalar_lea.vmem %s297_s22, 1024 }
  0x24   : > { %p4718_p13 = scmp.ne.s32.totalorder %s297_s22, %s4717_s14  ;;  %p4725_p3 = scmp.lt.s32.totalorder %s297_s22, %s297_s22 }
  0x25   : > { %p4726_p10 = scmp.lt.s32.totalorder %s4717_s14, %s4717_s14 }
  0x26   : > { %p4720_p0 = pnand %p4718_p13, %p4682_p12 }
  0x27   : > { %p4727_p7 = por %p4726_p10, %p4725_p3 }
  0x28   : > { %p4721_p5 = pneg %p4720_p0 }
  0x29   : > { %4489 = dma.hbm_to_vmem [thread:$0]  (!%p4998_p11), %s5676_s1, 1024, %s265_s19, [#allocation8], %s4889_s26, %s4889_s26, %s4890_s27  }
  0x2a   : > { %p4728_p9 = pnand %p4727_p7, %p4721_p5 }
  0x2c   : > { %4731 = shalt.err (!%p4728_p9)
}
  0x2d   : > { %s5677_s5 = sld [smem:[#allocation30_spill]]  ;;  %s4743_s19 = scalar_lea.vmem %s281_s24, 9216 }
  0x2e   : > { %p4744_p1 = scmp.ne.s32.totalorder %s281_s24, %s4743_s19  ;;  %p4751_p3 = scmp.lt.s32.totalorder %s281_s24, %s281_s24 }
  0x2f   : > { %p4752_p5 = scmp.lt.s32.totalorder %s4743_s19, %s4743_s19 }
  0x30   : > { %p4746_p13 = pnand %p4744_p1, %p4682_p12 }
  0x31   : > { %p4753_p10 = por %p4752_p5, %p4751_p3 }
  0x32   : > { %p4747_p0 = pneg %p4746_p13 }
  0x33   : > { %4495 = dma.hbm_to_vmem [thread:$0]  (!%p4998_p11), %s5677_s5, 1024, %s297_s22, [#allocation11], %s4889_s26, %s4889_s26, %s4890_s27  }
  0x34   : > { %p4754_p7 = pnand %p4753_p10, %p4747_p0 }
  0x36   : > { %4757 = shalt.err (!%p4754_p7)
}
  0x37   : > { %s5678_s3 = sld [smem:[#allocation29_spill]]  ;;  %s4891_s22 = smov [#allocation12]  }
  0x38   : > { %s312_s28 = sshll.u32 %s4891_s22, 4  ;;  %s313_s28 = int_to_ptr.vmem [resolvable:$true] %s312_s28 }
  0x39   : > { %s4769_s29 = scalar_lea.vmem %s313_s28, 1024  ;;  %p4777_p0 = scmp.lt.s32.totalorder %s313_s28, %s313_s28 }
  0x3a   : > { %p4770_p1 = scmp.ne.s32.totalorder %s313_s28, %s4769_s29  ;;  %p4778_p3 = scmp.lt.s32.totalorder %s4769_s29, %s4769_s29 }
  0x3c   : > { %p4772_p9 = pnand %p4770_p1, %p4682_p12  ;;  %p4779_p5 = por %p4778_p3, %p4777_p0 }
  0x3d   : > { %4492 = dma.hbm_to_vmem [thread:$0]  (!%p4998_p11), %s5678_s3, 9216, %s281_s24, [#allocation8], %s4889_s26, %s4889_s26, %s4890_s27  }
  0x3e   : > { %p4773_p13 = pneg %p4772_p9 }
  0x40   : > { %p4780_p10 = pnand %p4779_p5, %p4773_p13 }
  0x42   : > { %4783 = shalt.err (!%p4780_p10)
}
  0x43   : > { %4498 = dma.hbm_to_vmem [thread:$0]  (!%p4998_p11), %s5647_s7, 1024, %s313_s28, [#allocation11], %s4889_s26, %s4889_s26, %s4890_s27  }
  0x44   : > { %s5049_s18 = sadd.s32 1, %s4884_s12   ;;  %s34_s20 = sadd.s32 1, %s4880_s11 }
  0x45   : > { %s31_s21 = ssub.s32 %s4884_s12, %s5049_s18  ;;  %p41_p12 = scmp.ne.s32.totalorder %s4880_s11, %s4876_s10 }
  0x46   : > { %p32_p7 = scmp.eq.s32.totalorder %s31_s21, 0  ;;  %p42_p1 = scmp.eq.s32.totalorder %s4884_s12, 0 }
  0x47   : > { %p5059_p9 = por %p239_p2, %p41_p12  ;;  %p4511_p13 = scmp.lt.s32.totalorder %s4884_s12, 2 }
  0x48   : > { %s5065_s23 = scalar_select %p32_p7, %s4880_s11, %s34_s20  }
  0x49   : > { %s5679_s19 = scalar_select %p5059_p9, 1, 0 }
  0x4a   : > { %p43_p0 = por %p42_p1, %p41_p12  ;;  %s329_s25 = sand.u32 1, %s4880_s11  }
  0x4b   : > { %s3757_s22 = sshll.u32 %s329_s25, 8  ;;  %s3948_s26 = sshll.u32 %s4884_s12, 12 }
  0x4c   : > { %s5072_s29 = scalar_lea.hbm %s5640_s0, %s3948_s26  ;;  %s333_s24 = scalar_lea.vmem [#allocation4], %s3757_s22 }
  0x4d   : > { %s340_s14 = sshll.u32 %s333_s24, 4  ;;  %p5076_p2 = pnand %p4511_p13, %p43_p0  ;;  %s5074_s14 = int_to_ptr.vmem [resolvable:$true] %s340_s14 }
  0x4e   : > { %s5080_s20 = scalar_lea.sflag [#allocation5], %s329_s25  ;;  %s4784_s1 = scalar_lea.hbm %s5072_s29, 4096 }
  0x4f   : > { %p4785_p11 = scmp.ne.s32.totalorder %s5072_s29, %s4784_s1  ;;  %p4786_p3 = pneg %p5076_p2 }
  0x50   : > { %s4789_s22 = scalar_lea.hbm %s5640_s0, 8192  ;;  %p4790_p12 = scmp.lt.s32.totalorder %s5072_s29, %s5640_s0 }
  0x51   : > { %p4787_p5 = pnand %p4786_p3, %p4785_p11  ;;  %p4791_p7 = scmp.lt.s32.totalorder %s4789_s22, %s4784_s1 }
  0x53   : > { %p4788_p10 = pneg %p4787_p5  ;;  %p4792_p1 = por %p4791_p7, %p4790_p12 }
  0x55   : > { %p4793_p13 = pnand %p4792_p1, %p4788_p10 }
  0x57   : > { %4796 = shalt.err (!%p4793_p13)
}
  0x58   : > { %s4797_s25 = scalar_lea.vmem %s5074_s14, 4096  ;;  %s4892_s3 = smov [#allocation4]  }
  0x59   : > { %p4798_p0 = scmp.ne.s32.totalorder %s5074_s14, %s4797_s25  ;;  %s4802_s5 = sshll.u32 %s4892_s3, 4  ;;  %s4803_s5 = int_to_ptr.vmem [resolvable:$false] %s4802_s5 }
  0x5a   : > { %s4804_s26 = scalar_lea.vmem %s4803_s5, 8192  ;;  %p4805_p5 = scmp.lt.s32.totalorder %s5074_s14, %s4803_s5 }
  0x5b   : > { %p4800_p6 = pnand %p4798_p0, %p4786_p3  ;;  %p4806_p9 = scmp.lt.s32.totalorder %s4804_s26, %s4797_s25 }
  0x5d   : > { %p4801_p11 = pneg %p4800_p6  ;;  %p4807_p4 = por %p4806_p9, %p4805_p5 }
  0x5f   : > { %p4808_p8 = pnand %p4807_p4, %p4801_p11 }
  0x61   : > { %4811 = shalt.err (!%p4808_p8)
}
  0x62   : > { %s4893_s1 = smov 128   ;;  %s4894_s27 = smov 8  }
  0x63   : > { %4502 = dma.hbm_to_vmem [thread:$0]  (!%p5076_p2), %s5072_s29, 4096, %s5074_s14, %s5080_s20, %s4893_s1, %s4893_s1, %s4894_s27  }
  0x64   : > { %p5681_p3 = scmp.ne.s32.totalorder %s5674_s17, 0 }
  0x66   : > { %352 = sbr.rel (%p5681_p3) target bundleno = 974 (0x3ce), region = 56 }
  0x6b   : > { %s5104_s3 = sand.u32 1, %s4876_s10   ;;  %p5682_p4 = scmp.ne.s32.totalorder %s5672_s15, 0 }
  0x6c   : > { %s3761_s5 = sshll.u32 %s5104_s3, 8  ;;  %s355_s22 = scalar_lea.sflag [#allocation5], %s5104_s3 }
  0x6d   : > { %s5108_s28 = scalar_lea.vmem [#allocation4], %s3761_s5 }
  0x6e   : > { %4855 = dma.done.wait (%p5682_p4), %s355_s22, 4096  }
  0x6f   : > { %4857 = vsyncadd (%p5682_p4), %s355_s22, 4294963200  ;;  %p5683_p6 = scmp.eq.s32.totalorder %s4970_s13, 0 }
  0x71   : > { %4859 = dma.done.wait (%p5683_p6), [#allocation8], 10240   ;;  %p5684_p8 = pmov %p5683_p6 }
  0x72   : > { %p5685_p9 = pmov %p5683_p6 }
  0x73   : > { %4861 = vsyncadd (%p5684_p8), [#allocation8], 4294957056 }
  0x74   : > { %4863 = dma.done.wait (%p5685_p9), [#allocation11], 2048   ;;  %p5686_p2 = pmov %p5683_p6 }
  0x75   : > { %v4895_v0 = vmov 0   ;;  %vm835_vm0 = vcmask 1040384   ;;  %vm836_vm1 = vsmask.f32 256  ;;  %v874_v2 = vld [vmem:[#allocation2 + $0x4c] sm:$0x1] }
  0x76   : > { %4865 = vsyncadd (%p5686_p2), [#allocation11], 4294965248  ;;  %834 = vst [vmem:[#allocation2] sm:$0xf] %v4895_v0  ;;  %v878_v3 = vld [vmem:[#allocation2 + $0x54] sm:$0x1] }
  0x77   : > { %841 = vst [vmem:[#allocation2 + $0x8] sm:$0xf] %v4895_v0  ;;  %845 = vst [vmem:[#allocation2 + $0x10] sm:$0xf] %v4895_v0  ;;  %v882_v4 = vld [vmem:[#allocation2 + $0x5c] sm:$0x1] }
  0x78   : > { %849 = vst [vmem:[#allocation2 + $0x18] sm:$0xf] %v4895_v0  ;;  %853 = vst [vmem:[#allocation2 + $0x20] sm:$0xf] %v4895_v0  ;;  %v886_v8 = vld [vmem:[#allocation2 + $0x64] sm:$0x1] }
  0x79   : > { %857 = vst [vmem:[#allocation2 + $0x28] sm:$0xf] %v4895_v0  ;;  %861 = vst [vmem:[#allocation2 + $0x30] sm:$0xf] %v4895_v0  ;;  %v4560_v9 = vld [vmem:[#allocation7 + $0x38] sm:$0xff]   ;;  %v4561_v13 = vld [vmem:[#allocation7 + $0x30] sm:$0xff]  }
  0x7a   : > { %865 = vst [vmem:[#allocation2 + $0x38] sm:$0xf] %v4895_v0  ;;  %869 = vst [vmem:[#allocation2 + $0x40] sm:$0xf] %v4895_v0  ;;  %v890_v11 = vld [vmem:[#allocation2 + $0x6c] sm:$0x1]  ;;  %4138 = vmatprep.subr.bf16.mxu0 %v4560_v9 }
  0x7b   : > { %873 = vst [vmem:[#allocation2 + $0x48] sm:$0xf] %v4895_v0  ;;  %877 = vst [vmem:[#allocation2 + $0x50] sm:$0xf] %v4895_v0  ;;  %v894_v12 = vld [vmem:[#allocation2 + $0x74] sm:$0x1]  ;;  %4139 = vmatpush3.bf16.msra.mxu0 %v4560_v9 }
  0x7c   : > { %881 = vst [vmem:[#allocation2 + $0x58] sm:$0xf] %v4895_v0  ;;  %885 = vst [vmem:[#allocation2 + $0x60] sm:$0xf] %v4895_v0  ;;  %v898_v16 = vld [vmem:[#allocation2 + $0x7c] sm:$0x1]  ;;  %4140 = vmatprep.subr.bf16.mxu0 %v4561_v13 }
  0x7d   : > { %889 = vst [vmem:[#allocation2 + $0x68] sm:$0xf] %v4895_v0  ;;  %893 = vst [vmem:[#allocation2 + $0x70] sm:$0xf] %v4895_v0  ;;  %v902_v17 = vld [vmem:[#allocation2 + $0x84] sm:$0x1] }
  0x7e   : > { %897 = vst [vmem:[#allocation2 + $0x78] sm:$0xf] %v4895_v0  ;;  %901 = vst [vmem:[#allocation2 + $0x80] sm:$0xf] %v4895_v0  ;;  %v906_v20 = vld [vmem:[#allocation2 + $0x8c] sm:$0x1] }
  0x7f   : > { %905 = vst [vmem:[#allocation2 + $0x88] sm:$0xf] %v4895_v0  ;;  %909 = vst [vmem:[#allocation2 + $0x90] sm:$0xf] %v4895_v0  ;;  %v942_v21 = vld [vmem:[#allocation2 + $0xd4] sm:$0x1]  ;;  %4141 = vmatpush3.bf16.msra.mxu0 %v4561_v13 }
  0x80   : > { %913 = vst [vmem:[#allocation2 + $0x98] sm:$0xf] %v4895_v0  ;;  %917 = vst [vmem:[#allocation2 + $0xa0] sm:$0xf] %v4895_v0  ;;  %v946_v24 = vld [vmem:[#allocation2 + $0xdc] sm:$0x1] }
  0x81   : > { %921 = vst [vmem:[#allocation2 + $0xa8] sm:$0xf] %v4895_v0  ;;  %925 = vst [vmem:[#allocation2 + $0xb0] sm:$0xf] %v4895_v0  ;;  %v950_v25 = vld [vmem:[#allocation2 + $0xe4] sm:$0x1] }
  0x82   : > { %929 = vst [vmem:[#allocation2 + $0xb8] sm:$0xf] %v4895_v0  ;;  %933 = vst [vmem:[#allocation2 + $0xc0] sm:$0xf] %v4895_v0  ;;  %v954_v28 = vld [vmem:[#allocation2 + $0xec] sm:$0x1] }
  0x83   : > { %937 = vst [vmem:[#allocation2 + $0xc8] sm:$0xf] %v4895_v0  ;;  %945 = vst [vmem:[#allocation2 + $0xd8] sm:$0xf] %v4895_v0  ;;  %v958_v29 = vld [vmem:[#allocation2 + $0xf4] sm:$0x1] }
  0x84   : > { %949 = vst [vmem:[#allocation2 + $0xe0] sm:$0xf] %v4895_v0  ;;  %953 = vst [vmem:[#allocation2 + $0xe8] sm:$0xf] %v4895_v0  ;;  %v962_v32 = vld [vmem:[#allocation2 + $0xfc] sm:$0x1] }
  0x85   : > { %957 = vst [vmem:[#allocation2 + $0xf0] sm:$0xf] %v4895_v0  ;;  %961 = vst [vmem:[#allocation2 + $0xf8] sm:$0xf] %v4895_v0  ;;  %v966_v33 = vld [vmem:[#allocation2 + $0x104] sm:$0x1] }
  0x86   : > { %965 = vst [vmem:[#allocation2 + $0x100] sm:$0xf] %v4895_v0  ;;  %969 = vst [vmem:[#allocation2 + $0x108] sm:$0xf] %v4895_v0  ;;  %v970_v36 = vld [vmem:[#allocation2 + $0x10c] sm:$0x1] }
  0x87   : > { %973 = vst [vmem:[#allocation2 + $0x110] sm:$0xf] %v4895_v0  ;;  %vm5122_vm2 = vmand %vm835_vm0, %vm836_vm1  ;;  %v974_v37 = vld [vmem:[#allocation2 + $0x114] sm:$0x1]  ;;  %v978_v40 = vld [vmem:[#allocation2 + $0x11c] sm:$0x1] }
  0x88   : > { %v875_v5 = vsel %vm5122_vm2, 0, %v874_v2  ;;  %v879_v6 = vsel %vm5122_vm2, 0, %v878_v3  ;;  %v883_v7 = vsel %vm5122_vm2, 0, %v882_v4  ;;  %v887_v10 = vsel %vm5122_vm2, 0, %v886_v8  ;;  %v4562_v42 = vld [vmem:[#allocation7 + $0x28] sm:$0xff]   ;;  %v4563_v43 = vld [vmem:[#allocation7 + $0x20] sm:$0xff]  }
  0x89   : > { %876 = vst [vmem:[#allocation2 + $0x4c] sm:$0x1] %v875_v5  ;;  %880 = vst [vmem:[#allocation2 + $0x54] sm:$0x1] %v879_v6  ;;  %v891_v14 = vsel %vm5122_vm2, 0, %v890_v11  ;;  %v895_v15 = vsel %vm5122_vm2, 0, %v894_v12  ;;  %4142 = vmatprep.subr.bf16.mxu0 %v4562_v42 }
  0x8a   : > { %884 = vst [vmem:[#allocation2 + $0x5c] sm:$0x1] %v883_v7  ;;  %888 = vst [vmem:[#allocation2 + $0x64] sm:$0x1] %v887_v10  ;;  %v899_v18 = vsel %vm5122_vm2, 0, %v898_v16  ;;  %v903_v19 = vsel %vm5122_vm2, 0, %v902_v17  ;;  %4143 = vmatpush3.bf16.msra.mxu0 %v4562_v42 }
  0x8b   : > { %892 = vst [vmem:[#allocation2 + $0x6c] sm:$0x1] %v891_v14  ;;  %896 = vst [vmem:[#allocation2 + $0x74] sm:$0x1] %v895_v15  ;;  %v907_v22 = vsel %vm5122_vm2, 0, %v906_v20  ;;  %v943_v23 = vsel %vm5122_vm2, 0, %v942_v21  ;;  %4144 = vmatprep.subr.bf16.mxu0 %v4563_v43 }
  0x8c   : > { %900 = vst [vmem:[#allocation2 + $0x7c] sm:$0x1] %v899_v18  ;;  %904 = vst [vmem:[#allocation2 + $0x84] sm:$0x1] %v903_v19  ;;  %v947_v26 = vsel %vm5122_vm2, 0, %v946_v24  ;;  %v951_v27 = vsel %vm5122_vm2, 0, %v950_v25 }
  0x8d   : > { %908 = vst [vmem:[#allocation2 + $0x8c] sm:$0x1] %v907_v22  ;;  %944 = vst [vmem:[#allocation2 + $0xd4] sm:$0x1] %v943_v23  ;;  %v955_v30 = vsel %vm5122_vm2, 0, %v954_v28  ;;  %v959_v31 = vsel %vm5122_vm2, 0, %v958_v29 }
  0x8e   : > { %948 = vst [vmem:[#allocation2 + $0xdc] sm:$0x1] %v947_v26  ;;  %952 = vst [vmem:[#allocation2 + $0xe4] sm:$0x1] %v951_v27  ;;  %v963_v34 = vsel %vm5122_vm2, 0, %v962_v32  ;;  %v967_v35 = vsel %vm5122_vm2, 0, %v966_v33  ;;  %4145 = vmatpush3.bf16.msra.mxu0 %v4563_v43 }
  0x8f   : > { %956 = vst [vmem:[#allocation2 + $0xec] sm:$0x1] %v955_v30  ;;  %960 = vst [vmem:[#allocation2 + $0xf4] sm:$0x1] %v959_v31  ;;  %v971_v38 = vsel %vm5122_vm2, 0, %v970_v36  ;;  %v975_v39 = vsel %vm5122_vm2, 0, %v974_v37 }
  0x90   : > { %964 = vst [vmem:[#allocation2 + $0xfc] sm:$0x1] %v963_v34  ;;  %968 = vst [vmem:[#allocation2 + $0x104] sm:$0x1] %v967_v35  ;;  %v979_v41 = vsel %vm5122_vm2, 0, %v978_v40  ;;  %v4564_v44 = vld [vmem:[#allocation7 + $0x18] sm:$0xff]  }
  0x91   : > { %972 = vst [vmem:[#allocation2 + $0x10c] sm:$0x1] %v971_v38  ;;  %976 = vst [vmem:[#allocation2 + $0x114] sm:$0x1] %v975_v39  ;;  %v410_v45 = vld [vmem:[%s5108_s28] sm:$0xff]  ;;  %v411_v46 = vld [vmem:[%s5108_s28 + $0x8] sm:$0xff]  ;;  %4146 = vmatprep.subr.bf16.mxu0 %v4564_v44 }
  0x92   : > { %980 = vst [vmem:[#allocation2 + $0x11c] sm:$0x1] %v979_v41  ;;  %v4565_v47 = vld [vmem:[#allocation7 + $0x10] sm:$0xff]   ;;  %v442_v48 = vpack.c.bf16 %v411_v46, %v410_v45  ;;  %4147 = vmatpush3.bf16.msra.mxu0 %v4564_v44  ;;  %v4566_v49 = vld [vmem:[#allocation7 + $0x8] sm:$0xff]   ;;  %v4567_v50 = vld [vmem:[#allocation7] sm:$0xff]   ;;  %vm1062_vm3 = vcmask 1043456  }
  0x93   : > { %4148 = vmatprep.subr.bf16.mxu0 %v4565_v47  ;;  %v412_v51 = vld [vmem:[%s5108_s28 + $0x10] sm:$0xff]  ;;  %v413_v52 = vld [vmem:[%s5108_s28 + $0x18] sm:$0xff]  ;;  %v414_v53 = vld [vmem:[%s5108_s28 + $0x20] sm:$0xff]  ;;  %vm1063_vm4 = vsmask.f32 7938  ;;  %s3766_s26 = sshll.u32 %s5104_s3, 6 }
  0x94   : > { %4154 = vmatprep.mubr.bf16.mxu0 %v442_v48  ;;  %v415_v54 = vld [vmem:[%s5108_s28 + $0x28] sm:$0xff]  ;;  %v4568_v55 = vld [vmem:[#allocation9 + $0x38] sm:$0xff]   ;;  %v443_v57 = vpack.c.bf16 %v413_v52, %v412_v51  ;;  %v416_v59 = vld [vmem:[%s5108_s28 + $0x30] sm:$0xff]  ;;  %vm1656_vm6 = vsmask.f32 3328  ;;  %s5580_s1 = scalar_lea.vmem [#allocation13], %s3766_s26 }
  0x95   : > { %v4569_v56 = vld [vmem:[#allocation9 + $0xb8] sm:$0xff]   ;;  %4186 = vmatprep.subr.bf16.mxu1 %v4568_v55  ;;  %v444_v58 = vpack.c.bf16 %v415_v54, %v414_v53  ;;  %v418_v61 = vld [vmem:[%s5108_s28 + $0x40] sm:$0xff]  ;;  %v419_v62 = vld [vmem:[%s5108_s28 + $0x48] sm:$0xff]  ;;  %vm1657_vm7 = vsmask.f32 7440  ;;  %s3639_s27 = sshll.u32 %s5580_s1, 4  ;;  %s5589_s27 = int_to_ptr.vmem [resolvable:$true] %s3639_s27 }
  0x96   : > { %4149 = vmatpush3.bf16.msra.mxu0 %v4565_v47  ;;  %4187 = vmatpush3.bf16.msra.mxu1 %v4568_v55  ;;  %v417_v60 = vld [vmem:[%s5108_s28 + $0x38] sm:$0xff]  ;;  %v446_v0 = vpack.c.bf16 %v419_v62, %v418_v61  ;;  %v420_v2 = vld [vmem:[%s5108_s28 + $0x50] sm:$0xff]  ;;  %v422_v4 = vld [vmem:[%s5108_s28 + $0x60] sm:$0xff]  ;;  %s3981_s5 = sshll.u32 %s4970_s13, 10  ;;  %s3626_s17 = scalar_lea.sflag [#allocation6], %s5104_s3 }
  0x97   : > { %4150 = vmatprep.subr.bf16.mxu0 %v4566_v49  ;;  %v445_v63 = vpack.c.bf16 %v417_v60, %v416_v59  ;;  %v421_v3 = vld [vmem:[%s5108_s28 + $0x58] sm:$0xff]  ;;  %v423_v5 = vld [vmem:[%s5108_s28 + $0x68] sm:$0xff]  ;;  %v424_v8 = vld [vmem:[%s5108_s28 + $0x70] sm:$0xff]  ;;  %s5595_s15 = scalar_lea.hbm %s5649_s9, %s3981_s5  ;;  %s4812_s29 = scalar_lea.vmem %s5589_s27, 1024 }
  0x98   : > { %v447_v6 = vpack.c.bf16 %v421_v3, %v420_v2  ;;  %v448_v7 = vpack.c.bf16 %v423_v5, %v422_v4  ;;  %v425_v9 = vld [vmem:[%s5108_s28 + $0x78] sm:$0xff]  ;;  %v426_v10 = vld [vmem:[%s5108_s28 + $0x80] sm:$0xff]  ;;  %v427_v11 = vld [vmem:[%s5108_s28 + $0x88] sm:$0xff]  ;;  %p4813_p10 = scmp.ne.s32.totalorder %s5589_s27, %s4812_s29  ;;  %p5713_p12 = scmp.ne.s32.totalorder %s5679_s19, 0 }
  0x99   : > { %v449_v12 = vpack.c.bf16 %v425_v9, %v424_v8  ;;  %v450_v13 = vpack.c.bf16 %v427_v11, %v426_v10  ;;  %v428_v14 = vld [vmem:[%s5108_s28 + $0x90] sm:$0xff]  ;;  %v429_v15 = vld [vmem:[%s5108_s28 + $0x98] sm:$0xff]  ;;  %v430_v16 = vld [vmem:[%s5108_s28 + $0xa0] sm:$0xff]  ;;  %s4896_s13 = smov [#allocation13]  }
  0x9a   : > { %4151 = vmatpush3.bf16.msra.mxu0 %v4566_v49  ;;  %v431_v17 = vld [vmem:[%s5108_s28 + $0xa8] sm:$0xff]  ;;  %v451_v18 = vpack.c.bf16 %v429_v15, %v428_v14  ;;  %v432_v20 = vld [vmem:[%s5108_s28 + $0xb0] sm:$0xff]  ;;  %v433_v21 = vld [vmem:[%s5108_s28 + $0xb8] sm:$0xff]  ;;  %p4814_p7 = pnand %p4813_p10, %p5713_p12  ;;  %s4816_s14 = sshll.u32 %s4896_s13, 4  ;;  %s4817_s14 = int_to_ptr.vmem [resolvable:$false] %s4816_s14 }
  0x9b   : > { %4152 = vmatprep.subr.bf16.mxu0 %v4567_v50  ;;  %v452_v19 = vpack.c.bf16 %v431_v17, %v430_v16  ;;  %v434_v22 = vld [vmem:[%s5108_s28 + $0xc0] sm:$0xff]  ;;  %v435_v23 = vld [vmem:[%s5108_s28 + $0xc8] sm:$0xff]  ;;  %v453_v24 = vpack.c.bf16 %v433_v21, %v432_v20  ;;  %v436_v26 = vld [vmem:[%s5108_s28 + $0xd0] sm:$0xff]  ;;  %s4818_s21 = scalar_lea.vmem %s4817_s14, 2048  ;;  %p4819_p13 = scmp.lt.s32.totalorder %s5589_s27, %s4817_s14 }
  0x9c   : > { %v454_v25 = vpack.c.bf16 %v435_v23, %v434_v22  ;;  %v437_v27 = vld [vmem:[%s5108_s28 + $0xd8] sm:$0xff]  ;;  %v438_v28 = vld [vmem:[%s5108_s28 + $0xe0] sm:$0xff]  ;;  %v439_v29 = vld [vmem:[%s5108_s28 + $0xe8] sm:$0xff]  ;;  %p4815_p1 = pneg %p4814_p7  ;;  %p4820_p0 = scmp.lt.s32.totalorder %s4818_s21, %s4812_s29 }
  0x9d   : > { %v455_v30 = vpack.c.bf16 %v437_v27, %v436_v26  ;;  %v456_v31 = vpack.c.bf16 %v439_v29, %v438_v28  ;;  %v440_v32 = vld [vmem:[%s5108_s28 + $0xf0] sm:$0xff]  ;;  %v441_v33 = vld [vmem:[%s5108_s28 + $0xf8] sm:$0xff]  ;;  %v4571_v37 = vld [vmem:[#allocation9 + $0x28] sm:$0xff]  }
  0x9e   : > { %4153 = vmatpush3.bf16.msra.mxu0 %v4567_v50  ;;  %v457_v34 = vpack.c.bf16 %v441_v33, %v440_v32  ;;  %v4570_v35 = vld [vmem:[#allocation9 + $0x30] sm:$0xff]   ;;  %v850_v36 = vld [vmem:[#allocation2 + $0x1c] sm:$0x1]  ;;  %v842_v39 = vld [vmem:[#allocation2 + $0xc] sm:$0x1]  ;;  %p4821_p11 = por %p4820_p0, %p4819_p13 }
  0x9f   : > { %4234 = vmatprep.subr.bf16.mxu0 %v4569_v56  ;;  %4188 = vmatprep.subr.bf16.mxu1 %v4570_v35  ;;  %v851_v38 = vsel %vm5122_vm2, 0, %v850_v36  ;;  %v843_v40 = vsel %vm5122_vm2, 0, %v842_v39  ;;  %v854_v41 = vld [vmem:[#allocation2 + $0x24] sm:$0x1]  ;;  %v4572_v44 = vld [vmem:[#allocation9 + $0xb0] sm:$0xff]   ;;  %v4574_v47 = vld [vmem:[#allocation9 + $0x18] sm:$0xff]  }
  0xa0   : > { %4189 = vmatpush3.bf16.msra.mxu1 %v4570_v35  ;;  %852 = vst [vmem:[#allocation2 + $0x1c] sm:$0x1] %v851_v38  ;;  %844 = vst [vmem:[#allocation2 + $0xc] sm:$0x1] %v843_v40  ;;  %v4573_v42 = vld [vmem:[#allocation9 + $0x20] sm:$0xff]   ;;  %v855_v43 = vsel %vm5122_vm2, 0, %v854_v41  ;;  %p4822_p5 = pnand %p4821_p11, %p4815_p1 }
  0xa1   : > { %4155 = vmatmul.mubr.bf16.vlgmr.msra.gmra.mxu0 %v443_v57  ;;  %4190 = vmatprep.subr.bf16.mxu1 %v4571_v37  ;;  %856 = vst [vmem:[#allocation2 + $0x24] sm:$0x1] %v855_v43  ;;  %v846_v45 = vld [vmem:[#allocation2 + $0x14] sm:$0x1]  ;;  %v4575_v48 = vld [vmem:[#allocation9 + $0xa8] sm:$0xff]   ;;  %v4577_v52 = vld [vmem:[#allocation9 + $0xa0] sm:$0xff]  }
  0xa2   : > { %4158 = vmatprep.mubr.bf16.mxu0 %v444_v58  ;;  %4235 = vmatpush3.bf16.msra.mxu0 %v4569_v56  ;;  %v847_v46 = vsel %vm5122_vm2, 0, %v846_v45  ;;  %v4576_v49 = vld [vmem:[#allocation9 + $0x10] sm:$0xff]   ;;  %v858_v50 = vld [vmem:[#allocation2 + $0x2c] sm:$0x1]  ;;  %v866_v53 = vld [vmem:[#allocation2 + $0x3c] sm:$0x1] }
  0xa3   : > { %4236 = vmatprep.subr.bf16.mxu0 %v4572_v44  ;;  %848 = vst [vmem:[#allocation2 + $0x14] sm:$0x1] %v847_v46  ;;  %v859_v51 = vsel %vm5122_vm2, 0, %v858_v50  ;;  %v4578_v54 = vld [vmem:[#allocation9 + $0x8] sm:$0xff]   ;;  %v867_v55 = vsel %vm5122_vm2, 0, %v866_v53  ;;  %v4579_v57 = vld [vmem:[#allocation9 + $0x98] sm:$0xff]   ;;  %vm5248_vm5 = vmand %vm1062_vm3, %vm1063_vm4 }
  0xa4   : > { %4191 = vmatpush3.bf16.msra.mxu1 %v4571_v37  ;;  %860 = vst [vmem:[#allocation2 + $0x2c] sm:$0x1] %v859_v51  ;;  %v838_v56 = vld [vmem:[#allocation2 + $0x4] sm:$0x1]  ;;  %868 = vst [vmem:[#allocation2 + $0x3c] sm:$0x1] %v867_v55 }
  0xa5   : > { %4192 = vmatprep.subr.bf16.mxu1 %v4573_v42  ;;  %v839_v58 = vsel %vm5122_vm2, 0, %v838_v56  ;;  %v862_v59 = vld [vmem:[#allocation2 + $0x34] sm:$0x1]  ;;  %v4580_v61 = vld [vmem:[#allocation9] sm:$0xff]   ;;  %v5214_v2 = vld [vmem:[#allocation9 + $0x78] sm:$0xff]  }
  0xa6   : > { %4237 = vmatpush3.bf16.msra.mxu0 %v4572_v44  ;;  %840 = vst [vmem:[#allocation2 + $0x4] sm:$0x1] %v839_v58  ;;  %v863_v60 = vsel %vm5122_vm2, 0, %v862_v59  ;;  %v870_v62 = vld [vmem:[#allocation2 + $0x44] sm:$0x1]  ;;  %v4585_v3 = vld [vmem:[#allocation9 + $0x88] sm:$0xff]   ;;  %vm5301_vm8 = vmor %vm1656_vm6, %vm1657_vm7 }
  0xa7   : > { %4238 = vmatprep.subr.bf16.mxu0 %v4575_v48  ;;  %864 = vst [vmem:[#allocation2 + $0x34] sm:$0x1] %v863_v60  ;;  %v4588_v4 = vld [vmem:[#allocation9 + $0x80] sm:$0xff]   ;;  %v922_v9 = vld [vmem:[#allocation2 + $0xac] sm:$0x1] }
  0xa8   : > { %4193 = vmatpush3.bf16.msra.mxu1 %v4573_v42  ;;  %v918_v5 = vld [vmem:[#allocation2 + $0xa4] sm:$0x1]  ;;  %v923_v10 = vsel %vm5122_vm2, 0, %v922_v9  ;;  %v914_v11 = vld [vmem:[#allocation2 + $0x9c] sm:$0x1] }
  0xa9   : > { %4159 = vmatmul.mubr.bf16.gmra.mxu0 %v445_v63  ;;  %4194 = vmatprep.subr.bf16.mxu1 %v4574_v47  ;;  %v871_v63 = vsel %vm5122_vm2, 0, %v870_v62  ;;  %924 = vst [vmem:[#allocation2 + $0xac] sm:$0x1] %v923_v10  ;;  %v934_v14 = vld [vmem:[#allocation2 + $0xc4] sm:$0x1] }
  0xaa   : > { %4162 = vmatprep.mubr.bf16.mxu0 %v446_v0  ;;  %4239 = vmatpush3.bf16.msra.mxu0 %v4575_v48  ;;  %v4582_v0 = vld [vmem:[#allocation9 + $0x90] sm:$0xff]   ;;  %872 = vst [vmem:[#allocation2 + $0x44] sm:$0x1] %v871_v63  ;;  %v935_v15 = vsel %vm5122_vm2, 0, %v934_v14  ;;  %v930_v20 = vld [vmem:[#allocation2 + $0xbc] sm:$0x1] }
  0xab   : > { %4240 = vmatprep.subr.bf16.mxu0 %v4577_v52  ;;  %936 = vst [vmem:[#allocation2 + $0xc4] sm:$0x1] %v935_v15  ;;  %v926_v16 = vld [vmem:[#allocation2 + $0xb4] sm:$0x1]  ;;  %v931_v21 = vsel %vm5122_vm2, 0, %v930_v20 }
  0xac   : > { %4195 = vmatpush3.bf16.msra.mxu1 %v4574_v47  ;;  %v927_v17 = vsel %vm5122_vm2, 0, %v926_v16  ;;  %932 = vst [vmem:[#allocation2 + $0xbc] sm:$0x1] %v931_v21  ;;  %v1640_v22 = vld [vmem:[#allocation2] sm:$0xf] }
  0xad   : > { %4196 = vmatprep.subr.bf16.mxu1 %v4576_v49  ;;  %928 = vst [vmem:[#allocation2 + $0xb4] sm:$0x1] %v927_v17  ;;  %v1660_v23 = vshrl.u32 %v1640_v22, 16  ;;  %v1641_v33 = vld [vmem:[#allocation2 + $0x4] sm:$0x1] }
  0xae   : > { %4241 = vmatpush3.bf16.msra.mxu0 %v4577_v52  ;;  %v1669_v40 = vshll.u32 %v1641_v33, 16  ;;  %v1080_v53 = vld [vmem:[#allocation2 + $0x1c] sm:$0x1]  ;;  %v1065_v63 = vld [vmem:[#allocation2 + $0x8] sm:$0xf] }
  0xaf   : > { %4242 = vmatprep.subr.bf16.mxu0 %v4579_v57  ;;  %v1662_v27 = vrot.slane %v1660_v23, 4  ;;  %v1083_v20 = vld [vmem:[#allocation2 + $0x20] sm:$0xf]  ;;  %v1086_v21 = vld [vmem:[#allocation2 + $0x24] sm:$0x1] }
  0xb0   : > { %4197 = vmatpush3.bf16.msra.mxu1 %v4576_v49  ;;  %v1077_v49 = vld [vmem:[#allocation2 + $0x18] sm:$0xf]  ;;  %v5253_v58 = vrot.slane %v1669_v40, 5 }
  0xb1   : > { %4163 = vmatmul.mubr.bf16.gmra.mxu0 %v447_v6  ;;  %4198 = vmatprep.subr.bf16.mxu1 %v4578_v54  ;;  %v919_v6 = vsel %vm5122_vm2, 0, %v918_v5 }
  0xb2   : > { %4166 = vmatprep.mubr.bf16.mxu0 %v448_v7  ;;  %4243 = vmatpush3.bf16.msra.mxu0 %v4579_v57  ;;  %920 = vst [vmem:[#allocation2 + $0xa4] sm:$0x1] %v919_v6  ;;  %v910_v7 = vld [vmem:[#allocation2 + $0x94] sm:$0x1] }
  0xb3   : > { %4244 = vmatprep.subr.bf16.mxu0 %v4582_v0  ;;  %v911_v8 = vsel %vm5122_vm2, 0, %v910_v7 }
  0xb4   : > { %4199 = vmatpush3.bf16.msra.mxu1 %v4578_v54  ;;  %912 = vst [vmem:[#allocation2 + $0x94] sm:$0x1] %v911_v8 }
  0xb5   : > { %4200 = vmatprep.subr.bf16.mxu1 %v4580_v61 }
  0xb6   : > { %4245 = vmatpush3.bf16.msra.mxu0 %v4582_v0  ;;  %v1068_v0 = vld [vmem:[#allocation2 + $0xc] sm:$0x1] }
  0xb7   : > { %4246 = vmatprep.subr.bf16.mxu0 %v4585_v3 }
  0xb8   : > { %4201 = vmatpush3.bf16.msra.mxu1 %v4580_v61 }
  0xb9   : > { %4167 = vmatmul.mubr.bf16.gmra.mxu0 %v449_v12  ;;  %4210 = vmatprep.subr.bf16.mxu1 %v5214_v2  ;;  %v915_v12 = vsel %vm5122_vm2, 0, %v914_v11 }
  0xba   : > { %4170 = vmatprep.mubr.bf16.mxu0 %v450_v13  ;;  %4247 = vmatpush3.bf16.msra.mxu0 %v4585_v3  ;;  %916 = vst [vmem:[#allocation2 + $0x9c] sm:$0x1] %v915_v12  ;;  %v5225_v13 = vld [vmem:[#allocation9 + $0x138] sm:$0xff]  }
  0xbb   : > { %4248 = vmatprep.subr.bf16.mxu0 %v4588_v4 }
  0xbe   : > { %4249 = vmatpush3.bf16.msra.mxu0 %v4588_v4 }
  0xbf   : > { %4282 = vmatprep.subr.bf16.mxu0 %v5225_v13 }
  0xc1   : > { %4171 = vmatmul.mubr.bf16.gmra.mxu0 %v451_v18  ;;  %v938_v18 = vld [vmem:[#allocation2 + $0xcc] sm:$0x1] }
  0xc2   : > { %4174 = vmatprep.mubr.bf16.mxu0 %v452_v19  ;;  %v939_v19 = vsel %vm5122_vm2, 0, %v938_v18 }
  0xc3   : > { %940 = vst [vmem:[#allocation2 + $0xcc] sm:$0x1] %v939_v19 }
  0xc9   : > { %4175 = vmatmul.mubr.bf16.gmra.mxu0 %v453_v24  ;;  %v1663_v24 = vshll.u32 %v1640_v22, 16 }
  0xca   : > { %4178 = vmatprep.mubr.bf16.mxu0 %v454_v25  ;;  %v5239_v25 = vld [vmem:[%s5642_s2] ss:$0 sm:$0xff] }
  0xcb   : > { %v1665_v28 = vrot.slane %v1663_v24, 5 }
  0xcd   : > { %v1666_v35 = vor.u32 %v1665_v28, %v1662_v27 }
  0xcf   : > { %v5245_v46 = vrot.slane %v1666_v35, 4 }
  0xd1   : > { %4179 = vmatmul.mubr.bf16.gmra.mxu0 %v455_v30 }
  0xd2   : > { %4182 = vmatprep.mubr.bf16.mxu0 %v456_v31 }
  0xd9   : > { %4183 = vmatmul.mubr.bf16.gmra.mxu0 %v457_v34 }
 0x161   : > { %v4156_v26 = vpop.f32.mrf.mxu0 }
 0x162   : > { %v572_v29 = vadd.f32 %v4156_v26, %v5239_v25 }
 0x163   : > { %v563_v30 = vpop.f32.mrf.mxu0 }
 0x164   : > { %v692_v31 = vmax.f32 %v572_v29, 0.0  ;;  %v564_v32 = vadd.f32 %v5239_v25, %v563_v30  ;;  %v1071_v30 = vld [vmem:[#allocation2 + $0x10] sm:$0xf] }
 0x165   : > { %v4157_v34 = vpop.f32.mrf.mxu0 }
 0x166   : > { %v3951_v36 = vpack.c.bf16 %v692_v31, %v692_v31  ;;  %v690_v37 = vmax.f32 %v564_v32, 0.0  ;;  %v575_v38 = vadd.f32 %v4157_v34, %v5239_v25  ;;  %v1074_v31 = vld [vmem:[#allocation2 + $0x14] sm:$0x1] }
 0x167   : > { %v566_v39 = vpop.f32.mrf.mxu0 }
 0x168   : > { %v998_v41 = vshrl.u32 %v3951_v36, 16  ;;  %v3949_v42 = vpack.c.bf16 %v690_v37, %v690_v37  ;;  %v693_v43 = vmax.f32 %v575_v38, 0.0  ;;  %v567_v44 = vadd.f32 %v5239_v25, %v566_v39 }
 0x169   : > { %v4160_v45 = vpop.f32.mrf.mxu0  ;;  %v1001_v48 = vshll.u32 %v3951_v36, 16 }
 0x16a   : > { %v1000_v47 = vrot.slane %v998_v41, 7  ;;  %v982_v50 = vshrl.u32 %v3949_v42, 16  ;;  %v3952_v51 = vpack.c.bf16 %v693_v43, %v693_v43  ;;  %v985_v54 = vshll.u32 %v3949_v42, 16 }
 0x16b   : > { %v691_v55 = vmax.f32 %v567_v44, 0.0  ;;  %v588_v56 = vadd.f32 %v4160_v45, %v5239_v25  ;;  %v579_v57 = vpop.f32.mrf.mxu0 }
 0x16c   : > { %v1003_v59 = vor.u32 %v1001_v48, %v1000_v47  ;;  %v1004_v60 = vrot.slane %v1000_v47, 4  ;;  %v984_v61 = vrot.slane %v982_v50, 7  ;;  %v1006_v62 = vshrl.u32 %v3952_v51, 16  ;;  %v1101_v48 = vld [vmem:[#allocation2 + $0x38] sm:$0xf] }
 0x16d   : > { %v1009_v3 = vshll.u32 %v3952_v51, 16  ;;  %v3950_v4 = vpack.c.bf16 %v691_v55, %v691_v55  ;;  %v696_v5 = vmax.f32 %v588_v56, 0.0  ;;  %v580_v6 = vadd.f32 %v5239_v25, %v579_v57  ;;  %v4161_v7 = vpop.f32.mrf.mxu0 }
 0x16e   : > { %v1078_v8 = vsel %vm5248_vm5, %v1003_v59, %v1077_v49  ;;  %v1081_v9 = vsel %vm5122_vm2, %v1004_v60, %v1080_v53  ;;  %v987_v10 = vor.u32 %v985_v54, %v984_v61  ;;  %v988_v11 = vrot.slane %v984_v61, 4  ;;  %v1104_v49 = vld [vmem:[#allocation2 + $0x3c] sm:$0x1]  ;;  %v1089_v59 = vld [vmem:[#allocation2 + $0x28] sm:$0xf] }
 0x16f   : > { %1079 = vst [vmem:[#allocation2 + $0x18] sm:$0xf] %v1078_v8  ;;  %1082 = vst [vmem:[#allocation2 + $0x1c] sm:$0x1] %v1081_v9  ;;  %v1008_v12 = vrot.slane %v1006_v62, 7  ;;  %v990_v14 = vshrl.u32 %v3950_v4, 16  ;;  %v3955_v16 = vpack.c.bf16 %v696_v5, %v696_v5  ;;  %v582_v17 = vpop.f32.mrf.mxu0  ;;  %v591_v23 = vadd.f32 %v4161_v7, %v5239_v25 }
 0x170   : > { %v993_v15 = vshll.u32 %v3950_v4, 16  ;;  %v1066_v18 = vsel %vm5248_vm5, %v987_v10, %v1065_v63  ;;  %v1069_v19 = vsel %vm5122_vm2, %v988_v11, %v1068_v0  ;;  %v694_v22 = vmax.f32 %v580_v6, 0.0  ;;  %v1092_v60 = vld [vmem:[#allocation2 + $0x2c] sm:$0x1]  ;;  %v1107_v10 = vld [vmem:[#allocation2 + $0x40] sm:$0xf] }
 0x171   : > { %1067 = vst [vmem:[#allocation2 + $0x8] sm:$0xf] %v1066_v18  ;;  %1070 = vst [vmem:[#allocation2 + $0xc] sm:$0x1] %v1069_v19  ;;  %v1011_v24 = vor.u32 %v1009_v3, %v1008_v12  ;;  %v1012_v26 = vrot.slane %v1008_v12, 4  ;;  %v992_v27 = vrot.slane %v990_v14, 7  ;;  %v4164_v29 = vpop.f32.mrf.mxu0  ;;  %v583_v35 = vadd.f32 %v5239_v25, %v582_v17 }
 0x172   : > { %v1030_v28 = vshrl.u32 %v3955_v16, 16  ;;  %v1033_v32 = vshll.u32 %v3955_v16, 16  ;;  %v3953_v33 = vpack.c.bf16 %v694_v22, %v694_v22  ;;  %v697_v34 = vmax.f32 %v591_v23, 0.0  ;;  %v1110_v18 = vld [vmem:[#allocation2 + $0x44] sm:$0x1] }
 0x173   : > { %v1084_v36 = vsel %vm5248_vm5, %v1011_v24, %v1083_v20  ;;  %v1087_v37 = vsel %vm5122_vm2, %v1012_v26, %v1086_v21  ;;  %v995_v38 = vor.u32 %v993_v15, %v992_v27  ;;  %v996_v39 = vrot.slane %v992_v27, 4  ;;  %v595_v40 = vpop.f32.mrf.mxu0  ;;  %v1095_v19 = vld [vmem:[#allocation2 + $0x30] sm:$0xf]  ;;  %v1098_v26 = vld [vmem:[#allocation2 + $0x34] sm:$0x1] }
 0x174   : > { %1085 = vst [vmem:[#allocation2 + $0x20] sm:$0xf] %v1084_v36  ;;  %1088 = vst [vmem:[#allocation2 + $0x24] sm:$0x1] %v1087_v37  ;;  %v1032_v41 = vrot.slane %v1030_v28, 7  ;;  %v1014_v42 = vshrl.u32 %v3953_v33, 16  ;;  %v3956_v44 = vpack.c.bf16 %v697_v34, %v697_v34  ;;  %v604_v51 = vadd.f32 %v4164_v29, %v5239_v25 }
 0x175   : > { %v1017_v43 = vshll.u32 %v3953_v33, 16  ;;  %v1072_v45 = vsel %vm5248_vm5, %v995_v38, %v1071_v30  ;;  %v1075_v47 = vsel %vm5122_vm2, %v996_v39, %v1074_v31  ;;  %v695_v50 = vmax.f32 %v583_v35, 0.0  ;;  %v4165_v53 = vpop.f32.mrf.mxu0 }
 0x176   : > { %1073 = vst [vmem:[#allocation2 + $0x10] sm:$0xf] %v1072_v45  ;;  %1076 = vst [vmem:[#allocation2 + $0x14] sm:$0x1] %v1075_v47  ;;  %v1035_v54 = vor.u32 %v1033_v32, %v1032_v41  ;;  %v1036_v55 = vrot.slane %v1032_v41, 4  ;;  %v1016_v56 = vrot.slane %v1014_v42, 7  ;;  %v596_v0 = vadd.f32 %v5239_v25, %v595_v40 }
 0x177   : > { %v1038_v57 = vshrl.u32 %v3956_v44, 16  ;;  %v1041_v61 = vshll.u32 %v3956_v44, 16  ;;  %v3954_v62 = vpack.c.bf16 %v695_v50, %v695_v50  ;;  %v700_v63 = vmax.f32 %v604_v51, 0.0  ;;  %v598_v3 = vpop.f32.mrf.mxu0  ;;  %v4586_v40 = vld [vmem:[#allocation9 + $0x70] sm:$0xff]  }
 0x178   : > { %v1102_v4 = vsel %vm5248_vm5, %v1035_v54, %v1101_v48  ;;  %v1105_v5 = vsel %vm5122_vm2, %v1036_v55, %v1104_v49  ;;  %v1019_v6 = vor.u32 %v1017_v43, %v1016_v56  ;;  %v1020_v7 = vrot.slane %v1016_v56, 4  ;;  %v4581_v8 = vld [vmem:[#allocation2] ss:$8 sps:$4 sm:$0xff]   ;;  %v1643_v45 = vld [vmem:[#allocation2 + $0xc] sm:$0x1] }
 0x179   : > { %1103 = vst [vmem:[#allocation2 + $0x38] sm:$0xf] %v1102_v4  ;;  %1106 = vst [vmem:[#allocation2 + $0x3c] sm:$0x1] %v1105_v5  ;;  %v1040_v9 = vrot.slane %v1038_v57, 7  ;;  %v1022_v11 = vshrl.u32 %v3954_v62, 16  ;;  %v3959_v14 = vpack.c.bf16 %v700_v63, %v700_v63  ;;  %v4168_v15 = vpop.f32.mrf.mxu0  ;;  %v607_v21 = vadd.f32 %v4165_v53, %v5239_v25  ;;  %4202 = vmatprep.mubr.bf16.mxu1 %v4581_v8 }
 0x17a   : > { %v1025_v12 = vshll.u32 %v3954_v62, 16  ;;  %v1090_v16 = vsel %vm5248_vm5, %v1019_v6, %v1089_v59  ;;  %v1093_v17 = vsel %vm5122_vm2, %v1020_v7, %v1092_v60  ;;  %v698_v20 = vmax.f32 %v596_v0, 0.0  ;;  %v1642_v33 = vld [vmem:[#allocation2 + $0x8] sm:$0xf]  ;;  %v1646_v60 = vld [vmem:[#allocation2 + $0x18] sm:$0xf] }
 0x17b   : > { %1091 = vst [vmem:[#allocation2 + $0x28] sm:$0xf] %v1090_v16  ;;  %1094 = vst [vmem:[#allocation2 + $0x2c] sm:$0x1] %v1093_v17  ;;  %v1043_v22 = vor.u32 %v1041_v61, %v1040_v9  ;;  %v1044_v23 = vrot.slane %v1040_v9, 4  ;;  %v1024_v24 = vrot.slane %v1022_v11, 7  ;;  %v599_v27 = vadd.f32 %v5239_v25, %v598_v3  ;;  %v611_v28 = vpop.f32.mrf.mxu0 }
 0x17c   : > { %1116 = vst [vmem:[#allocation2 + $0x60] sm:$0xf] %v3959_v14  ;;  %v3957_v29 = vpack.c.bf16 %v698_v20, %v698_v20  ;;  %v701_v30 = vmax.f32 %v607_v21, 0.0  ;;  %v620_v31 = vadd.f32 %v4168_v15, %v5239_v25  ;;  %v612_v32 = vadd.f32 %v5239_v25, %v611_v28  ;;  %v4589_v59 = vld [vmem:[#allocation9 + $0x68] sm:$0xff]   ;;  %v4666_v63 = vld [vmem:[#allocation10 + $0x30] sm:$0xff]  }
 0x17d   : > { %v1108_v34 = vsel %vm5248_vm5, %v1043_v22, %v1107_v10  ;;  %v1111_v35 = vsel %vm5122_vm2, %v1044_v23, %v1110_v18  ;;  %v1027_v36 = vor.u32 %v1025_v12, %v1024_v24  ;;  %v1028_v37 = vrot.slane %v1024_v24, 4  ;;  %v4169_v38 = vpop.f32.mrf.mxu0  ;;  %v4584_v39 = vld [vmem:[#allocation2 + $0x10] ss:$8 sps:$4 sm:$0xff]   ;;  %v1645_v5 = vld [vmem:[#allocation2 + $0x14] sm:$0x1] }
 0x17e   : > { %1109 = vst [vmem:[#allocation2 + $0x40] sm:$0xf] %v1108_v34  ;;  %1112 = vst [vmem:[#allocation2 + $0x44] sm:$0x1] %v1111_v35  ;;  %v3960_v41 = vpack.c.bf16 %v701_v30, %v701_v30  ;;  %v699_v42 = vmax.f32 %v599_v27, 0.0  ;;  %v704_v43 = vmax.f32 %v620_v31, 0.0  ;;  %v623_v49 = vadd.f32 %v4169_v38, %v5239_v25  ;;  %4203 = vmatmul.mubr.bf16.vlgmr.msra.gmra.mxu1 %v4584_v39 }
 0x17f   : > { %1114 = vst [vmem:[#allocation2 + $0x50] sm:$0xf] %v3957_v29  ;;  %v702_v44 = vmax.f32 %v612_v32, 0.0  ;;  %v1096_v47 = vsel %vm5248_vm5, %v1027_v36, %v1095_v19  ;;  %v1099_v48 = vsel %vm5122_vm2, %v1028_v37, %v1098_v26  ;;  %v614_v50 = vpop.f32.mrf.mxu0  ;;  %v1674_v51 = vshrl.u32 %v1642_v33, 16  ;;  %v1644_v53 = vld [vmem:[#allocation2 + $0x10] sm:$0xf]  ;;  %4211 = vmatpush3.bf16.msra.mxu1 %v5214_v2 }
 0x180   : > { %1097 = vst [vmem:[#allocation2 + $0x30] sm:$0xf] %v1096_v47  ;;  %1100 = vst [vmem:[#allocation2 + $0x34] sm:$0x1] %v1099_v48  ;;  %v3958_v54 = vpack.c.bf16 %v699_v42, %v699_v42  ;;  %v3963_v55 = vpack.c.bf16 %v704_v43, %v704_v43  ;;  %v615_v57 = vadd.f32 %v5239_v25, %v614_v50  ;;  %v705_v61 = vmax.f32 %v623_v49, 0.0  ;;  %v4594_v49 = vld [vmem:[#allocation9 + $0x58] sm:$0xff]  }
 0x181   : > { %1117 = vst [vmem:[#allocation2 + $0x68] sm:$0xf] %v3960_v41  ;;  %v3961_v56 = vpack.c.bf16 %v702_v44, %v702_v44  ;;  %v4172_v62 = vpop.f32.mrf.mxu0  ;;  %4212 = vmatprep.subr.bf16.mxu1 %v4586_v40  ;;  %v1676_v0 = vrot.slane %v1674_v51, 4  ;;  %v1677_v3 = vshll.u32 %v1642_v33, 16  ;;  %v1683_v4 = vshll.u32 %v1643_v45, 16 }
 0x182   : > { %1115 = vst [vmem:[#allocation2 + $0x58] sm:$0xf] %v3958_v54  ;;  %1120 = vst [vmem:[#allocation2 + $0x80] sm:$0xf] %v3963_v55  ;;  %v703_v6 = vmax.f32 %v615_v57, 0.0  ;;  %v636_v2 = vadd.f32 %v4172_v62, %v5239_v25  ;;  %v1672_v8 = vsel %vm5301_vm8, %v5245_v46, %v5253_v58  ;;  %v1688_v9 = vshrl.u32 %v1644_v53, 16 }
 0x183   : > { %1118 = vst [vmem:[#allocation2 + $0x70] sm:$0xf] %v3961_v56  ;;  %v4587_v7 = vld [vmem:[#allocation2 + $0x20] ss:$8 sps:$4 sm:$0xff]   ;;  %v3964_v10 = vpack.c.bf16 %v705_v61, %v705_v61  ;;  %v627_v11 = vpop.f32.mrf.mxu0  ;;  %v1679_v12 = vrot.slane %v1677_v3, 5  ;;  %v1685_v14 = vrot.slane %v1683_v4, 5  ;;  %4213 = vmatpush3.bf16.msra.mxu1 %v4586_v40 }
 0x184   : > { %v1691_v15 = vshll.u32 %v1644_v53, 16  ;;  %v3962_v16 = vpack.c.bf16 %v703_v6, %v703_v6  ;;  %v708_v17 = vmax.f32 %v636_v2, 0.0  ;;  %v628_v18 = vadd.f32 %v5239_v25, %v627_v11  ;;  %4206 = vmatprep.mubr.bf16.mxu1 %v4587_v7  ;;  %4214 = vmatprep.subr.bf16.mxu1 %v4589_v59  ;;  %v4592_v58 = vld [vmem:[#allocation9 + $0x60] sm:$0xff]   ;;  %v1647_v44 = vld [vmem:[#allocation2 + $0x1c] sm:$0x1] }
 0x185   : > { %v1690_v19 = vrot.slane %v1688_v9, 4  ;;  %1121 = vst [vmem:[#allocation2 + $0x88] sm:$0xf] %v3964_v10  ;;  %v1680_v20 = vor.u32 %v1679_v12, %v1676_v0  ;;  %v4173_v21 = vpop.f32.mrf.mxu0  ;;  %v1697_v23 = vshll.u32 %v1645_v5, 16  ;;  %v1702_v46 = vshrl.u32 %v1646_v60, 16  ;;  %v4596_v10 = vld [vmem:[#allocation9 + $0x50] sm:$0xff]  }
 0x186   : > { %v1693_v22 = vrot.slane %v1691_v15, 5  ;;  %1119 = vst [vmem:[#allocation2 + $0x78] sm:$0xf] %v3962_v16  ;;  %v3967_v24 = vpack.c.bf16 %v708_v17, %v708_v17  ;;  %v706_v26 = vmax.f32 %v628_v18, 0.0  ;;  %v639_v27 = vadd.f32 %v4173_v21, %v5239_v25  ;;  %v4600_v29 = vld [vmem:[#allocation2 + $0x48] ss:$8 sps:$4 sm:$0xff]  }
 0x187   : > { %v1705_v28 = vshll.u32 %v1646_v60, 16  ;;  %v1681_v30 = vrot.slane %v1680_v20, 4  ;;  %v630_v31 = vpop.f32.mrf.mxu0  ;;  %v5312_v33 = vrot.slane %v1697_v23, 5  ;;  %v1704_v34 = vrot.slane %v1702_v46, 4  ;;  %4215 = vmatpush3.bf16.msra.mxu1 %v4589_v59  ;;  %v4591_v39 = vld [vmem:[#allocation2 + $0x30] ss:$8 sps:$4 sm:$0xff]  }
 0x188   : > { %v1694_v32 = vor.u32 %v1693_v22, %v1690_v19  ;;  %v1139_v35 = vshrl.u32 %v3967_v24, 16  ;;  %v1142_v36 = vshll.u32 %v3967_v24, 16  ;;  %v3965_v37 = vpack.c.bf16 %v706_v26, %v706_v26  ;;  %v1215_v40 = vld [vmem:[#allocation2 + $0xa0] sm:$0xf]  ;;  %v1218_v41 = vld [vmem:[#allocation2 + $0xa4] sm:$0x1]  ;;  %4216 = vmatprep.subr.bf16.mxu1 %v4592_v58  ;;  %4207 = vmatmul.mubr.bf16.gmra.mxu1 %v4591_v39 }
 0x189   : > { %v709_v38 = vmax.f32 %v639_v27, 0.0  ;;  %v1686_v42 = vsel %vm5301_vm8, %v1681_v30, %v1685_v14  ;;  %v631_v43 = vadd.f32 %v5239_v25, %v630_v31  ;;  %v1707_v47 = vrot.slane %v1705_v28, 5  ;;  %v4176_v48 = vpop.f32.mrf.mxu0  ;;  %v1203_v55 = vld [vmem:[#allocation2 + $0x90] sm:$0xf]  ;;  %4226 = vmatprep.mubr.bf16.mxu1 %v4600_v29  ;;  %v1206_v5 = vld [vmem:[#allocation2 + $0x94] sm:$0x1] }
 0x18a   : > { %v5317_v45 = vrot.slane %v1694_v32, 4  ;;  %v1141_v50 = vrot.slane %v1139_v35, 7  ;;  %v1123_v51 = vshrl.u32 %v3965_v37, 16  ;;  %v1126_v53 = vshll.u32 %v3965_v37, 16  ;;  %v1221_v16 = vld [vmem:[#allocation2 + $0xa8] sm:$0xf] }
 0x18b   : > { %v3832_v54 = vcombine.low %v1672_v8, %v1686_v42  ;;  %v3968_v56 = vpack.c.bf16 %v709_v38, %v709_v38  ;;  %v707_v57 = vmax.f32 %v631_v43, 0.0  ;;  %v1708_v60 = vor.u32 %v1707_v47, %v1704_v34  ;;  %v643_v61 = vpop.f32.mrf.mxu0  ;;  %4217 = vmatpush3.bf16.msra.mxu1 %v4592_v58  ;;  %v1224_v17 = vld [vmem:[#allocation2 + $0xac] sm:$0x1]  ;;  %v1648_v22 = vld [vmem:[#allocation2 + $0x20] sm:$0xf] }
 0x18c   : > { %v1700_v59 = vsel %vm5301_vm8, %v5317_v45, %v5312_v33  ;;  %v1144_v62 = vor.u32 %v1142_v36, %v1141_v50  ;;  %v1145_v0 = vrot.slane %v1141_v50, 4  ;;  %v1125_v3 = vrot.slane %v1123_v51, 7  ;;  %4218 = vmatprep.subr.bf16.mxu1 %v4594_v49  ;;  %v5331_v46 = vld [vmem:[#allocation9 + $0x48] sm:$0xff]   ;;  %v1209_v26 = vld [vmem:[#allocation2 + $0x98] sm:$0xf] }
 0x18d   : > { %4250 = vmatprep.mubr.bf16.mxu0 %v3832_v54  ;;  %v1711_v4 = vshll.u32 %v1647_v44, 16  ;;  %v1147_v6 = vshrl.u32 %v3968_v56, 16  ;;  %v1150_v2 = vshll.u32 %v3968_v56, 16  ;;  %v3966_v7 = vpack.c.bf16 %v707_v57, %v707_v57  ;;  %v5323_v9 = vpop.f32.mrf.mxu0  ;;  %v1212_v27 = vld [vmem:[#allocation2 + $0x9c] sm:$0x1]  ;;  %v5349_v54 = vld [vmem:[#allocation9 + $0x128] sm:$0xff]  }
 0x18e   : > { %v1709_v8 = vrot.slane %v1708_v60, 4  ;;  %v1216_v11 = vsel %vm5248_vm5, %v1144_v62, %v1215_v40  ;;  %v1219_v12 = vsel %vm5122_vm2, %v1145_v0, %v1218_v41  ;;  %v1128_v14 = vor.u32 %v1126_v53, %v1125_v3  ;;  %v1649_v30 = vld [vmem:[#allocation2 + $0x24] sm:$0x1]  ;;  %v1650_v35 = vld [vmem:[#allocation2 + $0x28] sm:$0xf]  ;;  %v4593_v41 = vld [vmem:[#allocation9 + $0x130] sm:$0xff]  }
 0x18f   : > { %v1129_v15 = vrot.slane %v1125_v3, 4  ;;  %1217 = vst [vmem:[#allocation2 + $0xa0] sm:$0xf] %v1216_v11  ;;  %1220 = vst [vmem:[#allocation2 + $0xa4] sm:$0x1] %v1219_v12  ;;  %v1149_v18 = vrot.slane %v1147_v6, 7  ;;  %v5329_v23 = vpop.f32.mrf.mxu0  ;;  %v652_v28 = vadd.f32 %v4176_v48, %v5239_v25  ;;  %v644_v29 = vadd.f32 %v5239_v25, %v643_v61  ;;  %4219 = vmatpush3.bf16.msra.mxu1 %v4594_v49 }
 0x190   : > { %v1131_v19 = vshrl.u32 %v3966_v7, 16  ;;  %v1134_v20 = vshll.u32 %v3966_v7, 16  ;;  %v1713_v21 = vrot.slane %v1711_v4, 5  ;;  %v1204_v58 = vsel %vm5248_vm5, %v1128_v14, %v1203_v55  ;;  %4220 = vmatprep.subr.bf16.mxu1 %v4596_v10  ;;  %v1651_v50 = vld [vmem:[#allocation2 + $0x2c] sm:$0x1]  ;;  %v4601_v55 = vld [vmem:[#allocation9 + $0x40] sm:$0xff]  }
 0x191   : > { %v1207_v24 = vsel %vm5122_vm2, %v1129_v15, %v1206_v5  ;;  %1205 = vst [vmem:[#allocation2 + $0x90] sm:$0xf] %v1204_v58  ;;  %v1152_v31 = vor.u32 %v1150_v2, %v1149_v18  ;;  %v1153_v32 = vrot.slane %v1149_v18, 4  ;;  %v5341_v36 = vpop.f32.mrf.mxu0  ;;  %v712_v38 = vmax.f32 %v652_v28, 0.0  ;;  %v5356_v61 = vld [vmem:[#allocation2 + $0x30] sm:$0xf] }
 0x192   : > { %1208 = vst [vmem:[#allocation2 + $0x94] sm:$0x1] %v1207_v24  ;;  %v1133_v33 = vrot.slane %v1131_v19, 7  ;;  %v1714_v34 = vsel %vm5301_vm8, %v1709_v8, %v1713_v21  ;;  %v710_v39 = vmax.f32 %v644_v29, 0.0  ;;  %v1716_v40 = vshrl.u32 %v1648_v22, 16  ;;  %v4597_v24 = vld [vmem:[#allocation9 + $0x120] sm:$0xff]  }
 0x193   : > { %v3833_v37 = vcombine.low %v1700_v59, %v1714_v34  ;;  %v1222_v42 = vsel %vm5248_vm5, %v1152_v31, %v1221_v16  ;;  %v1225_v43 = vsel %vm5122_vm2, %v1153_v32, %v1224_v17  ;;  %v5347_v47 = vpop.f32.mrf.mxu0  ;;  %v3971_v48 = vpack.c.bf16 %v712_v38, %v712_v38  ;;  %4221 = vmatpush3.bf16.msra.mxu1 %v4596_v10  ;;  %v1239_v6 = vld [vmem:[#allocation2 + $0xc0] sm:$0xf]  ;;  %v1242_v2 = vld [vmem:[#allocation2 + $0xc4] sm:$0x1]  ;;  %v1227_v7 = vld [vmem:[#allocation2 + $0xb0] sm:$0xf] }
 0x194   : > { %v1136_v44 = vor.u32 %v1134_v20, %v1133_v33  ;;  %v1137_v45 = vrot.slane %v1133_v33, 4  ;;  %1223 = vst [vmem:[#allocation2 + $0xa8] sm:$0xf] %v1222_v42  ;;  %1226 = vst [vmem:[#allocation2 + $0xac] sm:$0x1] %v1225_v43  ;;  %v3969_v49 = vpack.c.bf16 %v710_v39, %v710_v39  ;;  %v1718_v51 = vrot.slane %v1716_v40, 4  ;;  %4222 = vmatprep.subr.bf16.mxu1 %v5331_v46 }
 0x195   : > { %4251 = vmatmul.mubr.bf16.vlgmr.msra.gmra.mxu0 %v3833_v37  ;;  %v1719_v53 = vshll.u32 %v1648_v22, 16  ;;  %v1725_v59 = vshll.u32 %v1649_v30, 16  ;;  %v1730_v60 = vshrl.u32 %v1650_v35, 16  ;;  %v5358_v62 = vpop.f32.mrf.mxu0  ;;  %v1171_v0 = vshrl.u32 %v3971_v48, 16  ;;  %v1230_v8 = vld [vmem:[#allocation2 + $0xb4] sm:$0x1] }
 0x196   : > { %v1210_v56 = vsel %vm5248_vm5, %v1136_v44, %v1209_v26  ;;  %v1213_v57 = vsel %vm5122_vm2, %v1137_v45, %v1212_v27  ;;  %4283 = vmatpush3.bf16.msra.mxu0 %v5225_v13  ;;  %v1174_v3 = vshll.u32 %v3971_v48, 16  ;;  %v1155_v4 = vshrl.u32 %v3969_v49, 16  ;;  %v5368_v22 = vld [vmem:[#allocation2 + $0x38] sm:$0xf]  ;;  %v4607_v40 = vld [vmem:[#allocation9 + $0xf0] sm:$0xff]  }
 0x197   : > { %1211 = vst [vmem:[#allocation2 + $0x98] sm:$0xf] %v1210_v56  ;;  %1214 = vst [vmem:[#allocation2 + $0x9c] sm:$0x1] %v1213_v57  ;;  %v1158_v5 = vshll.u32 %v3969_v49, 16  ;;  %4284 = vmatprep.subr.bf16.mxu0 %v4593_v41  ;;  %v1721_v13 = vrot.slane %v1719_v53, 5  ;;  %v5361_v14 = vpop.f32.mrf.mxu0  ;;  %v655_v18 = vadd.f32 %v5323_v9, %v5239_v25  ;;  %4223 = vmatpush3.bf16.msra.mxu1 %v5331_v46 }
 0x198   : > { %v1727_v10 = vrot.slane %v1725_v59, 5  ;;  %v1732_v11 = vrot.slane %v1730_v60, 4  ;;  %v1733_v12 = vshll.u32 %v1650_v35, 16  ;;  %v1173_v15 = vrot.slane %v1171_v0, 7  ;;  %4224 = vmatprep.subr.bf16.mxu1 %v4601_v55  ;;  %v4604_v26 = vld [vmem:[#allocation9 + $0xf8] sm:$0xff]  }
 0x199   : > { %v1157_v16 = vrot.slane %v1155_v4, 7  ;;  %v1739_v17 = vshll.u32 %v1651_v50, 16  ;;  %v1722_v19 = vor.u32 %v1721_v13, %v1718_v51  ;;  %v647_v21 = vadd.f32 %v5239_v25, %v5329_v23  ;;  %v1653_v9 = vld [vmem:[#allocation2 + $0x34] sm:$0x1]  ;;  %v5372_v46 = vpop.f32.mrf.mxu0  ;;  %v5382_v39 = vld [vmem:[#allocation9 + $0x118] sm:$0xff]   ;;  %v4610_v13 = vld [vmem:[#allocation9 + $0xe8] sm:$0xff]  }
 0x19a   : > { %v1735_v20 = vrot.slane %v1733_v12, 5  ;;  %4285 = vmatpush3.bf16.msra.mxu0 %v4593_v41  ;;  %v1744_v58 = vshrl.u32 %v5356_v61, 16  ;;  %v1176_v27 = vor.u32 %v1174_v3, %v1173_v15  ;;  %v1177_v28 = vrot.slane %v1173_v15, 4  ;;  %v4603_v45 = vld [vmem:[#allocation2 + $0x58] ss:$8 sps:$4 sm:$0xff]  }
 0x19b   : > { %v1160_v29 = vor.u32 %v1158_v5, %v1157_v16  ;;  %v1161_v30 = vrot.slane %v1157_v16, 4  ;;  %4286 = vmatprep.subr.bf16.mxu0 %v5349_v54  ;;  %v1723_v31 = vrot.slane %v1722_v19, 4  ;;  %v1741_v33 = vrot.slane %v1739_v17, 5  ;;  %4225 = vmatpush3.bf16.msra.mxu1 %v4601_v55  ;;  %v5389_v53 = vpop.f32.mrf.mxu0  ;;  %v4605_v55 = vld [vmem:[#allocation2 + $0x68] ss:$8 sps:$4 sm:$0xff]  }
 0x19c   : > { %v1736_v32 = vor.u32 %v1735_v20, %v1732_v11  ;;  %v713_v23 = vmax.f32 %v655_v18, 0.0  ;;  %v1240_v34 = vsel %vm5248_vm5, %v1176_v27, %v1239_v6  ;;  %v1243_v35 = vsel %vm5122_vm2, %v1177_v28, %v1242_v2  ;;  %4258 = vmatprep.subr.bf16.mxu1 %v4604_v26  ;;  %v1655_v0 = vld [vmem:[#allocation2 + $0x3c] sm:$0x1]  ;;  %v1245_v3 = vld [vmem:[#allocation2 + $0xc8] sm:$0xf]  ;;  %v4602_v19 = vld [vmem:[#allocation9 + $0x110] sm:$0xff]  }
 0x19d   : > { %v1228_v37 = vsel %vm5248_vm5, %v1160_v29, %v1227_v7  ;;  %v1231_v38 = vsel %vm5122_vm2, %v1161_v30, %v1230_v8  ;;  %1241 = vst [vmem:[#allocation2 + $0xc0] sm:$0xf] %v1240_v34  ;;  %1244 = vst [vmem:[#allocation2 + $0xc4] sm:$0x1] %v1243_v35  ;;  %v1728_v41 = vsel %vm5301_vm8, %v1723_v31, %v1727_v10  ;;  %v711_v44 = vmax.f32 %v647_v21, 0.0  ;;  %v4185_v20 = vpop.f32.mrf.mxu0 }
 0x19e   : > { %1229 = vst [vmem:[#allocation2 + $0xb0] sm:$0xf] %v1228_v37  ;;  %1232 = vst [vmem:[#allocation2 + $0xb4] sm:$0x1] %v1231_v38  ;;  %v1737_v42 = vrot.slane %v1736_v32, 4  ;;  %v3972_v43 = vpack.c.bf16 %v713_v23, %v713_v23  ;;  %4287 = vmatpush3.bf16.msra.mxu0 %v5349_v54  ;;  %v1746_v48 = vrot.slane %v1744_v58, 4  ;;  %4227 = vmatmul.mubr.bf16.vlgmr.msra.gmra.mxu1 %v4603_v45 }
 0x19f   : > { %v1747_v49 = vshll.u32 %v5356_v61, 16  ;;  %v1753_v50 = vshll.u32 %v1653_v9, 16  ;;  %v1758_v51 = vshrl.u32 %v5368_v22, 16  ;;  %4288 = vmatprep.subr.bf16.mxu0 %v4597_v24  ;;  %v3970_v60 = vpack.c.bf16 %v711_v44, %v711_v44  ;;  %4230 = vmatprep.mubr.bf16.mxu1 %v4605_v55  ;;  %v1248_v10 = vld [vmem:[#allocation2 + $0xcc] sm:$0x1]  ;;  %v678_v38 = vpop.f32.mrf.mxu0 }
 0x1a0   : > { %v1742_v56 = vsel %vm5301_vm8, %v1737_v42, %v1741_v33  ;;  %v1179_v57 = vshrl.u32 %v3972_v43, 16  ;;  %v1182_v59 = vshll.u32 %v3972_v43, 16  ;;  %4259 = vmatpush3.bf16.msra.mxu1 %v4604_v26  ;;  %v1761_v8 = vshll.u32 %v5368_v22, 16  ;;  %v1233_v11 = vld [vmem:[#allocation2 + $0xb8] sm:$0xf]  ;;  %v4614_v33 = vld [vmem:[#allocation9 + $0xe0] sm:$0xff]  }
 0x1a1   : > { %v3834_v54 = vcombine.low %v1728_v41, %v1742_v56  ;;  %v1749_v4 = vrot.slane %v1747_v49, 5  ;;  %v5393_v5 = vrot.slane %v1753_v50, 5  ;;  %v1760_v61 = vrot.slane %v1758_v51, 4  ;;  %4260 = vmatprep.subr.bf16.mxu1 %v4607_v40  ;;  %v1236_v12 = vld [vmem:[#allocation2 + $0xbc] sm:$0x1] }
 0x1a2   : > { %v1181_v6 = vrot.slane %v1179_v57, 7  ;;  %v1163_v2 = vshrl.u32 %v3970_v60, 16  ;;  %v1166_v7 = vshll.u32 %v3970_v60, 16  ;;  %4289 = vmatpush3.bf16.msra.mxu0 %v4597_v24  ;;  %v1767_v16 = vshll.u32 %v1655_v0, 16  ;;  %v4617_v26 = vld [vmem:[#allocation2 + $0x90] ss:$8 sps:$4 sm:$0xff]  }
 0x1a3   : > { %4254 = vmatprep.mubr.bf16.mxu0 %v3834_v54  ;;  %v1750_v15 = vor.u32 %v1749_v4, %v1746_v48  ;;  %v668_v17 = vadd.f32 %v5341_v36, %v5239_v25  ;;  %v660_v18 = vadd.f32 %v5239_v25, %v5347_v47  ;;  %4290 = vmatprep.subr.bf16.mxu0 %v5382_v39  ;;  %v1763_v24 = vrot.slane %v1761_v8, 5  ;;  %v4609_v32 = vld [vmem:[#allocation2 + $0x78] ss:$8 sps:$4 sm:$0xff]   ;;  %v4621_v4 = vld [vmem:[#allocation9 + $0xd0] sm:$0xff]  }
 0x1a4   : > { %v1184_v21 = vor.u32 %v1182_v59, %v1181_v6  ;;  %v1185_v22 = vrot.slane %v1181_v6, 4  ;;  %v1165_v58 = vrot.slane %v1163_v2, 7  ;;  %v1769_v28 = vrot.slane %v1767_v16, 5  ;;  %4261 = vmatpush3.bf16.msra.mxu1 %v4607_v40  ;;  %v4606_v40 = vld [vmem:[#allocation9 + $0x108] sm:$0xff]   ;;  %v4616_v49 = vld [vmem:[#allocation9 + $0xd8] sm:$0xff]   ;;  %v4608_v60 = vld [vmem:[#allocation9 + $0x100] sm:$0xff]  }
 0x1a5   : > { %v1751_v27 = vrot.slane %v1750_v15, 4  ;;  %v716_v29 = vmax.f32 %v668_v17, 0.0  ;;  %v714_v30 = vmax.f32 %v660_v18, 0.0  ;;  %4262 = vmatprep.subr.bf16.mxu1 %v4610_v13  ;;  %v1764_v34 = vor.u32 %v1763_v24, %v1760_v61  ;;  %v2313_v61 = vld [vmem:[#allocation2 + $0x90] sm:$0xf]  ;;  %v4624_v2 = vld [vmem:[#allocation9 + $0xc8] sm:$0xff]  }
 0x1a6   : > { %v1246_v36 = vsel %vm5248_vm5, %v1184_v21, %v1245_v3  ;;  %v1249_v47 = vsel %vm5122_vm2, %v1185_v22, %v1248_v10  ;;  %v1168_v9 = vor.u32 %v1166_v7, %v1165_v58  ;;  %v1169_v31 = vrot.slane %v1165_v58, 4  ;;  %4291 = vmatpush3.bf16.msra.mxu0 %v5382_v39  ;;  %4231 = vmatmul.mubr.bf16.gmra.mxu1 %v4609_v32  ;;  %v2315_v6 = vld [vmem:[#allocation2 + $0x98] sm:$0xf]  ;;  %v4615_v7 = vld [vmem:[#allocation9 + $0x1b0] sm:$0xff]   ;;  %v4626_v15 = vld [vmem:[#allocation9 + $0xc0] sm:$0xff]  }
 0x1a7   : > { %1247 = vst [vmem:[#allocation2 + $0xc8] sm:$0xf] %v1246_v36  ;;  %1250 = vst [vmem:[#allocation2 + $0xcc] sm:$0x1] %v1249_v47  ;;  %v1756_v23 = vsel %vm5301_vm8, %v1751_v27, %v5393_v5  ;;  %v3975_v35 = vpack.c.bf16 %v716_v29, %v716_v29  ;;  %v3973_v37 = vpack.c.bf16 %v714_v30, %v714_v30  ;;  %4292 = vmatprep.subr.bf16.mxu0 %v4602_v19  ;;  %v4612_v5 = vld [vmem:[#allocation9 + $0x1b8] sm:$0xff]   ;;  %v4619_v18 = vld [vmem:[#allocation9 + $0x1a8] sm:$0xff]  }
 0x1a8   : > { %v1234_v41 = vsel %vm5248_vm5, %v1168_v9, %v1233_v11  ;;  %v1237_v39 = vsel %vm5122_vm2, %v1169_v31, %v1236_v12  ;;  %v671_v42 = vadd.f32 %v5358_v62, %v5239_v25  ;;  %v663_v43 = vadd.f32 %v5239_v25, %v5361_v14  ;;  %4263 = vmatpush3.bf16.msra.mxu1 %v4610_v13  ;;  %v4629_v58 = vld [vmem:[#allocation9 + $0x178] sm:$0xff]   ;;  %v2314_v24 = vld [vmem:[#allocation2 + $0x94] sm:$0x1]  ;;  %v4622_v9 = vld [vmem:[#allocation2 + $0x8] ss:$8 sps:$4 sm:$0xff]  }
 0x1a9   : > { %1235 = vst [vmem:[#allocation2 + $0xb8] sm:$0xf] %v1234_v41  ;;  %1238 = vst [vmem:[#allocation2 + $0xbc] sm:$0x1] %v1237_v39  ;;  %v1765_v44 = vrot.slane %v1764_v34, 4  ;;  %v684_v45 = vadd.f32 %v5372_v46, %v5239_v25  ;;  %v676_v52 = vadd.f32 %v5239_v25, %v5389_v53  ;;  %v687_v1 = vadd.f32 %v4185_v20, %v5239_v25  ;;  %v4632_v32 = vld [vmem:[#allocation9 + $0x170] sm:$0xff]  }
 0x1aa   : > { %1254 = vst [vmem:[#allocation2 + $0xe8] sm:$0xf] %v3975_v35  ;;  %1252 = vst [vmem:[#allocation2 + $0xd8] sm:$0xf] %v3973_v37  ;;  %4274 = vmatprep.mubr.bf16.mxu1 %v4617_v26  ;;  %v717_v62 = vmax.f32 %v671_v42, 0.0  ;;  %v715_v48 = vmax.f32 %v663_v43, 0.0  ;;  %4293 = vmatpush3.bf16.msra.mxu0 %v4602_v19  ;;  %v679_v14 = vadd.f32 %v5239_v25, %v678_v38 }
 0x1ab   : > { %4264 = vmatprep.subr.bf16.mxu1 %v4614_v33  ;;  %v1770_v50 = vsel %vm5301_vm8, %v1765_v44, %v1769_v28  ;;  %v720_v51 = vmax.f32 %v684_v45, 0.0  ;;  %v718_v55 = vmax.f32 %v676_v52, 0.0  ;;  %v721_v46 = vmax.f32 %v687_v1, 0.0  ;;  %4294 = vmatprep.subr.bf16.mxu0 %v4606_v40  ;;  %v2316_v26 = vld [vmem:[#allocation2 + $0x9c] sm:$0x1]  ;;  %v4623_v28 = vld [vmem:[#allocation9 + $0x1a0] sm:$0xff]  }
 0x1ac   : > { %v3835_v56 = vcombine.low %v1756_v23, %v1770_v50  ;;  %v3976_v53 = vpack.c.bf16 %v717_v62, %v717_v62  ;;  %v3974_v57 = vpack.c.bf16 %v715_v48, %v715_v48  ;;  %v719_v59 = vmax.f32 %v679_v14, 0.0  ;;  %4265 = vmatpush3.bf16.msra.mxu1 %v4614_v33  ;;  %v4628_v31 = vld [vmem:[#allocation2 + $0xa0] ss:$8 sps:$4 sm:$0xff]   ;;  %v4625_v23 = vld [vmem:[#allocation9 + $0x198] sm:$0xff]   ;;  %v4627_v41 = vld [vmem:[#allocation9 + $0x190] sm:$0xff]  }
 0x1ad   : > { %v3979_v0 = vpack.c.bf16 %v720_v51, %v720_v51  ;;  %v3977_v54 = vpack.c.bf16 %v718_v55, %v718_v55  ;;  %v3980_v3 = vpack.c.bf16 %v721_v46, %v721_v46  ;;  %4266 = vmatprep.subr.bf16.mxu1 %v4616_v49  ;;  %v2330_v8 = vshrl.u32 %v2313_v61, 16  ;;  %v4639_v43 = vld [vmem:[#allocation9 + $0x160] sm:$0xff]   ;;  %v2983_v45 = vld [vmem:[#allocation2 + $0x8] sm:$0xf]  ;;  %v2985_v52 = vld [vmem:[#allocation2 + $0x10] sm:$0xf] }
 0x1ae   : > { %4255 = vmatmul.mubr.bf16.gmra.mxu0 %v3835_v56  ;;  %1255 = vst [vmem:[#allocation2 + $0xf0] sm:$0xf] %v3976_v53  ;;  %1253 = vst [vmem:[#allocation2 + $0xe0] sm:$0xf] %v3974_v57  ;;  %v3978_v25 = vpack.c.bf16 %v719_v59, %v719_v59  ;;  %v2333_v13 = vshll.u32 %v2313_v61, 16  ;;  %v2344_v10 = vshrl.u32 %v2315_v6, 16 }
 0x1af   : > { %1258 = vst [vmem:[#allocation2 + $0x108] sm:$0xf] %v3979_v0  ;;  %1256 = vst [vmem:[#allocation2 + $0xf8] sm:$0xf] %v3977_v54  ;;  %4295 = vmatpush3.bf16.msra.mxu0 %v4606_v40  ;;  %v2347_v11 = vshll.u32 %v2315_v6, 16  ;;  %v2332_v19 = vrot.slane %v2330_v8, 4 }
 0x1b0   : > { %1259 = vst [vmem:[#allocation2 + $0x110] sm:$0xf] %v3980_v3  ;;  %1257 = vst [vmem:[#allocation2 + $0x100] sm:$0xf] %v3978_v25  ;;  %4296 = vmatprep.subr.bf16.mxu0 %v4608_v60  ;;  %4267 = vmatpush3.bf16.msra.mxu1 %v4616_v49  ;;  %v2335_v20 = vrot.slane %v2333_v13, 5  ;;  %v2346_v21 = vrot.slane %v2344_v10, 4 }
 0x1b1   : > { %4268 = vmatprep.subr.bf16.mxu1 %v4621_v4  ;;  %v2349_v22 = vrot.slane %v2347_v11, 5  ;;  %v2339_v30 = vshll.u32 %v2314_v24, 16  ;;  %v2353_v47 = vshll.u32 %v2316_v26, 16  ;;  %v4630_v33 = vld [vmem:[#allocation2 + $0xb0] ss:$8 sps:$4 sm:$0xff]   ;;  %v4635_v40 = vld [vmem:[#allocation9 + $0x168] sm:$0xff]  }
 0x1b2   : > { %v2336_v29 = vor.u32 %v2335_v20, %v2332_v19  ;;  %v4634_v44 = vld [vmem:[#allocation2 + $0xc0] ss:$8 sps:$4 sm:$0xff]   ;;  %v2321_v49 = vld [vmem:[#allocation2 + $0xb0] sm:$0xf]  ;;  %v3000_v50 = vshrl.u32 %v2983_v45, 16  ;;  %v3003_v51 = vshll.u32 %v2983_v45, 16 }
 0x1b3   : > { %4297 = vmatpush3.bf16.msra.mxu0 %v4608_v60  ;;  %v2350_v36 = vor.u32 %v2349_v22, %v2346_v21  ;;  %v2341_v35 = vrot.slane %v2339_v30, 5  ;;  %v2355_v38 = vrot.slane %v2353_v47, 5  ;;  %v2317_v62 = vld [vmem:[#allocation2 + $0xa0] sm:$0xf]  ;;  %v2319_v48 = vld [vmem:[#allocation2 + $0xa8] sm:$0xf] }
 0x1b4   : > { %4330 = vmatprep.subr.bf16.mxu0 %v4612_v5  ;;  %4269 = vmatpush3.bf16.msra.mxu1 %v4621_v4  ;;  %v2337_v34 = vrot.slane %v2336_v29, 4  ;;  %v4631_v14 = vld [vmem:[#allocation9 + $0x188] sm:$0xff]   ;;  %v3014_v55 = vshrl.u32 %v2985_v52, 16  ;;  %v3017_v46 = vshll.u32 %v2985_v52, 16  ;;  %v2323_v56 = vld [vmem:[#allocation2 + $0xb8] sm:$0xf] }
 0x1b5   : > { %v4611_v12 = vld [vmem:[#allocation2 + $0xd8] ss:$8 sps:$4 sm:$0xff]   ;;  %v4613_v16 = vld [vmem:[#allocation2 + $0xe8] ss:$8 sps:$4 sm:$0xff]   ;;  %4270 = vmatprep.subr.bf16.mxu1 %v4624_v2  ;;  %v2351_v37 = vrot.slane %v2350_v36, 4  ;;  %v2358_v57 = vshrl.u32 %v2317_v62, 16 }
 0x1b6   : > { %4298 = vmatprep.mubr.bf16.mxu0 %v4611_v12  ;;  %v2342_v39 = vsel %vm5301_vm8, %v2337_v34, %v2341_v35  ;;  %v4641_v53 = vld [vmem:[#allocation9 + $0x158] sm:$0xff]   ;;  %v2361_v59 = vshll.u32 %v2317_v62, 16  ;;  %v2372_v60 = vshrl.u32 %v2319_v48, 16  ;;  %v2375_v0 = vshll.u32 %v2319_v48, 16  ;;  %v4633_v54 = vld [vmem:[#allocation9 + $0x180] sm:$0xff]   ;;  %v4644_v3 = vld [vmem:[#allocation9 + $0x150] sm:$0xff]  }
 0x1b7   : > { %v4618_v17 = vld [vmem:[#allocation2 + $0xf8] ss:$8 sps:$4 sm:$0xff]   ;;  %4299 = vmatmul.mubr.bf16.vlgmr.msra.gmra.mxu0 %v4613_v16  ;;  %v4620_v27 = vld [vmem:[#allocation2 + $0x108] ss:$8 sps:$4 sm:$0xff]   ;;  %v2356_v42 = vsel %vm5301_vm8, %v2351_v37, %v2355_v38  ;;  %v2386_v25 = vshrl.u32 %v2321_v49, 16  ;;  %v2389_v4 = vshll.u32 %v2321_v49, 16 }
 0x1b8   : > { %4331 = vmatpush3.bf16.msra.mxu0 %v4612_v5  ;;  %4302 = vmatprep.mubr.bf16.mxu0 %v4618_v17  ;;  %v3868_v1 = vcombine.low %v2342_v39, %v2356_v42  ;;  %v2400_v5 = vshrl.u32 %v2323_v56, 16  ;;  %v2403_v61 = vshll.u32 %v2323_v56, 16  ;;  %v2986_v6 = vld [vmem:[#allocation2 + $0x14] sm:$0x1]  ;;  %v3016_v8 = vrot.slane %v3014_v55, 4  ;;  %v4637_v17 = vld [vmem:[#allocation9 + $0x238] sm:$0xff]  }
 0x1b9   : > { %4332 = vmatprep.subr.bf16.mxu0 %v4615_v7  ;;  %4271 = vmatpush3.bf16.msra.mxu1 %v4624_v2  ;;  %v3002_v2 = vrot.slane %v3000_v50, 4  ;;  %v3019_v13 = vrot.slane %v3017_v46, 5  ;;  %v2318_v10 = vld [vmem:[#allocation2 + $0xa4] sm:$0x1]  ;;  %v2360_v11 = vrot.slane %v2358_v57, 4  ;;  %v2363_v12 = vrot.slane %v2361_v59, 5 }
 0x1ba   : > { %4272 = vmatprep.subr.bf16.mxu1 %v4626_v15  ;;  %v2377_v16 = vrot.slane %v2375_v0, 5  ;;  %v2325_v19 = vld [vmem:[#allocation2 + $0xc0] sm:$0xf]  ;;  %v2388_v20 = vrot.slane %v2386_v25, 4  ;;  %v2391_v21 = vrot.slane %v2389_v4, 5  ;;  %v2402_v22 = vrot.slane %v2400_v5, 4 }
 0x1bb   : > { %v2327_v24 = vld [vmem:[#allocation2 + $0xc8] sm:$0xf]  ;;  %v2322_v29 = vld [vmem:[#allocation2 + $0xb4] sm:$0x1]  ;;  %v2324_v30 = vld [vmem:[#allocation2 + $0xbc] sm:$0x1]  ;;  %v3020_v47 = vor.u32 %v3019_v13, %v3016_v8 }
 0x1bc   : > { %4333 = vmatpush3.bf16.msra.mxu0 %v4615_v7  ;;  %v3005_v7 = vrot.slane %v3003_v51, 5  ;;  %v2984_v36 = vld [vmem:[#allocation2 + $0xc] sm:$0x1]  ;;  %v2417_v34 = vshll.u32 %v2325_v19, 16  ;;  %v2428_v35 = vshrl.u32 %v2327_v24, 16  ;;  %v2431_v37 = vshll.u32 %v2327_v24, 16 }
 0x1bd   : > { %4334 = vmatprep.subr.bf16.mxu0 %v4619_v18  ;;  %4273 = vmatpush3.bf16.msra.mxu1 %v4626_v15  ;;  %v2374_v15 = vrot.slane %v2372_v60, 4  ;;  %v4636_v38 = vld [vmem:[#allocation2 + $0x18] ss:$8 sps:$4 sm:$0xff]   ;;  %v2395_v39 = vshll.u32 %v2322_v29, 16  ;;  %v3009_v52 = vshll.u32 %v2984_v36, 16  ;;  %v4643_v48 = vld [vmem:[#allocation9 + $0x228] sm:$0xff]  }
 0x1be   : > { %4306 = vmatprep.subr.bf16.mxu1 %v4629_v58  ;;  %v3006_v26 = vor.u32 %v3005_v7, %v3002_v2  ;;  %v4648_v49 = vld [vmem:[#allocation9 + $0x140] sm:$0xff]   ;;  %v2430_v57 = vrot.slane %v2428_v35, 4  ;;  %v2433_v59 = vrot.slane %v2431_v37, 5  ;;  %v2328_v25 = vld [vmem:[#allocation2 + $0xcc] sm:$0x1] }
 0x1bf   : > { %4303 = vmatmul.mubr.bf16.gmra.mxu0 %v4620_v27  ;;  %v3023_v27 = vshll.u32 %v2986_v6, 16  ;;  %v2326_v46 = vld [vmem:[#allocation2 + $0xc4] sm:$0x1]  ;;  %v2397_v0 = vrot.slane %v2395_v39, 5  ;;  %v3011_v4 = vrot.slane %v3009_v52, 5  ;;  %v4650_v6 = vld [vmem:[#allocation9 + $0x1f8] sm:$0xff]  }
 0x1c0   : > { %4335 = vmatpush3.bf16.msra.mxu0 %v4619_v18  ;;  %4346 = vmatprep.mubr.bf16.mxu0 %v4622_v9  ;;  %v2320_v18 = vld [vmem:[#allocation2 + $0xac] sm:$0x1]  ;;  %v3007_v45 = vrot.slane %v3006_v26, 4  ;;  %v2423_v2 = vshll.u32 %v2326_v46, 16  ;;  %v2434_v13 = vor.u32 %v2433_v59, %v2430_v57  ;;  %v2993_v29 = vld [vmem:[#allocation2 + $0x30] sm:$0xf] }
 0x1c1   : > { %4336 = vmatprep.subr.bf16.mxu0 %v4623_v28  ;;  %4275 = vmatmul.mubr.bf16.vlgmr.msra.gmra.mxu1 %v4628_v31  ;;  %v4646_v9 = vld [vmem:[#allocation9 + $0x148] sm:$0xff]   ;;  %v2364_v31 = vor.u32 %v2363_v12, %v2360_v11  ;;  %v4642_v11 = vld [vmem:[#allocation2 + $0x38] ss:$8 sps:$4 sm:$0xff]   ;;  %v2994_v46 = vld [vmem:[#allocation2 + $0x34] sm:$0x1] }
 0x1c2   : > { %4278 = vmatprep.mubr.bf16.mxu1 %v4630_v33  ;;  %4307 = vmatpush3.bf16.msra.mxu1 %v4629_v58  ;;  %v2405_v58 = vrot.slane %v2403_v61, 5  ;;  %v2381_v33 = vshll.u32 %v2320_v18, 16  ;;  %v3012_v12 = vsel %vm5301_vm8, %v3007_v45, %v3011_v4  ;;  %v2987_v36 = vld [vmem:[#allocation2 + $0x18] sm:$0xf]  ;;  %v2988_v59 = vld [vmem:[#allocation2 + $0x1c] sm:$0x1] }
 0x1c3   : > { %4308 = vmatprep.subr.bf16.mxu1 %v4632_v32  ;;  %v2365_v50 = vrot.slane %v2364_v31, 4  ;;  %v2995_v45 = vld [vmem:[#allocation2 + $0x38] sm:$0xf] }
 0x1c4   : > { %4337 = vmatpush3.bf16.msra.mxu0 %v4623_v28  ;;  %v2367_v28 = vshll.u32 %v2318_v10, 16  ;;  %v2406_v42 = vor.u32 %v2405_v58, %v2402_v22  ;;  %v2383_v55 = vrot.slane %v2381_v33, 5  ;;  %v2437_v10 = vshll.u32 %v2328_v25, 16  ;;  %v2991_v58 = vld [vmem:[#allocation2 + $0x28] sm:$0xf] }
 0x1c5   : > { %4338 = vmatprep.subr.bf16.mxu0 %v4625_v23  ;;  %v2425_v22 = vrot.slane %v2423_v2, 5  ;;  %v3056_v31 = vshrl.u32 %v2991_v58, 16  ;;  %v3059_v33 = vshll.u32 %v2991_v58, 16  ;;  %v2998_v58 = vld [vmem:[#allocation2 + $0x44] sm:$0x1] }
 0x1c6   : > { %4309 = vmatpush3.bf16.msra.mxu1 %v4632_v32  ;;  %v2378_v32 = vor.u32 %v2377_v16, %v2374_v15  ;;  %v2369_v62 = vrot.slane %v2367_v28, 5  ;;  %v4645_v15 = vld [vmem:[#allocation9 + $0x220] sm:$0xff]   ;;  %v2439_v28 = vrot.slane %v2437_v10, 5 }
 0x1c7   : > { %4310 = vmatprep.subr.bf16.mxu1 %v4635_v40 }
 0x1c8   : > { %4339 = vmatpush3.bf16.msra.mxu0 %v4625_v23  ;;  %v2414_v23 = vshrl.u32 %v2325_v19, 16  ;;  %v2379_v51 = vrot.slane %v2378_v32, 4  ;;  %v2370_v61 = vsel %vm5301_vm8, %v2365_v50, %v2369_v62  ;;  %v2989_v19 = vld [vmem:[#allocation2 + $0x20] sm:$0xf]  ;;  %v4654_v32 = vld [vmem:[#allocation9 + $0x1e8] sm:$0xff]  }
 0x1c9   : > { %4340 = vmatprep.subr.bf16.mxu0 %v4627_v41  ;;  %4279 = vmatmul.mubr.bf16.gmra.mxu1 %v4634_v44  ;;  %v4638_v44 = vld [vmem:[#allocation2 + $0x28] ss:$8 sps:$4 sm:$0xff]  }
 0x1ca   : > { %4311 = vmatpush3.bf16.msra.mxu1 %v4635_v40  ;;  %4322 = vmatprep.mubr.bf16.mxu1 %v3868_v1  ;;  %v4640_v40 = vld [vmem:[#allocation9 + $0x230] sm:$0xff]   ;;  %v3025_v1 = vrot.slane %v3023_v27, 5  ;;  %v2416_v56 = vrot.slane %v2414_v23, 4  ;;  %v2384_v7 = vsel %vm5301_vm8, %v2379_v51, %v2383_v55  ;;  %v2435_v27 = vrot.slane %v2434_v13, 4  ;;  %v2992_v55 = vld [vmem:[#allocation2 + $0x2c] sm:$0x1] }
 0x1cb   : > { %4312 = vmatprep.subr.bf16.mxu1 %v4639_v43  ;;  %v3070_v23 = vshrl.u32 %v2993_v29, 16  ;;  %v3065_v4 = vshll.u32 %v2992_v55, 16  ;;  %v3037_v13 = vshll.u32 %v2988_v59, 16  ;;  %v4672_v55 = vld [vmem:[#allocation10 + $0x18] sm:$0xff]   ;;  %v5480_v59 = vld [vmem:[#allocation12 + $0x10] sm:$0xff]  }
 0x1cc   : > { %4341 = vmatpush3.bf16.msra.mxu0 %v4627_v41  ;;  %v2392_v41 = vor.u32 %v2391_v21, %v2388_v20  ;;  %v3869_v20 = vcombine.low %v2370_v61, %v2384_v7  ;;  %v4652_v21 = vld [vmem:[#allocation9 + $0x1f0] sm:$0xff]   ;;  %v2440_v37 = vsel %vm5301_vm8, %v2435_v27, %v2439_v28  ;;  %v3079_v61 = vshll.u32 %v2994_v46, 16  ;;  %5698 = vst [vmem:[#allocation23_spill] sm:$0xff] %v5480_v59 }
 0x1cd   : > { %4342 = vmatprep.subr.bf16.mxu0 %v4631_v14  ;;  %v3072_v62 = vrot.slane %v3070_v23, 4  ;;  %v3039_v27 = vrot.slane %v3037_v13, 5 }
 0x1ce   : > { %4313 = vmatpush3.bf16.msra.mxu1 %v4639_v43  ;;  %v2409_v43 = vshll.u32 %v2324_v30, 16  ;;  %v2393_v60 = vrot.slane %v2392_v41, 4  ;;  %v4647_v30 = vld [vmem:[#allocation9 + $0x218] sm:$0xff]   ;;  %v4649_v41 = vld [vmem:[#allocation9 + $0x210] sm:$0xff]  }
 0x1cf   : > { %4314 = vmatprep.subr.bf16.mxu1 %v4641_v53 }
 0x1d0   : > { %4343 = vmatpush3.bf16.msra.mxu0 %v4631_v14  ;;  %v3021_v14 = vrot.slane %v3020_v47, 4  ;;  %v2398_v16 = vsel %vm5301_vm8, %v2393_v60, %v2397_v0  ;;  %v3042_v47 = vshrl.u32 %v2989_v19, 16  ;;  %v3084_v60 = vshrl.u32 %v2995_v45, 16 }
 0x1d1   : > { %4344 = vmatprep.subr.bf16.mxu0 %v4633_v54  ;;  %v3087_v0 = vshll.u32 %v2995_v45, 16  ;;  %v4662_v45 = vld [vmem:[#allocation2 + $0x70] ss:$8 sps:$4 sm:$0xff]  }
 0x1d2   : > { %4315 = vmatpush3.bf16.msra.mxu1 %v4641_v53  ;;  %v2419_v53 = vrot.slane %v2417_v34, 5  ;;  %v3026_v5 = vsel %vm5301_vm8, %v3021_v14, %v3025_v1  ;;  %v3073_v34 = vshll.u32 %v2993_v29, 16  ;;  %v3044_v39 = vrot.slane %v3042_v47, 4  ;;  %v4656_v14 = vld [vmem:[#allocation9 + $0x1e0] sm:$0xff]  }
 0x1d3   : > { %4316 = vmatprep.subr.bf16.mxu1 %v4644_v3  ;;  %v3904_v18 = vcombine.low %v3012_v12, %v3026_v5  ;;  %v3061_v1 = vrot.slane %v3059_v33, 5  ;;  %v2996_v12 = vld [vmem:[#allocation2 + $0x3c] sm:$0x1]  ;;  %v3107_v47 = vshll.u32 %v2998_v58, 16 }
 0x1d4   : > { %4345 = vmatpush3.bf16.msra.mxu0 %v4633_v54  ;;  %v2407_v54 = vrot.slane %v2406_v42, 4  ;;  %v2420_v8 = vor.u32 %v2419_v53, %v2416_v56  ;;  %v4651_v56 = vld [vmem:[#allocation9 + $0x208] sm:$0xff]   ;;  %v2990_v53 = vld [vmem:[#allocation2 + $0x24] sm:$0x1]  ;;  %v3093_v28 = vshll.u32 %v2996_v12, 16 }
 0x1d5   : > { %4378 = vmatprep.subr.bf16.mxu0 %v4637_v17  ;;  %v3051_v7 = vshll.u32 %v2990_v53, 16  ;;  %v4674_v53 = vld [vmem:[#allocation10 + $0x10] sm:$0xff]  }
 0x1d6   : > { %4317 = vmatpush3.bf16.msra.mxu1 %v4644_v3  ;;  %v2411_v3 = vrot.slane %v2409_v43, 5  ;;  %v2421_v26 = vrot.slane %v2420_v8, 4  ;;  %v4655_v43 = vld [vmem:[#allocation2 + $0x50] ss:$8 sps:$4 sm:$0xff]   ;;  %v4653_v8 = vld [vmem:[#allocation9 + $0x200] sm:$0xff]  }
 0x1d7   : > { %4347 = vmatmul.mubr.bf16.vlgmr.msra.gmra.mxu0 %v4636_v38  ;;  %4318 = vmatprep.subr.bf16.mxu1 %v4646_v9  ;;  %v3028_v38 = vshrl.u32 %v2987_v36, 16 }
 0x1d8   : > { %4350 = vmatprep.mubr.bf16.mxu0 %v4638_v44  ;;  %4379 = vmatpush3.bf16.msra.mxu0 %v4637_v17  ;;  %v2412_v17 = vsel %vm5301_vm8, %v2407_v54, %v2411_v3  ;;  %v2426_v35 = vsel %vm5301_vm8, %v2421_v26, %v2425_v22  ;;  %v3058_v44 = vrot.slane %v3056_v31, 4  ;;  %v3081_v22 = vrot.slane %v3079_v61, 5  ;;  %v5494_v61 = vld [vmem:[#allocation12] sm:$0xff]  }
 0x1d9   : > { %4380 = vmatprep.subr.bf16.mxu0 %v4640_v40  ;;  %v3870_v24 = vcombine.low %v2398_v16, %v2412_v17  ;;  %v3871_v52 = vcombine.low %v2426_v35, %v2440_v37  ;;  %v3030_v50 = vrot.slane %v3028_v38, 4  ;;  %v3089_v16 = vrot.slane %v3087_v0, 5  ;;  %5700 = vst [vmem:[#allocation25_spill] sm:$0xff] %v5494_v61 }
 0x1da   : > { %4319 = vmatpush3.bf16.msra.mxu1 %v4646_v9  ;;  %v3045_v9 = vshll.u32 %v2989_v19, 16  ;;  %v3062_v25 = vor.u32 %v3061_v1, %v3058_v44  ;;  %v3053_v26 = vrot.slane %v3051_v7, 5  ;;  %v4661_v44 = vld [vmem:[#allocation2 + $0x60] ss:$8 sps:$4 sm:$0xff]   ;;  %v4664_v1 = vld [vmem:[#allocation10 + $0x38] sm:$0xff]   ;;  %v3928_v7 = vld [vmem:[%s5108_s28 + $0xd0] sm:$0xff] }
 0x1db   : > { %4320 = vmatprep.subr.bf16.mxu1 %v4648_v49 }
 0x1dc   : > { %4381 = vmatpush3.bf16.msra.mxu0 %v4640_v40  ;;  %v3031_v40 = vshll.u32 %v2987_v36, 16  ;;  %v3047_v42 = vrot.slane %v3045_v9, 5  ;;  %v3063_v19 = vrot.slane %v3062_v25, 4  ;;  %v3926_v25 = vld [vmem:[%s5108_s28 + $0xc0] sm:$0xff] }
 0x1dd   : > { %4382 = vmatprep.subr.bf16.mxu0 %v4643_v48 }
 0x1de   : > { %4321 = vmatpush3.bf16.msra.mxu1 %v4648_v49  ;;  %v2997_v49 = vld [vmem:[#allocation2 + $0x40] sm:$0xf]  ;;  %v3033_v51 = vrot.slane %v3031_v40, 5  ;;  %v3048_v57 = vor.u32 %v3047_v42, %v3044_v39  ;;  %v3109_v40 = vrot.slane %v3107_v47, 5 }
 0x1df   : > { %4351 = vmatmul.mubr.bf16.gmra.mxu0 %v4642_v11  ;;  %4354 = vmatprep.subr.bf16.mxu1 %v4650_v6  ;;  %v3098_v54 = vshrl.u32 %v2997_v49, 16  ;;  %v3101_v3 = vshll.u32 %v2997_v49, 16  ;;  %v4658_v11 = vld [vmem:[#allocation9 + $0x1d0] sm:$0xff]   ;;  %v5464_v49 = vld [vmem:[#allocation12 + $0x28] sm:$0xff]  }
 0x1e0   : > { %4383 = vmatpush3.bf16.msra.mxu0 %v4643_v48  ;;  %4394 = vmatprep.mubr.bf16.mxu0 %v3904_v18  ;;  %v3075_v48 = vrot.slane %v3073_v34, 5  ;;  %v3034_v2 = vor.u32 %v3033_v51, %v3030_v50  ;;  %v3049_v10 = vrot.slane %v3048_v57, 4  ;;  %v3095_v34 = vrot.slane %v3093_v28, 5  ;;  %5695 = vst [vmem:[#allocation20_spill] sm:$0xff] %v5464_v49  ;;  %v4670_v50 = vld [vmem:[#allocation10 + $0x20] sm:$0xff]  }
 0x1e1   : > { %4384 = vmatprep.subr.bf16.mxu0 %v4645_v15  ;;  %4323 = vmatmul.mubr.bf16.vlgmr.msra.gmra.mxu1 %v3869_v20  ;;  %v3100_v17 = vrot.slane %v3098_v54, 4  ;;  %v3103_v18 = vrot.slane %v3101_v3, 5  ;;  %v3067_v20 = vrot.slane %v3065_v4, 5  ;;  %v5468_v51 = vld [vmem:[#allocation12 + $0x20] sm:$0xff]   ;;  %v5486_v54 = vld [vmem:[#allocation12 + $0x8] sm:$0xff]  }
 0x1e2   : > { %4326 = vmatprep.mubr.bf16.mxu1 %v3870_v24  ;;  %4355 = vmatpush3.bf16.msra.mxu1 %v4650_v6  ;;  %v3076_v5 = vor.u32 %v3075_v48, %v3072_v62  ;;  %v4657_v6 = vld [vmem:[#allocation9 + $0x1d8] sm:$0xff]   ;;  %v3035_v24 = vrot.slane %v3034_v2, 4  ;;  %v3054_v29 = vsel %vm5301_vm8, %v3049_v10, %v3053_v26  ;;  %v5461_v48 = vld [vmem:[#allocation12 + $0x30] sm:$0xff]   ;;  %5696 = vst [vmem:[#allocation21_spill] sm:$0xff] %v5468_v51  ;;  %5699 = vst [vmem:[#allocation24_spill] sm:$0xff] %v5486_v54 }
 0x1e3   : > { %4356 = vmatprep.subr.bf16.mxu1 %v4652_v21  ;;  %v3104_v36 = vor.u32 %v3103_v18, %v3100_v17  ;;  %v3068_v9 = vsel %vm5301_vm8, %v3063_v19, %v3067_v20  ;;  %v5457_v62 = vld [vmem:[#allocation12 + $0x38] sm:$0xff]   ;;  %5694 = vst [vmem:[#allocation19_spill] sm:$0xff] %v5461_v48  ;;  %v4678_v3 = vld [vmem:[#allocation10] sm:$0xff]   ;;  %v3927_v4 = vld [vmem:[%s5108_s28 + $0xc8] sm:$0xff] }
 0x1e4   : > { %4385 = vmatpush3.bf16.msra.mxu0 %v4645_v15  ;;  %v3086_v15 = vrot.slane %v3084_v60, 4  ;;  %v3040_v33 = vsel %vm5301_vm8, %v3035_v24, %v3039_v27  ;;  %5693 = vst [vmem:[#allocation18_spill] sm:$0xff] %v5457_v62  ;;  %v4676_v60 = vld [vmem:[#allocation10 + $0x8] sm:$0xff]  }
 0x1e5   : > { %4386 = vmatprep.subr.bf16.mxu0 %v4647_v30  ;;  %v3905_v23 = vcombine.low %v3040_v33, %v3054_v29  ;;  %v3105_v38 = vrot.slane %v3104_v36, 4 }
 0x1e6   : > { %4357 = vmatpush3.bf16.msra.mxu1 %v4652_v21  ;;  %v3077_v21 = vrot.slane %v3076_v5, 4 }
 0x1e7   : > { %4358 = vmatprep.subr.bf16.mxu1 %v4654_v32  ;;  %v3110_v42 = vsel %vm5301_vm8, %v3105_v38, %v3109_v40 }
 0x1e8   : > { %4387 = vmatpush3.bf16.msra.mxu0 %v4647_v30  ;;  %v3090_v30 = vor.u32 %v3089_v16, %v3086_v15  ;;  %v3082_v31 = vsel %vm5301_vm8, %v3077_v21, %v3081_v22 }
 0x1e9   : > { %4388 = vmatprep.subr.bf16.mxu0 %v4649_v41  ;;  %4327 = vmatmul.mubr.bf16.gmra.mxu1 %v3871_v52  ;;  %v3906_v35 = vcombine.low %v3068_v9, %v3082_v31  ;;  %v4663_v52 = vld [vmem:[#allocation2 + $0x80] ss:$8 sps:$4 sm:$0xff]  }
 0x1ea   : > { %4359 = vmatpush3.bf16.msra.mxu1 %v4654_v32  ;;  %4370 = vmatprep.mubr.bf16.mxu1 %v4655_v43  ;;  %v4659_v32 = vld [vmem:[#allocation9 + $0x1c8] sm:$0xff]   ;;  %v3091_v37 = vrot.slane %v3090_v30, 4 }
 0x1eb   : > { %4360 = vmatprep.subr.bf16.mxu1 %v4656_v14 }
 0x1ec   : > { %4389 = vmatpush3.bf16.msra.mxu0 %v4649_v41  ;;  %v4660_v41 = vld [vmem:[#allocation9 + $0x1c0] sm:$0xff]   ;;  %v3096_v39 = vsel %vm5301_vm8, %v3091_v37, %v3095_v34 }
 0x1ed   : > { %4390 = vmatprep.subr.bf16.mxu0 %v4651_v56  ;;  %v3907_v43 = vcombine.low %v3096_v39, %v3110_v42 }
 0x1ee   : > { %4361 = vmatpush3.bf16.msra.mxu1 %v4656_v14  ;;  %v4668_v14 = vld [vmem:[#allocation10 + $0x28] sm:$0xff]  }
 0x1ef   : > { %4362 = vmatprep.subr.bf16.mxu1 %v4657_v6 }
 0x1f0   : > { %4391 = vmatpush3.bf16.msra.mxu0 %v4651_v56  ;;  %v5474_v56 = vld [vmem:[#allocation12 + $0x18] sm:$0xff]  }
 0x1f1   : > { %4392 = vmatprep.subr.bf16.mxu0 %v4653_v8  ;;  %5697 = vst [vmem:[#allocation22_spill] sm:$0xff] %v5474_v56 }
 0x1f2   : > { %4363 = vmatpush3.bf16.msra.mxu1 %v4657_v6  ;;  %v3461_v6 = vpack.c.bf16 %v3927_v4, %v3926_v25 }
 0x1f3   : > { %4364 = vmatprep.subr.bf16.mxu1 %v4658_v11 }
 0x1f4   : > { %4393 = vmatpush3.bf16.msra.mxu0 %v4653_v8  ;;  %v3929_v8 = vld [vmem:[%s5108_s28 + $0xd8] sm:$0xff] }
 0x1f5   : > { %4426 = vmatprep.subr.bf16.mxu0 %v5457_v62 }
 0x1f6   : > { %4365 = vmatpush3.bf16.msra.mxu1 %v4658_v11  ;;  %v3462_v11 = vpack.c.bf16 %v3929_v8, %v3928_v7 }
 0x1f7   : > { %4395 = vmatmul.mubr.bf16.vlgmr.msra.gmra.mxu0 %v3905_v23  ;;  %4366 = vmatprep.subr.bf16.mxu1 %v4659_v32 }
 0x1f8   : > { %4398 = vmatprep.mubr.bf16.mxu0 %v3906_v35  ;;  %4427 = vmatpush3.bf16.msra.mxu0 %v5457_v62 }
 0x1f9   : > { %4428 = vmatprep.subr.bf16.mxu0 %v5461_v48 }
 0x1fa   : > { %4367 = vmatpush3.bf16.msra.mxu1 %v4659_v32 }
 0x1fb   : > { %4368 = vmatprep.subr.bf16.mxu1 %v4660_v41 }
 0x1fc   : > { %4429 = vmatpush3.bf16.msra.mxu0 %v5461_v48 }
 0x1fd   : > { %4430 = vmatprep.subr.bf16.mxu0 %v5464_v49 }
 0x1fe   : > { %4369 = vmatpush3.bf16.msra.mxu1 %v4660_v41 }
 0x1ff   : > { %4399 = vmatmul.mubr.bf16.gmra.mxu0 %v3907_v43  ;;  %4402 = vmatprep.subr.bf16.mxu1 %v4664_v1 }
 0x200   : > { %4431 = vmatpush3.bf16.msra.mxu0 %v5464_v49  ;;  %4442 = vmatprep.mubr.bf16.mxu0 %v3461_v6 }
 0x201   : > { %4371 = vmatmul.mubr.bf16.vlgmr.msra.gmra.mxu1 %v4661_v44  ;;  %4432 = vmatprep.subr.bf16.mxu0 %v5468_v51 }
 0x202   : > { %4374 = vmatprep.mubr.bf16.mxu1 %v4662_v45  ;;  %4403 = vmatpush3.bf16.msra.mxu1 %v4664_v1 }
 0x203   : > { %4404 = vmatprep.subr.bf16.mxu1 %v4666_v63 }
 0x204   : > { %4433 = vmatpush3.bf16.msra.mxu0 %v5468_v51 }
 0x205   : > { %4434 = vmatprep.subr.bf16.mxu0 %v5474_v56 }
 0x206   : > { %4405 = vmatpush3.bf16.msra.mxu1 %v4666_v63 }
 0x207   : > { %4406 = vmatprep.subr.bf16.mxu1 %v4668_v14 }
 0x208   : > { %4435 = vmatpush3.bf16.msra.mxu0 %v5474_v56 }
 0x209   : > { %4375 = vmatmul.mubr.bf16.gmra.mxu1 %v4663_v52  ;;  %4436 = vmatprep.subr.bf16.mxu0 %v5480_v59 }
 0x20a   : > { %4407 = vmatpush3.bf16.msra.mxu1 %v4668_v14 }
 0x20b   : > { %4408 = vmatprep.subr.bf16.mxu1 %v4670_v50 }
 0x20c   : > { %4437 = vmatpush3.bf16.msra.mxu0 %v5480_v59 }
 0x20d   : > { %4438 = vmatprep.subr.bf16.mxu0 %v5486_v54 }
 0x20e   : > { %4409 = vmatpush3.bf16.msra.mxu1 %v4670_v50 }
 0x20f   : > { %4410 = vmatprep.subr.bf16.mxu1 %v4672_v55 }
 0x210   : > { %4439 = vmatpush3.bf16.msra.mxu0 %v5486_v54 }
 0x211   : > { %4440 = vmatprep.subr.bf16.mxu0 %v5494_v61 }
 0x212   : > { %4411 = vmatpush3.bf16.msra.mxu1 %v4672_v55 }
 0x213   : > { %4412 = vmatprep.subr.bf16.mxu1 %v4674_v53 }
 0x214   : > { %4441 = vmatpush3.bf16.msra.mxu0 %v5494_v61 }
 0x216   : > { %4413 = vmatpush3.bf16.msra.mxu1 %v4674_v53 }
 0x217   : > { %4414 = vmatprep.subr.bf16.mxu1 %v4676_v60  ;;  %4443 = vmatmul.mubr.bf16.vlgmr.msra.gmra.mxu0 %v3462_v11 }
 0x21a   : > { %4415 = vmatpush3.bf16.msra.mxu1 %v4676_v60 }
 0x21b   : > { %4416 = vmatprep.subr.bf16.mxu1 %v4678_v3 }
 0x21e   : > { %4417 = vmatpush3.bf16.msra.mxu1 %v4678_v3 }
 0x21f   : > { %4450 = vmatprep.subr.bf16.mxu1 %v5457_v62 }
 0x23e   : > { %v5471_v46 = vpop.f32.mrf.mxu1 }
 0x240   : > { %v5477_v57 = vpop.f32.mrf.mxu1 }
 0x242   : > { %v5483_v0 = vpop.f32.mrf.mxu1 }
 0x244   : > { %v5491_v5 = vpop.f32.mrf.mxu1 }
 0x248   : > { %v5496_v2 = vpop.f32.mrf.mxu1 }
 0x24a   : > { %v5502_v10 = vpop.f32.mrf.mxu1 }
 0x24c   : > { %v5506_v15 = vpop.f32.mrf.mxu1 }
 0x24e   : > { %v5508_v17 = vpop.f32.mrf.mxu1 }
 0x255   : > { %v4252_v13 = vpop.f32.mrf.mxu0 }
 0x257   : > { %v1894_v12 = vpop.f32.mrf.mxu0 }
 0x259   : > { %v4253_v16 = vpop.f32.mrf.mxu0 }
 0x25b   : > { %v1897_v19 = vpop.f32.mrf.mxu0 }
 0x25e   : > { %v4228_v18 = vpop.f32.mrf.mxu1 }
 0x25f   : > { %v1626_v25 = vadd.f32 %v4228_v18, %v5471_v46 }
 0x260   : > { %v1593_v20 = vpop.f32.mrf.mxu1 }
 0x261   : > { %v1624_v6 = vadd.f32 %v1593_v20, %v5477_v57  ;;  %v1927_v11 = vadd.f32 %v4252_v13, %v1626_v25 }
 0x262   : > { %v4229_v22 = vpop.f32.mrf.mxu1 }
 0x263   : > { %v1627_v8 = vadd.f32 %v4229_v22, %v5483_v0  ;;  %v1925_v59 = vadd.f32 %v1894_v12, %v1624_v6 }
 0x264   : > { %v1596_v24 = vpop.f32.mrf.mxu1 }
 0x265   : > { %v1625_v54 = vadd.f32 %v1596_v24, %v5491_v5  ;;  %v1928_v62 = vadd.f32 %v4253_v16, %v1627_v8 }
 0x266   : > { %v4232_v27 = vpop.f32.mrf.mxu1 }
 0x267   : > { %v1630_v46 = vadd.f32 %v4232_v27, %v5496_v2  ;;  %v1926_v20 = vadd.f32 %v1897_v19, %v1625_v54 }
 0x268   : > { %v1609_v29 = vpop.f32.mrf.mxu1 }
 0x269   : > { %v1628_v18 = vadd.f32 %v1609_v29, %v5502_v10 }
 0x26a   : > { %v4233_v36 = vpop.f32.mrf.mxu1 }
 0x26b   : > { %v1631_v25 = vadd.f32 %v4233_v36, %v5506_v15 }
 0x26c   : > { %v1612_v9 = vpop.f32.mrf.mxu1 }
 0x26e   : > { %v4256_v21 = vpop.f32.mrf.mxu0 }
 0x26f   : > { %v1931_v5 = vadd.f32 %v4256_v21, %v1630_v46 }
 0x270   : > { %v1910_v58 = vpop.f32.mrf.mxu0 }
 0x271   : > { %v1929_v12 = vadd.f32 %v1910_v58, %v1628_v18 }
 0x272   : > { %v5510_v26 = vpop.f32.mrf.mxu0 }
 0x274   : > { %v5512_v28 = vpop.f32.mrf.mxu0 }
 0x277   : > { %v4300_v30 = vpop.f32.mrf.mxu0 }
 0x279   : > { %v2266_v47 = vpop.f32.mrf.mxu0 }
 0x27b   : > { %v4301_v31 = vpop.f32.mrf.mxu0 }
 0x27d   : > { %v2269_v33 = vpop.f32.mrf.mxu0 }
 0x27f   : > { %v5514_v34 = vpop.f32.mrf.mxu0 }
 0x281   : > { %v4276_v32 = vpop.f32.mrf.mxu1  ;;  %v5516_v37 = vpop.f32.mrf.mxu0 }
 0x282   : > { %v2113_v56 = vadd.f32 %v4276_v32, %v1927_v11 }
 0x283   : > { %v2080_v23 = vpop.f32.mrf.mxu1  ;;  %v5518_v40 = vpop.f32.mrf.mxu0 }
 0x284   : > { %v2111_v48 = vadd.f32 %v2080_v23, %v1925_v59  ;;  %v1629_v59 = vadd.f32 %v1612_v9, %v5508_v17 }
 0x285   : > { %v4277_v35 = vpop.f32.mrf.mxu1  ;;  %v5520_v39 = vpop.f32.mrf.mxu0 }
 0x286   : > { %v2114_v57 = vadd.f32 %v4277_v35, %v1928_v62  ;;  %v2297_v22 = vadd.f32 %v2266_v47, %v2111_v48  ;;  %v1930_v15 = vadd.f32 %v5512_v28, %v1629_v59 }
 0x287   : > { %v2083_v38 = vpop.f32.mrf.mxu1 }
 0x288   : > { %v2112_v13 = vadd.f32 %v2083_v38, %v1926_v20  ;;  %v2300_v23 = vadd.f32 %v4301_v31, %v2114_v57 }
 0x289   : > { %v4280_v41 = vpop.f32.mrf.mxu1 }
 0x28a   : > { %v2117_v2 = vadd.f32 %v4280_v41, %v1931_v5  ;;  %v2298_v62 = vadd.f32 %v2269_v33, %v2112_v13 }
 0x28b   : > { %v2096_v42 = vpop.f32.mrf.mxu1 }
 0x28c   : > { %v2115_v27 = vadd.f32 %v2096_v42, %v1929_v12  ;;  %v2303_v36 = vadd.f32 %v5514_v34, %v2117_v2 }
 0x28d   : > { %v4281_v44 = vpop.f32.mrf.mxu1 }
 0x28e   : > { %v2301_v17 = vadd.f32 %v5516_v37, %v2115_v27  ;;  %v3916_v37 = vld [vmem:[%s5644_s4] ss:$0 sm:$0xff] }
 0x28f   : > { %v2099_v52 = vpop.f32.mrf.mxu1 }
 0x290   : > { %v2116_v31 = vadd.f32 %v2099_v52, %v1930_v15  ;;  %v5705_v15 = vld [vmem:[#allocation18_spill] sm:$0xff] }
 0x292   : > { %v2302_v34 = vadd.f32 %v5520_v39, %v2116_v31 }
 0x297   : > { %v4348_v43 = vpop.f32.mrf.mxu0 }
 0x299   : > { %v2750_v45 = vpop.f32.mrf.mxu0 }
 0x29b   : > { %v4349_v1 = vpop.f32.mrf.mxu0 }
 0x29d   : > { %v5522_v14 = vpop.f32.mrf.mxu0 }
 0x29f   : > { %v5524_v55 = vpop.f32.mrf.mxu0 }
 0x2a1   : > { %v4324_v63 = vpop.f32.mrf.mxu1  ;;  %v5526_v60 = vpop.f32.mrf.mxu0 }
 0x2a2   : > { %5701 = vst [vmem:[#allocation26_spill] sm:$0xff] %v5526_v60  ;;  %v2299_v60 = vadd.f32 %v4300_v30, %v2113_v56  ;;  %v1932_v56 = vadd.f32 %v5510_v26, %v1631_v25 }
 0x2a3   : > { %v2564_v50 = vpop.f32.mrf.mxu1  ;;  %v5529_v4 = vpop.f32.mrf.mxu0 }
 0x2a4   : > { %5702 = vst [vmem:[#allocation27_spill] sm:$0xff] %v5529_v4  ;;  %v2597_v24 = vadd.f32 %v4324_v63, %v2299_v60  ;;  %v2595_v16 = vadd.f32 %v2564_v50, %v2297_v22  ;;  %v2118_v30 = vadd.f32 %v4281_v44, %v1932_v56 }
 0x2a5   : > { %v4325_v53 = vpop.f32.mrf.mxu1  ;;  %v5533_v61 = vpop.f32.mrf.mxu0 }
 0x2a6   : > { %v2598_v29 = vadd.f32 %v4325_v53, %v2300_v23  ;;  %v2783_v19 = vadd.f32 %v4348_v43, %v2597_v24  ;;  %v2781_v58 = vadd.f32 %v2750_v45, %v2595_v16  ;;  %v2304_v45 = vadd.f32 %v5518_v40, %v2118_v30  ;;  %v3931_v30 = vld [vmem:[%s5108_s28 + $0xe8] sm:$0xff] }
 0x2a7   : > { %v2567_v3 = vpop.f32.mrf.mxu1 }
 0x2a8   : > { %v2596_v21 = vadd.f32 %v2567_v3, %v2298_v62  ;;  %v2784_v38 = vadd.f32 %v4349_v1, %v2598_v29 }
 0x2a9   : > { %v4328_v7 = vpop.f32.mrf.mxu1 }
 0x2aa   : > { %v2601_v33 = vadd.f32 %v4328_v7, %v2303_v36  ;;  %v2782_v28 = vadd.f32 %v5522_v14, %v2596_v21  ;;  %v5706_v21 = vld [vmem:[#allocation19_spill] sm:$0xff] }
 0x2ab   : > { %v2580_v51 = vpop.f32.mrf.mxu1  ;;  %v5704_v13 = vld [vmem:[#allocation27_spill] sm:$0xff] }
 0x2ac   : > { %v2599_v41 = vadd.f32 %v2580_v51, %v2301_v17  ;;  %v2787_v60 = vadd.f32 %v5524_v55, %v2601_v33  ;;  %v5708_v33 = vld [vmem:[#allocation21_spill] sm:$0xff] }
 0x2ad   : > { %v4329_v0 = vpop.f32.mrf.mxu1 }
 0x2ae   : > { %v2602_v53 = vadd.f32 %v4329_v0, %v2304_v45 }
 0x2af   : > { %v2583_v10 = vpop.f32.mrf.mxu1 }
 0x2b0   : > { %v2600_v14 = vadd.f32 %v2583_v10, %v2302_v34  ;;  %v2788_v22 = vadd.f32 %v5704_v13, %v2602_v53  ;;  %v3934_v34 = vld [vmem:[%s5648_s8] ss:$0 sm:$0xff] }
 0x2b2   : > { %v2786_v12 = vadd.f32 %v5533_v61, %v2600_v14 }
 0x2b7   : > { %v4396_v49 = vpop.f32.mrf.mxu0 }
 0x2b9   : > { %v3234_v4 = vpop.f32.mrf.mxu0 }
 0x2bb   : > { %v4397_v32 = vpop.f32.mrf.mxu0 }
 0x2bd   : > { %v3237_v54 = vpop.f32.mrf.mxu0 }
 0x2bf   : > { %v4400_v26 = vpop.f32.mrf.mxu0 }
 0x2c1   : > { %v4372_v48 = vpop.f32.mrf.mxu1  ;;  %v3250_v51 = vpop.f32.mrf.mxu0 }
 0x2c2   : > { %v2969_v47 = vadd.f32 %v4372_v48, %v2783_v19 }
 0x2c3   : > { %v2936_v9 = vpop.f32.mrf.mxu1  ;;  %v4401_v57 = vpop.f32.mrf.mxu0 }
 0x2c4   : > { %v2967_v35 = vadd.f32 %v2936_v9, %v2781_v58  ;;  %v3267_v44 = vadd.f32 %v4396_v49, %v2969_v47  ;;  %v3930_v58 = vld [vmem:[%s5108_s28 + $0xe0] sm:$0xff] }
 0x2c5   : > { %v4373_v42 = vpop.f32.mrf.mxu1  ;;  %v3253_v27 = vpop.f32.mrf.mxu0  ;;  %v3463_v31 = vpack.c.bf16 %v3931_v30, %v3930_v58 }
 0x2c6   : > { %v3265_v43 = vadd.f32 %v3234_v4, %v2967_v35  ;;  %v2970_v63 = vadd.f32 %v4373_v42, %v2784_v38  ;;  %v5703_v4 = vld [vmem:[#allocation26_spill] sm:$0xff]  ;;  %v3298_v8 = vadd.f32 %v3916_v37, %v3267_v44  ;;  %v5707_v35 = vld [vmem:[#allocation20_spill] sm:$0xff] }
 0x2c7   : > { %v2939_v50 = vpop.f32.mrf.mxu1  ;;  %v2785_v6 = vadd.f32 %v5703_v4, %v2599_v41  ;;  %v5709_v41 = vld [vmem:[#allocation22_spill] sm:$0xff]  ;;  %v5711_v42 = vld [vmem:[#allocation24_spill] sm:$0xff] }
 0x2c8   : > { %v3268_v52 = vadd.f32 %v4397_v32, %v2970_v63  ;;  %v2968_v1 = vadd.f32 %v2939_v50, %v2782_v28  ;;  %v3296_v7 = vadd.f32 %v3916_v37, %v3265_v43  ;;  %v3306_v24 = vmax.f32 %v3298_v8, 0.0  ;;  %v3932_v43 = vld [vmem:[%s5108_s28 + $0xf0] sm:$0xff]  ;;  %v3933_v63 = vld [vmem:[%s5108_s28 + $0xf8] sm:$0xff] }
 0x2c9   : > { %v4376_v3 = vpop.f32.mrf.mxu1  ;;  %v5712_v28 = vld [vmem:[#allocation25_spill] sm:$0xff]  ;;  %v3464_v45 = vpack.c.bf16 %v3933_v63, %v3932_v43 }
 0x2ca   : > { %v3299_v40 = vadd.f32 %v3916_v37, %v3268_v52  ;;  %v3266_v49 = vadd.f32 %v3237_v54, %v2968_v1  ;;  %v2973_v11 = vadd.f32 %v4376_v3, %v2787_v60  ;;  %v3304_v25 = vmax.f32 %v3296_v7, 0.0 }
 0x2cb   : > { %v2952_v39 = vpop.f32.mrf.mxu1 }
 0x2cc   : > { %v3297_v46 = vadd.f32 %v3916_v37, %v3266_v49  ;;  %v2971_v18 = vadd.f32 %v2952_v39, %v2785_v6  ;;  %v3307_v20 = vmax.f32 %v3299_v40, 0.0  ;;  %v3271_v32 = vadd.f32 %v4400_v26, %v2973_v11  ;;  %v5710_v26 = vld [vmem:[#allocation23_spill] sm:$0xff] }
 0x2cd   : > { %v4377_v0 = vpop.f32.mrf.mxu1 }
 0x2ce   : > { %v3305_v5 = vmax.f32 %v3297_v46, 0.0  ;;  %v3269_v55 = vadd.f32 %v3250_v51, %v2971_v18  ;;  %v2974_v59 = vadd.f32 %v4377_v0, %v2788_v22  ;;  %v3313_v10 = vpack.c.bf16 %v3307_v20, %v3306_v24 }
 0x2cf   : > { %v2955_v16 = vpop.f32.mrf.mxu1  ;;  %v3302_v54 = vadd.f32 %v3916_v37, %v3271_v32 }
 0x2d0   : > { %v2972_v23 = vadd.f32 %v2955_v16, %v2786_v12  ;;  %v3312_v2 = vpack.c.bf16 %v3305_v5, %v3304_v25  ;;  %v3272_v29 = vadd.f32 %v4401_v57, %v2974_v59  ;;  %v3300_v62 = vadd.f32 %v3916_v37, %v3269_v55 }
 0x2d1   : > { %v3310_v47 = vmax.f32 %v3302_v54, 0.0 }
 0x2d2   : > { %v3270_v56 = vadd.f32 %v3253_v27, %v2972_v23  ;;  %4418 = vmatprep.mubr.bf16.mxu1 %v3312_v2  ;;  %v3303_v19 = vadd.f32 %v3916_v37, %v3272_v29  ;;  %v3308_v36 = vmax.f32 %v3300_v62, 0.0 }
 0x2d3   : > { %4419 = vmatmul.mubr.bf16.vlgmr.msra.gmra.mxu1 %v3313_v10 }
 0x2d4   : > { %v3301_v48 = vadd.f32 %v3916_v37, %v3270_v56  ;;  %4458 = vmatpush3.bf16.msra.mxu1 %v5705_v15  ;;  %v3311_v61 = vmax.f32 %v3303_v19, 0.0  ;;  %v3917_v37 = vld [vmem:[%s5646_s6] ss:$0 sm:$0xff] }
 0x2d5   : > { %4451 = vmatprep.subr.bf16.mxu1 %v5706_v21 }
 0x2d6   : > { %v3309_v17 = vmax.f32 %v3301_v48, 0.0  ;;  %v3315_v38 = vpack.c.bf16 %v3311_v61, %v3310_v47 }
 0x2d7   : > { %v4444_v44 = vpop.f32.mrf.mxu0 }
 0x2d8   : > { %4459 = vmatpush3.bf16.msra.mxu1 %v5706_v21  ;;  %v3314_v9 = vpack.c.bf16 %v3309_v17, %v3308_v36  ;;  %v3579_v1 = vadd.f32 %v4444_v44, %v3934_v34 }
 0x2d9   : > { %4452 = vmatprep.subr.bf16.mxu1 %v5707_v35  ;;  %v3570_v50 = vpop.f32.mrf.mxu0 }
 0x2da   : > { %4422 = vmatprep.mubr.bf16.mxu1 %v3314_v9  ;;  %v3571_v60 = vadd.f32 %v3934_v34, %v3570_v50 }
 0x2db   : > { %4423 = vmatmul.mubr.bf16.gmra.mxu1 %v3315_v38  ;;  %v4445_v52 = vpop.f32.mrf.mxu0 }
 0x2dc   : > { %4460 = vmatpush3.bf16.msra.mxu1 %v5707_v35  ;;  %4446 = vmatprep.mubr.bf16.mxu1 %v3463_v31  ;;  %v3582_v7 = vadd.f32 %v4445_v52, %v3934_v34 }
 0x2dd   : > { %4453 = vmatprep.subr.bf16.mxu1 %v5708_v33  ;;  %v3573_v4 = vpop.f32.mrf.mxu0 }
 0x2de   : > { %v3574_v39 = vadd.f32 %v3934_v34, %v3573_v4 }
 0x2e0   : > { %4461 = vmatpush3.bf16.msra.mxu1 %v5708_v33 }
 0x2e1   : > { %4454 = vmatprep.subr.bf16.mxu1 %v5709_v41 }
 0x2e4   : > { %4462 = vmatpush3.bf16.msra.mxu1 %v5709_v41 }
 0x2e5   : > { %4455 = vmatprep.subr.bf16.mxu1 %v5710_v26 }
 0x2e8   : > { %4463 = vmatpush3.bf16.msra.mxu1 %v5710_v26 }
 0x2e9   : > { %4456 = vmatprep.subr.bf16.mxu1 %v5711_v42 }
 0x2ec   : > { %4464 = vmatpush3.bf16.msra.mxu1 %v5711_v42 }
 0x2ed   : > { %4457 = vmatprep.subr.bf16.mxu1 %v5712_v28 }
 0x2f0   : > { %4465 = vmatpush3.bf16.msra.mxu1 %v5712_v28 }
 0x2f3   : > { %4447 = vmatmul.mubr.bf16.vlgmr.msra.gmra.mxu1 %v3464_v45 }
 0x393   : > { %v4420_v53 = vpop.f32.mrf.mxu1 }
 0x394   : > { %v3430_v51 = vadd.f32 %v4420_v53, %v3917_v37 }
 0x395   : > { %v3421_v3 = vpop.f32.mrf.mxu1 }
 0x396   : > { %v3603_v6 = vadd.f32 %v3579_v1, %v3430_v51  ;;  %v3422_v14 = vadd.f32 %v3917_v37, %v3421_v3 }
 0x397   : > { %v4421_v40 = vpop.f32.mrf.mxu1 }
 0x398   : > { %v3611_v49 = vmax.f32 %v3603_v6, 0.0  ;;  %v3601_v8 = vadd.f32 %v3571_v60, %v3422_v14  ;;  %v3433_v11 = vadd.f32 %v4421_v40, %v3917_v37 }
 0x399   : > { %v3424_v46 = vpop.f32.mrf.mxu1 }
 0x39a   : > { %3619 = vst [vmem:[%s5580_s1 + $0x10] sm:$0xff] %v3611_v49  ;;  %v3609_v18 = vmax.f32 %v3601_v8, 0.0  ;;  %v3604_v57 = vadd.f32 %v3582_v7, %v3433_v11  ;;  %v3425_v20 = vadd.f32 %v3917_v37, %v3424_v46 }
 0x39b   : > { %v4424_v25 = vpop.f32.mrf.mxu1 }
 0x39c   : > { %3617 = vst [vmem:[%s5580_s1] sm:$0xff] %v3609_v18  ;;  %v3612_v13 = vmax.f32 %v3604_v57, 0.0  ;;  %v3602_v22 = vadd.f32 %v3574_v39, %v3425_v20  ;;  %v3446_v32 = vadd.f32 %v4424_v25, %v3917_v37 }
 0x39d   : > { %v3437_v5 = vpop.f32.mrf.mxu1 }
 0x39e   : > { %3620 = vst [vmem:[%s5580_s1 + $0x18] sm:$0xff] %v3612_v13  ;;  %v3610_v0 = vmax.f32 %v3602_v22, 0.0  ;;  %v3438_v23 = vadd.f32 %v3917_v37, %v3437_v5 }
 0x39f   : > { %v4425_v55 = vpop.f32.mrf.mxu1 }
 0x3a0   : > { %3618 = vst [vmem:[%s5580_s1 + $0x8] sm:$0xff] %v3610_v0  ;;  %v3449_v29 = vadd.f32 %v4425_v55, %v3917_v37 }
 0x3a1   : > { %v3440_v12 = vpop.f32.mrf.mxu1 }
 0x3a2   : > { %v3441_v48 = vadd.f32 %v3917_v37, %v3440_v12 }
 0x3b3   : > { %v4448_v24 = vpop.f32.mrf.mxu1 }
 0x3b4   : > { %v3595_v59 = vadd.f32 %v4448_v24, %v3934_v34 }
 0x3b5   : > { %v3586_v16 = vpop.f32.mrf.mxu1 }
 0x3b6   : > { %v3607_v2 = vadd.f32 %v3595_v59, %v3446_v32  ;;  %v3587_v27 = vadd.f32 %v3934_v34, %v3586_v16 }
 0x3b7   : > { %v4449_v10 = vpop.f32.mrf.mxu1 }
 0x3b8   : > { %v3615_v62 = vmax.f32 %v3607_v2, 0.0  ;;  %v3605_v56 = vadd.f32 %v3587_v27, %v3438_v23  ;;  %v3598_v54 = vadd.f32 %v4449_v10, %v3934_v34 }
 0x3b9   : > { %v3589_v19 = vpop.f32.mrf.mxu1 }
 0x3ba   : > { %3623 = vst [vmem:[%s5580_s1 + $0x30] sm:$0xff] %v3615_v62  ;;  %v3613_v15 = vmax.f32 %v3605_v56, 0.0  ;;  %v3608_v61 = vadd.f32 %v3598_v54, %v3449_v29  ;;  %v3590_v21 = vadd.f32 %v3934_v34, %v3589_v19 }
 0x3bc   : > { %3621 = vst [vmem:[%s5580_s1 + $0x20] sm:$0xff] %v3613_v15  ;;  %v3616_v58 = vmax.f32 %v3608_v61, 0.0  ;;  %v3606_v30 = vadd.f32 %v3590_v21, %v3441_v48 }
 0x3be   : > { %3624 = vst [vmem:[%s5580_s1 + $0x38] sm:$0xff] %v3616_v58  ;;  %v3614_v36 = vmax.f32 %v3606_v30, 0.0 }
 0x3c0   : > { %3622 = vst [vmem:[%s5580_s1 + $0x28] sm:$0xff] %v3614_v36 }
 0x3c1   : > { %4825 = shalt.err (!%p4822_p5)
}
 0x3c2   : > { %s4826_s20 = scalar_lea.hbm %s5595_s15, 1024  ;;  %s4830_s26 = scalar_lea.hbm %s5649_s9, 2048 }
 0x3c3   : > { %p4827_p3 = scmp.ne.s32.totalorder %s5595_s15, %s4826_s20  ;;  %p4831_p8 = scmp.lt.s32.totalorder %s5595_s15, %s5649_s9 }
 0x3c4   : > { %p4832_p9 = scmp.lt.s32.totalorder %s4830_s26, %s4826_s20 }
 0x3c5   : > { %p4828_p4 = pnand %p4827_p3, %p5713_p12 }
 0x3c6   : > { %p4833_p2 = por %p4832_p9, %p4831_p8 }
 0x3c7   : > { %p4829_p6 = pneg %p4828_p4 }
 0x3c9   : > { %p4834_p10 = pnand %p4833_p2, %p4829_p6 }
 0x3cb   : > { %4837 = shalt.err (!%p4834_p10)
}
 0x3cc   : > { %s4897_s22 = smov 128   ;;  %s4898_s28 = smov 8  }
 0x3cd   : > { %4484 = dma.vmem_to_hbm [thread:$0]  (%p5713_p12), %s5589_s27, 1024, %s5595_s15, %s3626_s17, %s4897_s22, %s4897_s22, %s4898_s28  }
 0x3ce PF: > { %s3654_s29 = sand.u32 1, %s4872_s30   ;;  %p5714_p7 = scmp.ne.s32.totalorder %s5673_s16, 0 }
 0x3cf   : > { %p5715_p1 = scmp.ge.s32.totalorder %s4884_s12, 2  ;;  %s3655_s13 = scalar_lea.sflag [#allocation6], %s3654_s29 }
 0x3d1   : > { %p4504_p13 = pnand %p5715_p1, %p5714_p7 }
 0x3d3   : > { %p4505_p0 = pneg %p4504_p13 }
 0x3d5   : > { %4867 = dma.done.wait (%p4505_p0), %s3655_s13, 1024  }
 0x3d6   : > { %4869 = vsyncadd (%p4505_p0), %s3655_s13, 4294966272  ;;  %p24_p11 = scmp.ge.s32.totalorder %s5049_s18, 4   ;;  %s5716_s30 = smov %s4876_s10 }
 0x3d7   : > { %s5717_s10 = smov %s4880_s11  ;;  %s5718_s11 = smov %s5065_s23 }
 0x3d8   : > { %s5719_s12 = smov %s5049_s18  ;;  %26 = sbr.rel (!%p24_p11) target bundleno = 11 (0xb), region = 131 }
 0x3dd   :  { %3660 = vsyncpa [#allocation5], 1 }
 0x3de   :  { %3662 = vsyncpa [#allocation5 + $0x1], 1 }
 0x3df   :  { %3663 = vsyncpa [#allocation8], 1 }
 0x3e0   :  { %3664 = vsyncpa [#allocation11], 1 }
 0x3e1   :  { %3665 = vsyncpa [#allocation6], 1 }
 0x3e2   :  { %3667 = vsyncpa [#allocation6 + $0x1], 1 }

</bundles_post_ra>
